<compile_context>
chip_gen: v6e
topology: v6e:2x2x1
jax: 0.10.0
libtpu: 0.0.40
codegen_flags: <defaults>
</compile_context>

<pallas_src>
import math

import jax
import jax.numpy as jnp
from jax import lax
from jax.experimental import pallas as pl
from jax.experimental.pallas import tpu as pltpu

# ----------------------------- model config -----------------------------
D_MODEL = 32
N_HEADS = 4
D_K = D_MODEL // N_HEADS
D_FF = 64
N_LAYERS = 2
VOCAB = 16
EPS = 1e-6                      # LayerNorm eps (added to std, as in the reference module)
SCALE = 1.0 / math.sqrt(D_K)
NEG = -1e9

# ------------------- weight slab layout (static offsets) -------------------
SLAB_COLS = 96                  # widest linear output (fused Q|K|V)

# encoder per-layer row offsets in the encoder slab (each entry = [K, N] weight + 1 bias row)
E_QKV, E_O, E_W1, E_W2 = 0, 40, 80, 120
ENC_ROWS = 192                  # >= 120 + 65, padded to a multiple of 16

# decoder per-layer row offsets in the decoder slab
D_SQKV, D_SO, D_CQ, D_CKV, D_CO, D_W1, D_W2 = 0, 40, 80, 120, 160, 200, 240
DEC_ROWS = 320                  # >= 240 + 65, padded to a multiple of 16

# LayerNorm slab rows (f32, [LN_ROWS, D_MODEL]); each norm = one 'a' row + one 'b' row
LN_EFIN = 4 * N_LAYERS          # encoder final norm (a at LN_EFIN, b at LN_EFIN+1)
LN_DEC = LN_EFIN + 2            # start of decoder per-layer norms (6 rows per layer)
LN_DFIN = LN_DEC + 6 * N_LAYERS
LN_ROWS = LN_DFIN + 2


# ------------------- in-kernel helpers -------------------
def _layer_norm(x, ln_ref, a_row, b_row):
    """Annotated-transformer LayerNorm: unbiased std (ddof=1), eps added to std."""
    a = ln_ref[a_row:a_row + 1, :]
    b = ln_ref[b_row:b_row + 1, :]
    mean = jnp.mean(x, axis=-1, keepdims=True)
    var = jnp.sum((x - mean) ** 2, axis=-1, keepdims=True) * (1.0 / (D_MODEL - 1))
    inv = pl.reciprocal(jnp.sqrt(var) + EPS, approx=False)
    return a * (x - mean) * inv + b


def _linear(x, w_ref, layer, row0, k, n, relu=False):
    """x: [M, k] f32; slab rows [row0, row0+k) = weight (bf16), row row0+k = bias."""
    w = w_ref[layer, row0:row0 + k, :n]                       # bf16 [k, n]
    bias = w_ref[layer, row0 + k:row0 + k + 1, :n]            # bf16 [1, n]
    y = jnp.dot(x.astype(jnp.bfloat16), w, preferred_element_type=jnp.float32)
    y = y + bias.astype(jnp.float32)
    if relu:
        y = jnp.maximum(y, 0.0)
    return y


def _split_heads(x):
    """[M, D_MODEL] -> [H*M, D_K], head-major along rows."""
    return jnp.concatenate([x[:, h * D_K:(h + 1) * D_K] for h in range(N_HEADS)], axis=0)


def _merge_heads(x, m):
    """[H*M, D_K] -> [M, D_MODEL]."""
    return jnp.concatenate([x[h * m:(h + 1) * m, :] for h in range(N_HEADS)], axis=1)


def _mha(q, k, v, bias):
    """All-heads-at-once attention.

    q: [Mq, D], k/v: [Mk, D] (f32), bias: [H*Mq, H*Mk] additive (0 on valid
    head/batch/mask positions, -1e9 elsewhere).  One score matmul, one softmax,
    one context matmul.
    """
    mq = q.shape[0]
    qs = _split_heads(q).astype(jnp.bfloat16)                 # [H*Mq, D_K]
    ks = _split_heads(k).astype(jnp.bfloat16)                 # [H*Mk, D_K]
    vs = _split_heads(v).astype(jnp.bfloat16)                 # [H*Mk, D_K]
    s = lax.dot_general(qs, ks, (((1,), (1,)), ((), ())),
                        preferred_element_type=jnp.float32) * SCALE + bias
    m = jnp.max(s, axis=-1, keepdims=True)
    p = jnp.exp(s - m)
    p = p * pl.reciprocal(jnp.sum(p, axis=-1, keepdims=True), approx=False)
    ctx = jnp.dot(p.astype(jnp.bfloat16), vs, preferred_element_type=jnp.float32)
    return _merge_heads(ctx, mq)                              # [Mq, D]


# ----------------------------- fused kernel -----------------------------
def _encdec_kernel(srcx_ref, tgtx_ref, ebias_ref, dbias_ref, xbias_ref,
                   enc_w_ref, dec_w_ref, ln_ref, out_ref):
    ebias = ebias_ref[...]          # [H*B*Ss, H*B*Ss]
    dbias = dbias_ref[...]          # [H*B*St, H*B*St]
    xbias = xbias_ref[...]          # [H*B*St, H*B*Ss]

    # -------------------- encoder --------------------
    x = srcx_ref[...]               # [B*Ss, D] f32
    for l in range(N_LAYERS):
        base = 4 * l
        n = _layer_norm(x, ln_ref, base + 0, base + 1)
        qkv = _linear(n, enc_w_ref, l, E_QKV, D_MODEL, 3 * D_MODEL)
        a = _mha(qkv[:, :D_MODEL], qkv[:, D_MODEL:2 * D_MODEL],
                 qkv[:, 2 * D_MODEL:], ebias)
        x = x + _linear(a, enc_w_ref, l, E_O, D_MODEL, D_MODEL)
        n = _layer_norm(x, ln_ref, base + 2, base + 3)
        h = _linear(n, enc_w_ref, l, E_W1, D_MODEL, D_FF, relu=True)
        x = x + _linear(h, enc_w_ref, l, E_W2, D_FF, D_MODEL)
    memory = _layer_norm(x, ln_ref, LN_EFIN, LN_EFIN + 1)     # [B*Ss, D]

    # -------------------- decoder --------------------
    x = tgtx_ref[...]               # [B*St, D] f32
    for l in range(N_LAYERS):
        base = LN_DEC + 6 * l
        # masked self-attention
        n = _layer_norm(x, ln_ref, base + 0, base + 1)
        qkv = _linear(n, dec_w_ref, l, D_SQKV, D_MODEL, 3 * D_MODEL)
        a = _mha(qkv[:, :D_MODEL], qkv[:, D_MODEL:2 * D_MODEL],
                 qkv[:, 2 * D_MODEL:], dbias)
        x = x + _linear(a, dec_w_ref, l, D_SO, D_MODEL, D_MODEL)
        # cross-attention over the encoder memory (K|V fused)
        n = _layer_norm(x, ln_ref, base + 2, base + 3)
        q = _linear(n, dec_w_ref, l, D_CQ, D_MODEL, D_MODEL)
        kv = _linear(memory, dec_w_ref, l, D_CKV, D_MODEL, 2 * D_MODEL)
        a = _mha(q, kv[:, :D_MODEL], kv[:, D_MODEL:], xbias)
        x = x + _linear(a, dec_w_ref, l, D_CO, D_MODEL, D_MODEL)
        # feed-forward
        n = _layer_norm(x, ln_ref, base + 4, base + 5)
        h = _linear(n, dec_w_ref, l, D_W1, D_MODEL, D_FF, relu=True)
        x = x + _linear(h, dec_w_ref, l, D_W2, D_FF, D_MODEL)
    out_ref[...] = _layer_norm(x, ln_ref, LN_DFIN, LN_DFIN + 1)


# ----------------------------- parameters -----------------------------
def init_params(key):
    keys = iter(jax.random.split(key, 256))

    def dense_wb(fan_in, fan_out):
        w = jax.random.normal(next(keys), (fan_in, fan_out), jnp.float32) * 0.02
        b = jnp.zeros((1, fan_out), jnp.float32)
        return jnp.concatenate([w, b], axis=0)                # [fan_in + 1, fan_out]

    def pack(entries, rows):
        slab = jnp.zeros((rows, SLAB_COLS), jnp.float32)
        for off, wb in entries:
            r, c = wb.shape
            slab = slab.at[off:off + r, :c].set(wb)
        return slab

    enc_slabs, dec_slabs = [], []
    for _ in range(N_LAYERS):
        qkv = jnp.concatenate([dense_wb(D_MODEL, D_MODEL) for _ in range(3)], axis=1)
        enc_slabs.append(pack([(E_QKV, qkv),
                               (E_O, dense_wb(D_MODEL, D_MODEL)),
                               (E_W1, dense_wb(D_MODEL, D_FF)),
                               (E_W2, dense_wb(D_FF, D_MODEL))], ENC_ROWS))
    for _ in range(N_LAYERS):
        sqkv = jnp.concatenate([dense_wb(D_MODEL, D_MODEL) for _ in range(3)], axis=1)
        ckv = jnp.concatenate([dense_wb(D_MODEL, D_MODEL) for _ in range(2)], axis=1)
        dec_slabs.append(pack([(D_SQKV, sqkv),
                               (D_SO, dense_wb(D_MODEL, D_MODEL)),
                               (D_CQ, dense_wb(D_MODEL, D_MODEL)),
                               (D_CKV, ckv),
                               (D_CO, dense_wb(D_MODEL, D_MODEL)),
                               (D_W1, dense_wb(D_MODEL, D_FF)),
                               (D_W2, dense_wb(D_FF, D_MODEL))], DEC_ROWS))

    # LayerNorm slab: 'a' rows = 1, 'b' rows = 0 (reference init)
    ln = jnp.zeros((LN_ROWS, D_MODEL), jnp.float32)
    a_rows = []
    for l in range(N_LAYERS):
        a_rows += [4 * l, 4 * l + 2]
    a_rows.append(LN_EFIN)
    for l in range(N_LAYERS):
        base = LN_DEC + 6 * l
        a_rows += [base, base + 2, base + 4]
    a_rows.append(LN_DFIN)
    ln = ln.at[jnp.array(a_rows), :].set(1.0)

    return {
        "src_emb": jax.random.normal(next(keys), (VOCAB, D_MODEL), jnp.float32),
        "tgt_emb": jax.random.normal(next(keys), (VOCAB, D_MODEL), jnp.float32),
        "enc_w": jnp.stack(enc_slabs).astype(jnp.bfloat16),   # [L, ENC_ROWS, 96]
        "dec_w": jnp.stack(dec_slabs).astype(jnp.bfloat16),   # [L, DEC_ROWS, 96]
        "ln": ln,                                             # [LN_ROWS, D]
        # present in the module, unused in forward()
        "generator": dense_wb(D_MODEL, VOCAB),
    }


def positional_encoding(seq_len, d_model):
    pos = jnp.arange(seq_len, dtype=jnp.float32)[:, None]
    div = jnp.exp(jnp.arange(0, d_model, 2, dtype=jnp.float32)
                  * (-math.log(10000.0) / d_model))
    pe = jnp.zeros((seq_len, d_model), jnp.float32)
    pe = pe.at[:, 0::2].set(jnp.sin(pos * div))
    pe = pe.at[:, 1::2].set(jnp.cos(pos * div))
    return pe


def embed(table, tokens):
    # token embedding gather + positional encoding kept in plain JAX (tiny XLA gather);
    # dropout == identity (eval mode).
    S = tokens.shape[1]
    return table[tokens] * math.sqrt(D_MODEL) + positional_encoding(S, D_MODEL)[None]


def _block_bias(mask_bqk):
    """mask [B, Q, K] (nonzero = attend) -> additive bias [H*B*Q, H*B*K].

    0 where head_q == head_k AND batch_q == batch_k AND mask[b, q, k] > 0, else -1e9.
    Lets the kernel run a single fused softmax over head- and batch-stacked scores.
    """
    B, Q, K = mask_bqk.shape
    valid = mask_bqk > 0
    beye = jnp.eye(B, dtype=bool)
    v = valid[:, :, None, :] & beye[:, None, :, None]          # [B, Q, B, K]
    v = v.reshape(B * Q, B * K)
    heye = jnp.eye(N_HEADS, dtype=bool)
    v = v[None, :, None, :] & heye[:, None, :, None]           # [H, BQ, H, BK]
    v = v.reshape(N_HEADS * B * Q, N_HEADS * B * K)
    return jnp.where(v, 0.0, NEG).astype(jnp.float32)


# ----------------------------- forward wrapper -----------------------------
def encoder_decoder_forward(params, src, tgt, src_mask, tgt_mask):
    """Equivalent of EncoderDecoder.forward: decode(encode(src, src_mask), src_mask, tgt, tgt_mask)."""
    B, S_src = src.shape
    S_tgt = tgt.shape[1]

    src_x = embed(params["src_emb"], src).reshape(B * S_src, D_MODEL)
    tgt_x = embed(params["tgt_emb"], tgt).reshape(B * S_tgt, D_MODEL)

    smask = src_mask.astype(jnp.float32)
    tmask = tgt_mask.astype(jnp.float32)
    ebias = _block_bias(jnp.broadcast_to(smask, (B, S_src, S_src)))
    dbias = _block_bias(jnp.broadcast_to(tmask, (B, S_tgt, S_tgt)))
    xbias = _block_bias(jnp.broadcast_to(smask, (B, S_tgt, S_src)))

    operands = (src_x, tgt_x, ebias, dbias, xbias,
                params["enc_w"], params["dec_w"], params["ln"])

    def full_spec(a):                      # whole array resident in VMEM, single grid step
        return pl.BlockSpec(a.shape, lambda i, _nd=a.ndim: (0,) * _nd)

    out = pl.pallas_call(
        _encdec_kernel,
        out_shape=jax.ShapeDtypeStruct((B * S_tgt, D_MODEL), jnp.float32),
        grid=(1,),
        in_specs=[full_spec(a) for a in operands],
        out_specs=pl.BlockSpec((B * S_tgt, D_MODEL), lambda i: (0, 0)),
        compiler_params=pltpu.CompilerParams(
            dimension_semantics=("arbitrary",),
            vmem_limit_bytes=4 * 1024 * 1024,   # resident footprint is a few hundred KiB
        ),
    )(*operands)
    return out.reshape(B, S_tgt, D_MODEL)


# ----------------------------- main -----------------------------
if __name__ == "__main__":
    key = jax.random.PRNGKey(0)
    pkey, skey, tkey = jax.random.split(key, 3)
    params = init_params(pkey)

    B, S_SRC, S_TGT = 2, 8, 8
    src = jax.random.randint(skey, (B, S_SRC), 1, VOCAB)
    tgt = jax.random.randint(tkey, (B, S_TGT), 1, VOCAB)
    src_mask = jnp.ones((B, 1, S_SRC), jnp.float32)                      # all tokens valid
    causal = jnp.tril(jnp.ones((S_TGT, S_TGT), jnp.float32))             # subsequent mask
    tgt_mask = jnp.broadcast_to(causal[None], (B, S_TGT, S_TGT))

    fwd = jax.jit(encoder_decoder_forward)
    out = fwd(params, src, tgt, src_mask, tgt_mask)
    out = jax.block_until_ready(out)
    assert out.shape == (B, S_TGT, D_MODEL) and out.dtype == jnp.float32
    assert bool(jnp.all(jnp.isfinite(out)))
    print("KERNEL_OK")
</pallas_src>

<mosaic_0001>
module attributes {stable_mosaic.version = 11 : i64} {
  func.func @_encdec_kernel(%arg0: i32, %arg1: memref<16x32xf32, #tpu.memory_space<vmem>>, %arg2: memref<16x32xf32, #tpu.memory_space<vmem>>, %arg3: memref<64x64xf32, #tpu.memory_space<vmem>>, %arg4: memref<64x64xf32, #tpu.memory_space<vmem>>, %arg5: memref<64x64xf32, #tpu.memory_space<vmem>>, %arg6: memref<2x192x96xbf16, #tpu.memory_space<vmem>>, %arg7: memref<2x320x96xbf16, #tpu.memory_space<vmem>>, %arg8: memref<24x32xf32, #tpu.memory_space<vmem>>, %arg9: memref<16x32xf32, #tpu.memory_space<vmem>>) attributes {dimension_semantics = [#tpu.dimension_semantics<arbitrary>], iteration_bounds = array<i64: 1>, scalar_prefetch = 0 : i64, scratch_operands = 0 : i64, tpu.core_type = #tpu.core_type<tc>, window_params = [{pipeline_mode = #tpu.pipeline_mode<synchronous>, transform_indices = @transform_0, window_bounds = array<i64: 16, 32>}, {pipeline_mode = #tpu.pipeline_mode<synchronous>, transform_indices = @transform_1, window_bounds = array<i64: 16, 32>}, {pipeline_mode = #tpu.pipeline_mode<synchronous>, transform_indices = @transform_2, window_bounds = array<i64: 64, 64>}, {pipeline_mode = #tpu.pipeline_mode<synchronous>, transform_indices = @transform_3, window_bounds = array<i64: 64, 64>}, {pipeline_mode = #tpu.pipeline_mode<synchronous>, transform_indices = @transform_4, window_bounds = array<i64: 64, 64>}, {pipeline_mode = #tpu.pipeline_mode<synchronous>, transform_indices = @transform_5, window_bounds = array<i64: 2, 192, 96>}, {pipeline_mode = #tpu.pipeline_mode<synchronous>, transform_indices = @transform_6, window_bounds = array<i64: 2, 320, 96>}, {pipeline_mode = #tpu.pipeline_mode<synchronous>, transform_indices = @transform_7, window_bounds = array<i64: 24, 32>}, {pipeline_mode = #tpu.pipeline_mode<synchronous>, transform_indices = @transform_8, window_bounds = array<i64: 16, 32>}]} {
    %c0 = arith.constant 0 : index
    %c0_0 = arith.constant 0 : index
    %0 = vector.load %arg3[%c0, %c0_0] : memref<64x64xf32, #tpu.memory_space<vmem>>, vector<64x64xf32>
    %c0_1 = arith.constant 0 : index
    %c0_2 = arith.constant 0 : index
    %1 = vector.load %arg4[%c0_1, %c0_2] : memref<64x64xf32, #tpu.memory_space<vmem>>, vector<64x64xf32>
    %c0_3 = arith.constant 0 : index
    %c0_4 = arith.constant 0 : index
    %2 = vector.load %arg5[%c0_3, %c0_4] : memref<64x64xf32, #tpu.memory_space<vmem>>, vector<64x64xf32>
    %c0_5 = arith.constant 0 : index
    %c0_6 = arith.constant 0 : index
    %3 = vector.load %arg1[%c0_5, %c0_6] : memref<16x32xf32, #tpu.memory_space<vmem>>, vector<16x32xf32>
    %c0_7 = arith.constant 0 : index
    %c0_8 = arith.constant 0 : index
    %4 = vector.load %arg8[%c0_7, %c0_8] : memref<24x32xf32, #tpu.memory_space<vmem>>, vector<1x32xf32>
    %c1 = arith.constant 1 : index
    %c0_9 = arith.constant 0 : index
    %5 = vector.load %arg8[%c1, %c0_9] : memref<24x32xf32, #tpu.memory_space<vmem>>, vector<1x32xf32>
    %cst = arith.constant dense<0.000000e+00> : vector<16xf32>
    %6 = vector.multi_reduction <add>, %3, %cst [1] : vector<16x32xf32> to vector<16xf32>
    %7 = vector.shape_cast %6 : vector<16xf32> to vector<16x1xf32>
    %cst_10 = arith.constant 3.200000e+01 : f32
    %8 = vector.broadcast %cst_10 : f32 to vector<16x1xf32>
    %9 = arith.divf %7, %8 : vector<16x1xf32>
    %10 = vector.broadcast %9 : vector<16x1xf32> to vector<16x32xf32>
    %11 = arith.subf %3, %10 : vector<16x32xf32>
    %12 = arith.mulf %11, %11 : vector<16x32xf32>
    %cst_11 = arith.constant dense<0.000000e+00> : vector<16xf32>
    %13 = vector.multi_reduction <add>, %12, %cst_11 [1] : vector<16x32xf32> to vector<16xf32>
    %14 = vector.shape_cast %13 : vector<16xf32> to vector<16x1xf32>
    %cst_12 = arith.constant 0.0322580636 : f32
    %15 = vector.broadcast %cst_12 : f32 to vector<16x1xf32>
    %16 = arith.mulf %14, %15 : vector<16x1xf32>
    %17 = math.sqrt %16 : vector<16x1xf32>
    %cst_13 = arith.constant 9.99999997E-7 : f32
    %18 = vector.broadcast %cst_13 : f32 to vector<16x1xf32>
    %19 = arith.addf %17, %18 : vector<16x1xf32>
    %20 = tpu.reciprocal %19 : vector<16x1xf32> -> vector<16x1xf32>
    %21 = vector.broadcast %9 : vector<16x1xf32> to vector<16x32xf32>
    %22 = arith.subf %3, %21 : vector<16x32xf32>
    %23 = vector.broadcast %4 : vector<1x32xf32> to vector<16x32xf32>
    %24 = arith.mulf %23, %22 : vector<16x32xf32>
    %25 = vector.broadcast %20 : vector<16x1xf32> to vector<16x32xf32>
    %26 = arith.mulf %24, %25 : vector<16x32xf32>
    %27 = vector.broadcast %5 : vector<1x32xf32> to vector<16x32xf32>
    %28 = arith.addf %26, %27 : vector<16x32xf32>
    %c0_14 = arith.constant 0 : index
    %c0_15 = arith.constant 0 : index
    %c0_16 = arith.constant 0 : index
    %29 = vector.load %arg6[%c0_14, %c0_15, %c0_16] : memref<2x192x96xbf16, #tpu.memory_space<vmem>>, vector<1x32x96xbf16>
    %30 = vector.shape_cast %29 : vector<1x32x96xbf16> to vector<32x96xbf16>
    %c0_17 = arith.constant 0 : index
    %c32 = arith.constant 32 : index
    %c0_18 = arith.constant 0 : index
    %31 = vector.load %arg6[%c0_17, %c32, %c0_18] : memref<2x192x96xbf16, #tpu.memory_space<vmem>>, vector<1x1x96xbf16>
    %32 = vector.shape_cast %31 : vector<1x1x96xbf16> to vector<1x96xbf16>
    %33 = arith.truncf %28 : vector<16x32xf32> to vector<16x32xbf16>
    %cst_19 = arith.constant dense<0.000000e+00> : vector<16x96xf32>
    %34 = tpu.matmul %33, %30, %cst_19 {dimension_numbers = #tpu.dot_dimension_numbers<[1], [0], [0], [1], [0, 0, 1, 1], [], []>} : vector<16x32xbf16>, vector<32x96xbf16>, vector<16x96xf32> -> vector<16x96xf32>
    %35 = arith.extf %32 : vector<1x96xbf16> to vector<1x96xf32>
    %36 = vector.broadcast %35 : vector<1x96xf32> to vector<16x96xf32>
    %37 = arith.addf %34, %36 : vector<16x96xf32>
    %38 = vector.extract_strided_slice %37 {offsets = [0, 0], sizes = [16, 32], strides = [1, 1]} : vector<16x96xf32> to vector<16x32xf32>
    %39 = vector.extract_strided_slice %37 {offsets = [0, 32], sizes = [16, 32], strides = [1, 1]} : vector<16x96xf32> to vector<16x32xf32>
    %40 = vector.extract_strided_slice %37 {offsets = [0, 64], sizes = [16, 32], strides = [1, 1]} : vector<16x96xf32> to vector<16x32xf32>
    %41 = vector.extract_strided_slice %38 {offsets = [0, 0], sizes = [16, 8], strides = [1, 1]} : vector<16x32xf32> to vector<16x8xf32>
    %42 = vector.extract_strided_slice %38 {offsets = [0, 8], sizes = [16, 8], strides = [1, 1]} : vector<16x32xf32> to vector<16x8xf32>
    %43 = vector.extract_strided_slice %38 {offsets = [0, 16], sizes = [16, 8], strides = [1, 1]} : vector<16x32xf32> to vector<16x8xf32>
    %44 = vector.extract_strided_slice %38 {offsets = [0, 24], sizes = [16, 8], strides = [1, 1]} : vector<16x32xf32> to vector<16x8xf32>
    %45 = tpu.concatenate %41, %42, %43, %44 in 0 : vector<16x8xf32>, vector<16x8xf32>, vector<16x8xf32>, vector<16x8xf32> -> vector<64x8xf32>
    %46 = arith.truncf %45 : vector<64x8xf32> to vector<64x8xbf16>
    %47 = vector.extract_strided_slice %39 {offsets = [0, 0], sizes = [16, 8], strides = [1, 1]} : vector<16x32xf32> to vector<16x8xf32>
    %48 = vector.extract_strided_slice %39 {offsets = [0, 8], sizes = [16, 8], strides = [1, 1]} : vector<16x32xf32> to vector<16x8xf32>
    %49 = vector.extract_strided_slice %39 {offsets = [0, 16], sizes = [16, 8], strides = [1, 1]} : vector<16x32xf32> to vector<16x8xf32>
    %50 = vector.extract_strided_slice %39 {offsets = [0, 24], sizes = [16, 8], strides = [1, 1]} : vector<16x32xf32> to vector<16x8xf32>
    %51 = tpu.concatenate %47, %48, %49, %50 in 0 : vector<16x8xf32>, vector<16x8xf32>, vector<16x8xf32>, vector<16x8xf32> -> vector<64x8xf32>
    %52 = arith.truncf %51 : vector<64x8xf32> to vector<64x8xbf16>
    %53 = vector.extract_strided_slice %40 {offsets = [0, 0], sizes = [16, 8], strides = [1, 1]} : vector<16x32xf32> to vector<16x8xf32>
    %54 = vector.extract_strided_slice %40 {offsets = [0, 8], sizes = [16, 8], strides = [1, 1]} : vector<16x32xf32> to vector<16x8xf32>
    %55 = vector.extract_strided_slice %40 {offsets = [0, 16], sizes = [16, 8], strides = [1, 1]} : vector<16x32xf32> to vector<16x8xf32>
    %56 = vector.extract_strided_slice %40 {offsets = [0, 24], sizes = [16, 8], strides = [1, 1]} : vector<16x32xf32> to vector<16x8xf32>
    %57 = tpu.concatenate %53, %54, %55, %56 in 0 : vector<16x8xf32>, vector<16x8xf32>, vector<16x8xf32>, vector<16x8xf32> -> vector<64x8xf32>
    %58 = arith.truncf %57 : vector<64x8xf32> to vector<64x8xbf16>
    %cst_20 = arith.constant dense<0.000000e+00> : vector<64x64xf32>
    %59 = tpu.matmul %46, %52, %cst_20 {dimension_numbers = #tpu.dot_dimension_numbers<[1], [1], [0], [0], [0, 0, 1, 0], [], []>} : vector<64x8xbf16>, vector<64x8xbf16>, vector<64x64xf32> -> vector<64x64xf32>
    %cst_21 = arith.constant 0.353553385 : f32
    %60 = vector.broadcast %cst_21 : f32 to vector<64x64xf32>
    %61 = arith.mulf %59, %60 : vector<64x64xf32>
    %62 = arith.addf %61, %0 : vector<64x64xf32>
    %cst_22 = arith.constant dense<0xFF800000> : vector<64xf32>
    %63 = vector.multi_reduction <maximumf>, %62, %cst_22 [1] : vector<64x64xf32> to vector<64xf32>
    %64 = vector.shape_cast %63 : vector<64xf32> to vector<64x1xf32>
    %65 = vector.broadcast %64 : vector<64x1xf32> to vector<64x64xf32>
    %66 = arith.subf %62, %65 : vector<64x64xf32>
    %67 = math.exp %66 : vector<64x64xf32>
    %cst_23 = arith.constant dense<0.000000e+00> : vector<64xf32>
    %68 = vector.multi_reduction <add>, %67, %cst_23 [1] : vector<64x64xf32> to vector<64xf32>
    %69 = vector.shape_cast %68 : vector<64xf32> to vector<64x1xf32>
    %70 = tpu.reciprocal %69 : vector<64x1xf32> -> vector<64x1xf32>
    %71 = vector.broadcast %70 : vector<64x1xf32> to vector<64x64xf32>
    %72 = arith.mulf %67, %71 : vector<64x64xf32>
    %73 = arith.truncf %72 : vector<64x64xf32> to vector<64x64xbf16>
    %cst_24 = arith.constant dense<0.000000e+00> : vector<64x8xf32>
    %74 = tpu.matmul %73, %58, %cst_24 {dimension_numbers = #tpu.dot_dimension_numbers<[1], [0], [0], [1], [0, 0, 1, 1], [], []>} : vector<64x64xbf16>, vector<64x8xbf16>, vector<64x8xf32> -> vector<64x8xf32>
    %75 = vector.extract_strided_slice %74 {offsets = [0, 0], sizes = [16, 8], strides = [1, 1]} : vector<64x8xf32> to vector<16x8xf32>
    %76 = vector.extract_strided_slice %74 {offsets = [16, 0], sizes = [16, 8], strides = [1, 1]} : vector<64x8xf32> to vector<16x8xf32>
    %77 = vector.extract_strided_slice %74 {offsets = [32, 0], sizes = [16, 8], strides = [1, 1]} : vector<64x8xf32> to vector<16x8xf32>
    %78 = vector.extract_strided_slice %74 {offsets = [48, 0], sizes = [16, 8], strides = [1, 1]} : vector<64x8xf32> to vector<16x8xf32>
    %79 = tpu.concatenate %75, %76, %77, %78 in 1 : vector<16x8xf32>, vector<16x8xf32>, vector<16x8xf32>, vector<16x8xf32> -> vector<16x32xf32>
    %c0_25 = arith.constant 0 : index
    %c40 = arith.constant 40 : index
    %c0_26 = arith.constant 0 : index
    %80 = vector.load %arg6[%c0_25, %c40, %c0_26] : memref<2x192x96xbf16, #tpu.memory_space<vmem>>, vector<1x32x32xbf16>
    %81 = vector.shape_cast %80 : vector<1x32x32xbf16> to vector<32x32xbf16>
    %c0_27 = arith.constant 0 : index
    %c72 = arith.constant 72 : index
    %c0_28 = arith.constant 0 : index
    %82 = vector.load %arg6[%c0_27, %c72, %c0_28] : memref<2x192x96xbf16, #tpu.memory_space<vmem>>, vector<1x1x32xbf16>
    %83 = vector.shape_cast %82 : vector<1x1x32xbf16> to vector<1x32xbf16>
    %84 = arith.truncf %79 : vector<16x32xf32> to vector<16x32xbf16>
    %cst_29 = arith.constant dense<0.000000e+00> : vector<16x32xf32>
    %85 = tpu.matmul %84, %81, %cst_29 {dimension_numbers = #tpu.dot_dimension_numbers<[1], [0], [0], [1], [0, 0, 1, 1], [], []>} : vector<16x32xbf16>, vector<32x32xbf16>, vector<16x32xf32> -> vector<16x32xf32>
    %86 = arith.extf %83 : vector<1x32xbf16> to vector<1x32xf32>
    %87 = vector.broadcast %86 : vector<1x32xf32> to vector<16x32xf32>
    %88 = arith.addf %85, %87 : vector<16x32xf32>
    %89 = arith.addf %3, %88 : vector<16x32xf32>
    %c2 = arith.constant 2 : index
    %c0_30 = arith.constant 0 : index
    %90 = vector.load %arg8[%c2, %c0_30] : memref<24x32xf32, #tpu.memory_space<vmem>>, vector<1x32xf32>
    %c3 = arith.constant 3 : index
    %c0_31 = arith.constant 0 : index
    %91 = vector.load %arg8[%c3, %c0_31] : memref<24x32xf32, #tpu.memory_space<vmem>>, vector<1x32xf32>
    %cst_32 = arith.constant dense<0.000000e+00> : vector<16xf32>
    %92 = vector.multi_reduction <add>, %89, %cst_32 [1] : vector<16x32xf32> to vector<16xf32>
    %93 = vector.shape_cast %92 : vector<16xf32> to vector<16x1xf32>
    %cst_33 = arith.constant 3.200000e+01 : f32
    %94 = vector.broadcast %cst_33 : f32 to vector<16x1xf32>
    %95 = arith.divf %93, %94 : vector<16x1xf32>
    %96 = vector.broadcast %95 : vector<16x1xf32> to vector<16x32xf32>
    %97 = arith.subf %89, %96 : vector<16x32xf32>
    %98 = arith.mulf %97, %97 : vector<16x32xf32>
    %cst_34 = arith.constant dense<0.000000e+00> : vector<16xf32>
    %99 = vector.multi_reduction <add>, %98, %cst_34 [1] : vector<16x32xf32> to vector<16xf32>
    %100 = vector.shape_cast %99 : vector<16xf32> to vector<16x1xf32>
    %cst_35 = arith.constant 0.0322580636 : f32
    %101 = vector.broadcast %cst_35 : f32 to vector<16x1xf32>
    %102 = arith.mulf %100, %101 : vector<16x1xf32>
    %103 = math.sqrt %102 : vector<16x1xf32>
    %cst_36 = arith.constant 9.99999997E-7 : f32
    %104 = vector.broadcast %cst_36 : f32 to vector<16x1xf32>
    %105 = arith.addf %103, %104 : vector<16x1xf32>
    %106 = tpu.reciprocal %105 : vector<16x1xf32> -> vector<16x1xf32>
    %107 = vector.broadcast %95 : vector<16x1xf32> to vector<16x32xf32>
    %108 = arith.subf %89, %107 : vector<16x32xf32>
    %109 = vector.broadcast %90 : vector<1x32xf32> to vector<16x32xf32>
    %110 = arith.mulf %109, %108 : vector<16x32xf32>
    %111 = vector.broadcast %106 : vector<16x1xf32> to vector<16x32xf32>
    %112 = arith.mulf %110, %111 : vector<16x32xf32>
    %113 = vector.broadcast %91 : vector<1x32xf32> to vector<16x32xf32>
    %114 = arith.addf %112, %113 : vector<16x32xf32>
    %c0_37 = arith.constant 0 : index
    %c80 = arith.constant 80 : index
    %c0_38 = arith.constant 0 : index
    %115 = vector.load %arg6[%c0_37, %c80, %c0_38] : memref<2x192x96xbf16, #tpu.memory_space<vmem>>, vector<1x32x64xbf16>
    %116 = vector.shape_cast %115 : vector<1x32x64xbf16> to vector<32x64xbf16>
    %c0_39 = arith.constant 0 : index
    %c112 = arith.constant 112 : index
    %c0_40 = arith.constant 0 : index
    %117 = vector.load %arg6[%c0_39, %c112, %c0_40] : memref<2x192x96xbf16, #tpu.memory_space<vmem>>, vector<1x1x64xbf16>
    %118 = vector.shape_cast %117 : vector<1x1x64xbf16> to vector<1x64xbf16>
    %119 = arith.truncf %114 : vector<16x32xf32> to vector<16x32xbf16>
    %cst_41 = arith.constant dense<0.000000e+00> : vector<16x64xf32>
    %120 = tpu.matmul %119, %116, %cst_41 {dimension_numbers = #tpu.dot_dimension_numbers<[1], [0], [0], [1], [0, 0, 1, 1], [], []>} : vector<16x32xbf16>, vector<32x64xbf16>, vector<16x64xf32> -> vector<16x64xf32>
    %121 = arith.extf %118 : vector<1x64xbf16> to vector<1x64xf32>
    %122 = vector.broadcast %121 : vector<1x64xf32> to vector<16x64xf32>
    %123 = arith.addf %120, %122 : vector<16x64xf32>
    %cst_42 = arith.constant 0.000000e+00 : f32
    %124 = vector.broadcast %cst_42 : f32 to vector<16x64xf32>
    %125 = arith.maximumf %123, %124 : vector<16x64xf32>
    %c0_43 = arith.constant 0 : index
    %c120 = arith.constant 120 : index
    %c0_44 = arith.constant 0 : index
    %126 = vector.load %arg6[%c0_43, %c120, %c0_44] : memref<2x192x96xbf16, #tpu.memory_space<vmem>>, vector<1x64x32xbf16>
    %127 = vector.shape_cast %126 : vector<1x64x32xbf16> to vector<64x32xbf16>
    %c0_45 = arith.constant 0 : index
    %c184 = arith.constant 184 : index
    %c0_46 = arith.constant 0 : index
    %128 = vector.load %arg6[%c0_45, %c184, %c0_46] : memref<2x192x96xbf16, #tpu.memory_space<vmem>>, vector<1x1x32xbf16>
    %129 = vector.shape_cast %128 : vector<1x1x32xbf16> to vector<1x32xbf16>
    %130 = arith.truncf %125 : vector<16x64xf32> to vector<16x64xbf16>
    %cst_47 = arith.constant dense<0.000000e+00> : vector<16x32xf32>
    %131 = tpu.matmul %130, %127, %cst_47 {dimension_numbers = #tpu.dot_dimension_numbers<[1], [0], [0], [1], [0, 0, 1, 1], [], []>} : vector<16x64xbf16>, vector<64x32xbf16>, vector<16x32xf32> -> vector<16x32xf32>
    %132 = arith.extf %129 : vector<1x32xbf16> to vector<1x32xf32>
    %133 = vector.broadcast %132 : vector<1x32xf32> to vector<16x32xf32>
    %134 = arith.addf %131, %133 : vector<16x32xf32>
    %135 = arith.addf %89, %134 : vector<16x32xf32>
    %c4 = arith.constant 4 : index
    %c0_48 = arith.constant 0 : index
    %136 = vector.load %arg8[%c4, %c0_48] : memref<24x32xf32, #tpu.memory_space<vmem>>, vector<1x32xf32>
    %c5 = arith.constant 5 : index
    %c0_49 = arith.constant 0 : index
    %137 = vector.load %arg8[%c5, %c0_49] : memref<24x32xf32, #tpu.memory_space<vmem>>, vector<1x32xf32>
    %cst_50 = arith.constant dense<0.000000e+00> : vector<16xf32>
    %138 = vector.multi_reduction <add>, %135, %cst_50 [1] : vector<16x32xf32> to vector<16xf32>
    %139 = vector.shape_cast %138 : vector<16xf32> to vector<16x1xf32>
    %cst_51 = arith.constant 3.200000e+01 : f32
    %140 = vector.broadcast %cst_51 : f32 to vector<16x1xf32>
    %141 = arith.divf %139, %140 : vector<16x1xf32>
    %142 = vector.broadcast %141 : vector<16x1xf32> to vector<16x32xf32>
    %143 = arith.subf %135, %142 : vector<16x32xf32>
    %144 = arith.mulf %143, %143 : vector<16x32xf32>
    %cst_52 = arith.constant dense<0.000000e+00> : vector<16xf32>
    %145 = vector.multi_reduction <add>, %144, %cst_52 [1] : vector<16x32xf32> to vector<16xf32>
    %146 = vector.shape_cast %145 : vector<16xf32> to vector<16x1xf32>
    %cst_53 = arith.constant 0.0322580636 : f32
    %147 = vector.broadcast %cst_53 : f32 to vector<16x1xf32>
    %148 = arith.mulf %146, %147 : vector<16x1xf32>
    %149 = math.sqrt %148 : vector<16x1xf32>
    %cst_54 = arith.constant 9.99999997E-7 : f32
    %150 = vector.broadcast %cst_54 : f32 to vector<16x1xf32>
    %151 = arith.addf %149, %150 : vector<16x1xf32>
    %152 = tpu.reciprocal %151 : vector<16x1xf32> -> vector<16x1xf32>
    %153 = vector.broadcast %141 : vector<16x1xf32> to vector<16x32xf32>
    %154 = arith.subf %135, %153 : vector<16x32xf32>
    %155 = vector.broadcast %136 : vector<1x32xf32> to vector<16x32xf32>
    %156 = arith.mulf %155, %154 : vector<16x32xf32>
    %157 = vector.broadcast %152 : vector<16x1xf32> to vector<16x32xf32>
    %158 = arith.mulf %156, %157 : vector<16x32xf32>
    %159 = vector.broadcast %137 : vector<1x32xf32> to vector<16x32xf32>
    %160 = arith.addf %158, %159 : vector<16x32xf32>
    %c1_55 = arith.constant 1 : index
    %c0_56 = arith.constant 0 : index
    %c0_57 = arith.constant 0 : index
    %161 = vector.load %arg6[%c1_55, %c0_56, %c0_57] : memref<2x192x96xbf16, #tpu.memory_space<vmem>>, vector<1x32x96xbf16>
    %162 = vector.shape_cast %161 : vector<1x32x96xbf16> to vector<32x96xbf16>
    %c1_58 = arith.constant 1 : index
    %c32_59 = arith.constant 32 : index
    %c0_60 = arith.constant 0 : index
    %163 = vector.load %arg6[%c1_58, %c32_59, %c0_60] : memref<2x192x96xbf16, #tpu.memory_space<vmem>>, vector<1x1x96xbf16>
    %164 = vector.shape_cast %163 : vector<1x1x96xbf16> to vector<1x96xbf16>
    %165 = arith.truncf %160 : vector<16x32xf32> to vector<16x32xbf16>
    %cst_61 = arith.constant dense<0.000000e+00> : vector<16x96xf32>
    %166 = tpu.matmul %165, %162, %cst_61 {dimension_numbers = #tpu.dot_dimension_numbers<[1], [0], [0], [1], [0, 0, 1, 1], [], []>} : vector<16x32xbf16>, vector<32x96xbf16>, vector<16x96xf32> -> vector<16x96xf32>
    %167 = arith.extf %164 : vector<1x96xbf16> to vector<1x96xf32>
    %168 = vector.broadcast %167 : vector<1x96xf32> to vector<16x96xf32>
    %169 = arith.addf %166, %168 : vector<16x96xf32>
    %170 = vector.extract_strided_slice %169 {offsets = [0, 0], sizes = [16, 32], strides = [1, 1]} : vector<16x96xf32> to vector<16x32xf32>
    %171 = vector.extract_strided_slice %169 {offsets = [0, 32], sizes = [16, 32], strides = [1, 1]} : vector<16x96xf32> to vector<16x32xf32>
    %172 = vector.extract_strided_slice %169 {offsets = [0, 64], sizes = [16, 32], strides = [1, 1]} : vector<16x96xf32> to vector<16x32xf32>
    %173 = vector.extract_strided_slice %170 {offsets = [0, 0], sizes = [16, 8], strides = [1, 1]} : vector<16x32xf32> to vector<16x8xf32>
    %174 = vector.extract_strided_slice %170 {offsets = [0, 8], sizes = [16, 8], strides = [1, 1]} : vector<16x32xf32> to vector<16x8xf32>
    %175 = vector.extract_strided_slice %170 {offsets = [0, 16], sizes = [16, 8], strides = [1, 1]} : vector<16x32xf32> to vector<16x8xf32>
    %176 = vector.extract_strided_slice %170 {offsets = [0, 24], sizes = [16, 8], strides = [1, 1]} : vector<16x32xf32> to vector<16x8xf32>
    %177 = tpu.concatenate %173, %174, %175, %176 in 0 : vector<16x8xf32>, vector<16x8xf32>, vector<16x8xf32>, vector<16x8xf32> -> vector<64x8xf32>
    %178 = arith.truncf %177 : vector<64x8xf32> to vector<64x8xbf16>
    %179 = vector.extract_strided_slice %171 {offsets = [0, 0], sizes = [16, 8], strides = [1, 1]} : vector<16x32xf32> to vector<16x8xf32>
    %180 = vector.extract_strided_slice %171 {offsets = [0, 8], sizes = [16, 8], strides = [1, 1]} : vector<16x32xf32> to vector<16x8xf32>
    %181 = vector.extract_strided_slice %171 {offsets = [0, 16], sizes = [16, 8], strides = [1, 1]} : vector<16x32xf32> to vector<16x8xf32>
    %182 = vector.extract_strided_slice %171 {offsets = [0, 24], sizes = [16, 8], strides = [1, 1]} : vector<16x32xf32> to vector<16x8xf32>
    %183 = tpu.concatenate %179, %180, %181, %182 in 0 : vector<16x8xf32>, vector<16x8xf32>, vector<16x8xf32>, vector<16x8xf32> -> vector<64x8xf32>
    %184 = arith.truncf %183 : vector<64x8xf32> to vector<64x8xbf16>
    %185 = vector.extract_strided_slice %172 {offsets = [0, 0], sizes = [16, 8], strides = [1, 1]} : vector<16x32xf32> to vector<16x8xf32>
    %186 = vector.extract_strided_slice %172 {offsets = [0, 8], sizes = [16, 8], strides = [1, 1]} : vector<16x32xf32> to vector<16x8xf32>
    %187 = vector.extract_strided_slice %172 {offsets = [0, 16], sizes = [16, 8], strides = [1, 1]} : vector<16x32xf32> to vector<16x8xf32>
    %188 = vector.extract_strided_slice %172 {offsets = [0, 24], sizes = [16, 8], strides = [1, 1]} : vector<16x32xf32> to vector<16x8xf32>
    %189 = tpu.concatenate %185, %186, %187, %188 in 0 : vector<16x8xf32>, vector<16x8xf32>, vector<16x8xf32>, vector<16x8xf32> -> vector<64x8xf32>
    %190 = arith.truncf %189 : vector<64x8xf32> to vector<64x8xbf16>
    %cst_62 = arith.constant dense<0.000000e+00> : vector<64x64xf32>
    %191 = tpu.matmul %178, %184, %cst_62 {dimension_numbers = #tpu.dot_dimension_numbers<[1], [1], [0], [0], [0, 0, 1, 0], [], []>} : vector<64x8xbf16>, vector<64x8xbf16>, vector<64x64xf32> -> vector<64x64xf32>
    %cst_63 = arith.constant 0.353553385 : f32
    %192 = vector.broadcast %cst_63 : f32 to vector<64x64xf32>
    %193 = arith.mulf %191, %192 : vector<64x64xf32>
    %194 = arith.addf %193, %0 : vector<64x64xf32>
    %cst_64 = arith.constant dense<0xFF800000> : vector<64xf32>
    %195 = vector.multi_reduction <maximumf>, %194, %cst_64 [1] : vector<64x64xf32> to vector<64xf32>
    %196 = vector.shape_cast %195 : vector<64xf32> to vector<64x1xf32>
    %197 = vector.broadcast %196 : vector<64x1xf32> to vector<64x64xf32>
    %198 = arith.subf %194, %197 : vector<64x64xf32>
    %199 = math.exp %198 : vector<64x64xf32>
    %cst_65 = arith.constant dense<0.000000e+00> : vector<64xf32>
    %200 = vector.multi_reduction <add>, %199, %cst_65 [1] : vector<64x64xf32> to vector<64xf32>
    %201 = vector.shape_cast %200 : vector<64xf32> to vector<64x1xf32>
    %202 = tpu.reciprocal %201 : vector<64x1xf32> -> vector<64x1xf32>
    %203 = vector.broadcast %202 : vector<64x1xf32> to vector<64x64xf32>
    %204 = arith.mulf %199, %203 : vector<64x64xf32>
    %205 = arith.truncf %204 : vector<64x64xf32> to vector<64x64xbf16>
    %cst_66 = arith.constant dense<0.000000e+00> : vector<64x8xf32>
    %206 = tpu.matmul %205, %190, %cst_66 {dimension_numbers = #tpu.dot_dimension_numbers<[1], [0], [0], [1], [0, 0, 1, 1], [], []>} : vector<64x64xbf16>, vector<64x8xbf16>, vector<64x8xf32> -> vector<64x8xf32>
    %207 = vector.extract_strided_slice %206 {offsets = [0, 0], sizes = [16, 8], strides = [1, 1]} : vector<64x8xf32> to vector<16x8xf32>
    %208 = vector.extract_strided_slice %206 {offsets = [16, 0], sizes = [16, 8], strides = [1, 1]} : vector<64x8xf32> to vector<16x8xf32>
    %209 = vector.extract_strided_slice %206 {offsets = [32, 0], sizes = [16, 8], strides = [1, 1]} : vector<64x8xf32> to vector<16x8xf32>
    %210 = vector.extract_strided_slice %206 {offsets = [48, 0], sizes = [16, 8], strides = [1, 1]} : vector<64x8xf32> to vector<16x8xf32>
    %211 = tpu.concatenate %207, %208, %209, %210 in 1 : vector<16x8xf32>, vector<16x8xf32>, vector<16x8xf32>, vector<16x8xf32> -> vector<16x32xf32>
    %c1_67 = arith.constant 1 : index
    %c40_68 = arith.constant 40 : index
    %c0_69 = arith.constant 0 : index
    %212 = vector.load %arg6[%c1_67, %c40_68, %c0_69] : memref<2x192x96xbf16, #tpu.memory_space<vmem>>, vector<1x32x32xbf16>
    %213 = vector.shape_cast %212 : vector<1x32x32xbf16> to vector<32x32xbf16>
    %c1_70 = arith.constant 1 : index
    %c72_71 = arith.constant 72 : index
    %c0_72 = arith.constant 0 : index
    %214 = vector.load %arg6[%c1_70, %c72_71, %c0_72] : memref<2x192x96xbf16, #tpu.memory_space<vmem>>, vector<1x1x32xbf16>
    %215 = vector.shape_cast %214 : vector<1x1x32xbf16> to vector<1x32xbf16>
    %216 = arith.truncf %211 : vector<16x32xf32> to vector<16x32xbf16>
    %cst_73 = arith.constant dense<0.000000e+00> : vector<16x32xf32>
    %217 = tpu.matmul %216, %213, %cst_73 {dimension_numbers = #tpu.dot_dimension_numbers<[1], [0], [0], [1], [0, 0, 1, 1], [], []>} : vector<16x32xbf16>, vector<32x32xbf16>, vector<16x32xf32> -> vector<16x32xf32>
    %218 = arith.extf %215 : vector<1x32xbf16> to vector<1x32xf32>
    %219 = vector.broadcast %218 : vector<1x32xf32> to vector<16x32xf32>
    %220 = arith.addf %217, %219 : vector<16x32xf32>
    %221 = arith.addf %135, %220 : vector<16x32xf32>
    %c6 = arith.constant 6 : index
    %c0_74 = arith.constant 0 : index
    %222 = vector.load %arg8[%c6, %c0_74] : memref<24x32xf32, #tpu.memory_space<vmem>>, vector<1x32xf32>
    %c7 = arith.constant 7 : index
    %c0_75 = arith.constant 0 : index
    %223 = vector.load %arg8[%c7, %c0_75] : memref<24x32xf32, #tpu.memory_space<vmem>>, vector<1x32xf32>
    %cst_76 = arith.constant dense<0.000000e+00> : vector<16xf32>
    %224 = vector.multi_reduction <add>, %221, %cst_76 [1] : vector<16x32xf32> to vector<16xf32>
    %225 = vector.shape_cast %224 : vector<16xf32> to vector<16x1xf32>
    %cst_77 = arith.constant 3.200000e+01 : f32
    %226 = vector.broadcast %cst_77 : f32 to vector<16x1xf32>
    %227 = arith.divf %225, %226 : vector<16x1xf32>
    %228 = vector.broadcast %227 : vector<16x1xf32> to vector<16x32xf32>
    %229 = arith.subf %221, %228 : vector<16x32xf32>
    %230 = arith.mulf %229, %229 : vector<16x32xf32>
    %cst_78 = arith.constant dense<0.000000e+00> : vector<16xf32>
    %231 = vector.multi_reduction <add>, %230, %cst_78 [1] : vector<16x32xf32> to vector<16xf32>
    %232 = vector.shape_cast %231 : vector<16xf32> to vector<16x1xf32>
    %cst_79 = arith.constant 0.0322580636 : f32
    %233 = vector.broadcast %cst_79 : f32 to vector<16x1xf32>
    %234 = arith.mulf %232, %233 : vector<16x1xf32>
    %235 = math.sqrt %234 : vector<16x1xf32>
    %cst_80 = arith.constant 9.99999997E-7 : f32
    %236 = vector.broadcast %cst_80 : f32 to vector<16x1xf32>
    %237 = arith.addf %235, %236 : vector<16x1xf32>
    %238 = tpu.reciprocal %237 : vector<16x1xf32> -> vector<16x1xf32>
    %239 = vector.broadcast %227 : vector<16x1xf32> to vector<16x32xf32>
    %240 = arith.subf %221, %239 : vector<16x32xf32>
    %241 = vector.broadcast %222 : vector<1x32xf32> to vector<16x32xf32>
    %242 = arith.mulf %241, %240 : vector<16x32xf32>
    %243 = vector.broadcast %238 : vector<16x1xf32> to vector<16x32xf32>
    %244 = arith.mulf %242, %243 : vector<16x32xf32>
    %245 = vector.broadcast %223 : vector<1x32xf32> to vector<16x32xf32>
    %246 = arith.addf %244, %245 : vector<16x32xf32>
    %c1_81 = arith.constant 1 : index
    %c80_82 = arith.constant 80 : index
    %c0_83 = arith.constant 0 : index
    %247 = vector.load %arg6[%c1_81, %c80_82, %c0_83] : memref<2x192x96xbf16, #tpu.memory_space<vmem>>, vector<1x32x64xbf16>
    %248 = vector.shape_cast %247 : vector<1x32x64xbf16> to vector<32x64xbf16>
    %c1_84 = arith.constant 1 : index
    %c112_85 = arith.constant 112 : index
    %c0_86 = arith.constant 0 : index
    %249 = vector.load %arg6[%c1_84, %c112_85, %c0_86] : memref<2x192x96xbf16, #tpu.memory_space<vmem>>, vector<1x1x64xbf16>
    %250 = vector.shape_cast %249 : vector<1x1x64xbf16> to vector<1x64xbf16>
    %251 = arith.truncf %246 : vector<16x32xf32> to vector<16x32xbf16>
    %cst_87 = arith.constant dense<0.000000e+00> : vector<16x64xf32>
    %252 = tpu.matmul %251, %248, %cst_87 {dimension_numbers = #tpu.dot_dimension_numbers<[1], [0], [0], [1], [0, 0, 1, 1], [], []>} : vector<16x32xbf16>, vector<32x64xbf16>, vector<16x64xf32> -> vector<16x64xf32>
    %253 = arith.extf %250 : vector<1x64xbf16> to vector<1x64xf32>
    %254 = vector.broadcast %253 : vector<1x64xf32> to vector<16x64xf32>
    %255 = arith.addf %252, %254 : vector<16x64xf32>
    %cst_88 = arith.constant 0.000000e+00 : f32
    %256 = vector.broadcast %cst_88 : f32 to vector<16x64xf32>
    %257 = arith.maximumf %255, %256 : vector<16x64xf32>
    %c1_89 = arith.constant 1 : index
    %c120_90 = arith.constant 120 : index
    %c0_91 = arith.constant 0 : index
    %258 = vector.load %arg6[%c1_89, %c120_90, %c0_91] : memref<2x192x96xbf16, #tpu.memory_space<vmem>>, vector<1x64x32xbf16>
    %259 = vector.shape_cast %258 : vector<1x64x32xbf16> to vector<64x32xbf16>
    %c1_92 = arith.constant 1 : index
    %c184_93 = arith.constant 184 : index
    %c0_94 = arith.constant 0 : index
    %260 = vector.load %arg6[%c1_92, %c184_93, %c0_94] : memref<2x192x96xbf16, #tpu.memory_space<vmem>>, vector<1x1x32xbf16>
    %261 = vector.shape_cast %260 : vector<1x1x32xbf16> to vector<1x32xbf16>
    %262 = arith.truncf %257 : vector<16x64xf32> to vector<16x64xbf16>
    %cst_95 = arith.constant dense<0.000000e+00> : vector<16x32xf32>
    %263 = tpu.matmul %262, %259, %cst_95 {dimension_numbers = #tpu.dot_dimension_numbers<[1], [0], [0], [1], [0, 0, 1, 1], [], []>} : vector<16x64xbf16>, vector<64x32xbf16>, vector<16x32xf32> -> vector<16x32xf32>
    %264 = arith.extf %261 : vector<1x32xbf16> to vector<1x32xf32>
    %265 = vector.broadcast %264 : vector<1x32xf32> to vector<16x32xf32>
    %266 = arith.addf %263, %265 : vector<16x32xf32>
    %267 = arith.addf %221, %266 : vector<16x32xf32>
    %c8 = arith.constant 8 : index
    %c0_96 = arith.constant 0 : index
    %268 = vector.load %arg8[%c8, %c0_96] : memref<24x32xf32, #tpu.memory_space<vmem>>, vector<1x32xf32>
    %c9 = arith.constant 9 : index
    %c0_97 = arith.constant 0 : index
    %269 = vector.load %arg8[%c9, %c0_97] : memref<24x32xf32, #tpu.memory_space<vmem>>, vector<1x32xf32>
    %cst_98 = arith.constant dense<0.000000e+00> : vector<16xf32>
    %270 = vector.multi_reduction <add>, %267, %cst_98 [1] : vector<16x32xf32> to vector<16xf32>
    %271 = vector.shape_cast %270 : vector<16xf32> to vector<16x1xf32>
    %cst_99 = arith.constant 3.200000e+01 : f32
    %272 = vector.broadcast %cst_99 : f32 to vector<16x1xf32>
    %273 = arith.divf %271, %272 : vector<16x1xf32>
    %274 = vector.broadcast %273 : vector<16x1xf32> to vector<16x32xf32>
    %275 = arith.subf %267, %274 : vector<16x32xf32>
    %276 = arith.mulf %275, %275 : vector<16x32xf32>
    %cst_100 = arith.constant dense<0.000000e+00> : vector<16xf32>
    %277 = vector.multi_reduction <add>, %276, %cst_100 [1] : vector<16x32xf32> to vector<16xf32>
    %278 = vector.shape_cast %277 : vector<16xf32> to vector<16x1xf32>
    %cst_101 = arith.constant 0.0322580636 : f32
    %279 = vector.broadcast %cst_101 : f32 to vector<16x1xf32>
    %280 = arith.mulf %278, %279 : vector<16x1xf32>
    %281 = math.sqrt %280 : vector<16x1xf32>
    %cst_102 = arith.constant 9.99999997E-7 : f32
    %282 = vector.broadcast %cst_102 : f32 to vector<16x1xf32>
    %283 = arith.addf %281, %282 : vector<16x1xf32>
    %284 = tpu.reciprocal %283 : vector<16x1xf32> -> vector<16x1xf32>
    %285 = vector.broadcast %273 : vector<16x1xf32> to vector<16x32xf32>
    %286 = arith.subf %267, %285 : vector<16x32xf32>
    %287 = vector.broadcast %268 : vector<1x32xf32> to vector<16x32xf32>
    %288 = arith.mulf %287, %286 : vector<16x32xf32>
    %289 = vector.broadcast %284 : vector<16x1xf32> to vector<16x32xf32>
    %290 = arith.mulf %288, %289 : vector<16x32xf32>
    %291 = vector.broadcast %269 : vector<1x32xf32> to vector<16x32xf32>
    %292 = arith.addf %290, %291 : vector<16x32xf32>
    %c0_103 = arith.constant 0 : index
    %c0_104 = arith.constant 0 : index
    %293 = vector.load %arg2[%c0_103, %c0_104] : memref<16x32xf32, #tpu.memory_space<vmem>>, vector<16x32xf32>
    %c10 = arith.constant 10 : index
    %c0_105 = arith.constant 0 : index
    %294 = vector.load %arg8[%c10, %c0_105] : memref<24x32xf32, #tpu.memory_space<vmem>>, vector<1x32xf32>
    %c11 = arith.constant 11 : index
    %c0_106 = arith.constant 0 : index
    %295 = vector.load %arg8[%c11, %c0_106] : memref<24x32xf32, #tpu.memory_space<vmem>>, vector<1x32xf32>
    %cst_107 = arith.constant dense<0.000000e+00> : vector<16xf32>
    %296 = vector.multi_reduction <add>, %293, %cst_107 [1] : vector<16x32xf32> to vector<16xf32>
    %297 = vector.shape_cast %296 : vector<16xf32> to vector<16x1xf32>
    %cst_108 = arith.constant 3.200000e+01 : f32
    %298 = vector.broadcast %cst_108 : f32 to vector<16x1xf32>
    %299 = arith.divf %297, %298 : vector<16x1xf32>
    %300 = vector.broadcast %299 : vector<16x1xf32> to vector<16x32xf32>
    %301 = arith.subf %293, %300 : vector<16x32xf32>
    %302 = arith.mulf %301, %301 : vector<16x32xf32>
    %cst_109 = arith.constant dense<0.000000e+00> : vector<16xf32>
    %303 = vector.multi_reduction <add>, %302, %cst_109 [1] : vector<16x32xf32> to vector<16xf32>
    %304 = vector.shape_cast %303 : vector<16xf32> to vector<16x1xf32>
    %cst_110 = arith.constant 0.0322580636 : f32
    %305 = vector.broadcast %cst_110 : f32 to vector<16x1xf32>
    %306 = arith.mulf %304, %305 : vector<16x1xf32>
    %307 = math.sqrt %306 : vector<16x1xf32>
    %cst_111 = arith.constant 9.99999997E-7 : f32
    %308 = vector.broadcast %cst_111 : f32 to vector<16x1xf32>
    %309 = arith.addf %307, %308 : vector<16x1xf32>
    %310 = tpu.reciprocal %309 : vector<16x1xf32> -> vector<16x1xf32>
    %311 = vector.broadcast %299 : vector<16x1xf32> to vector<16x32xf32>
    %312 = arith.subf %293, %311 : vector<16x32xf32>
    %313 = vector.broadcast %294 : vector<1x32xf32> to vector<16x32xf32>
    %314 = arith.mulf %313, %312 : vector<16x32xf32>
    %315 = vector.broadcast %310 : vector<16x1xf32> to vector<16x32xf32>
    %316 = arith.mulf %314, %315 : vector<16x32xf32>
    %317 = vector.broadcast %295 : vector<1x32xf32> to vector<16x32xf32>
    %318 = arith.addf %316, %317 : vector<16x32xf32>
    %c0_112 = arith.constant 0 : index
    %c0_113 = arith.constant 0 : index
    %c0_114 = arith.constant 0 : index
    %319 = vector.load %arg7[%c0_112, %c0_113, %c0_114] : memref<2x320x96xbf16, #tpu.memory_space<vmem>>, vector<1x32x96xbf16>
    %320 = vector.shape_cast %319 : vector<1x32x96xbf16> to vector<32x96xbf16>
    %c0_115 = arith.constant 0 : index
    %c32_116 = arith.constant 32 : index
    %c0_117 = arith.constant 0 : index
    %321 = vector.load %arg7[%c0_115, %c32_116, %c0_117] : memref<2x320x96xbf16, #tpu.memory_space<vmem>>, vector<1x1x96xbf16>
    %322 = vector.shape_cast %321 : vector<1x1x96xbf16> to vector<1x96xbf16>
    %323 = arith.truncf %318 : vector<16x32xf32> to vector<16x32xbf16>
    %cst_118 = arith.constant dense<0.000000e+00> : vector<16x96xf32>
    %324 = tpu.matmul %323, %320, %cst_118 {dimension_numbers = #tpu.dot_dimension_numbers<[1], [0], [0], [1], [0, 0, 1, 1], [], []>} : vector<16x32xbf16>, vector<32x96xbf16>, vector<16x96xf32> -> vector<16x96xf32>
    %325 = arith.extf %322 : vector<1x96xbf16> to vector<1x96xf32>
    %326 = vector.broadcast %325 : vector<1x96xf32> to vector<16x96xf32>
    %327 = arith.addf %324, %326 : vector<16x96xf32>
    %328 = vector.extract_strided_slice %327 {offsets = [0, 0], sizes = [16, 32], strides = [1, 1]} : vector<16x96xf32> to vector<16x32xf32>
    %329 = vector.extract_strided_slice %327 {offsets = [0, 32], sizes = [16, 32], strides = [1, 1]} : vector<16x96xf32> to vector<16x32xf32>
    %330 = vector.extract_strided_slice %327 {offsets = [0, 64], sizes = [16, 32], strides = [1, 1]} : vector<16x96xf32> to vector<16x32xf32>
    %331 = vector.extract_strided_slice %328 {offsets = [0, 0], sizes = [16, 8], strides = [1, 1]} : vector<16x32xf32> to vector<16x8xf32>
    %332 = vector.extract_strided_slice %328 {offsets = [0, 8], sizes = [16, 8], strides = [1, 1]} : vector<16x32xf32> to vector<16x8xf32>
    %333 = vector.extract_strided_slice %328 {offsets = [0, 16], sizes = [16, 8], strides = [1, 1]} : vector<16x32xf32> to vector<16x8xf32>
    %334 = vector.extract_strided_slice %328 {offsets = [0, 24], sizes = [16, 8], strides = [1, 1]} : vector<16x32xf32> to vector<16x8xf32>
    %335 = tpu.concatenate %331, %332, %333, %334 in 0 : vector<16x8xf32>, vector<16x8xf32>, vector<16x8xf32>, vector<16x8xf32> -> vector<64x8xf32>
    %336 = arith.truncf %335 : vector<64x8xf32> to vector<64x8xbf16>
    %337 = vector.extract_strided_slice %329 {offsets = [0, 0], sizes = [16, 8], strides = [1, 1]} : vector<16x32xf32> to vector<16x8xf32>
    %338 = vector.extract_strided_slice %329 {offsets = [0, 8], sizes = [16, 8], strides = [1, 1]} : vector<16x32xf32> to vector<16x8xf32>
    %339 = vector.extract_strided_slice %329 {offsets = [0, 16], sizes = [16, 8], strides = [1, 1]} : vector<16x32xf32> to vector<16x8xf32>
    %340 = vector.extract_strided_slice %329 {offsets = [0, 24], sizes = [16, 8], strides = [1, 1]} : vector<16x32xf32> to vector<16x8xf32>
    %341 = tpu.concatenate %337, %338, %339, %340 in 0 : vector<16x8xf32>, vector<16x8xf32>, vector<16x8xf32>, vector<16x8xf32> -> vector<64x8xf32>
    %342 = arith.truncf %341 : vector<64x8xf32> to vector<64x8xbf16>
    %343 = vector.extract_strided_slice %330 {offsets = [0, 0], sizes = [16, 8], strides = [1, 1]} : vector<16x32xf32> to vector<16x8xf32>
    %344 = vector.extract_strided_slice %330 {offsets = [0, 8], sizes = [16, 8], strides = [1, 1]} : vector<16x32xf32> to vector<16x8xf32>
    %345 = vector.extract_strided_slice %330 {offsets = [0, 16], sizes = [16, 8], strides = [1, 1]} : vector<16x32xf32> to vector<16x8xf32>
    %346 = vector.extract_strided_slice %330 {offsets = [0, 24], sizes = [16, 8], strides = [1, 1]} : vector<16x32xf32> to vector<16x8xf32>
    %347 = tpu.concatenate %343, %344, %345, %346 in 0 : vector<16x8xf32>, vector<16x8xf32>, vector<16x8xf32>, vector<16x8xf32> -> vector<64x8xf32>
    %348 = arith.truncf %347 : vector<64x8xf32> to vector<64x8xbf16>
    %cst_119 = arith.constant dense<0.000000e+00> : vector<64x64xf32>
    %349 = tpu.matmul %336, %342, %cst_119 {dimension_numbers = #tpu.dot_dimension_numbers<[1], [1], [0], [0], [0, 0, 1, 0], [], []>} : vector<64x8xbf16>, vector<64x8xbf16>, vector<64x64xf32> -> vector<64x64xf32>
    %cst_120 = arith.constant 0.353553385 : f32
    %350 = vector.broadcast %cst_120 : f32 to vector<64x64xf32>
    %351 = arith.mulf %349, %350 : vector<64x64xf32>
    %352 = arith.addf %351, %1 : vector<64x64xf32>
    %cst_121 = arith.constant dense<0xFF800000> : vector<64xf32>
    %353 = vector.multi_reduction <maximumf>, %352, %cst_121 [1] : vector<64x64xf32> to vector<64xf32>
    %354 = vector.shape_cast %353 : vector<64xf32> to vector<64x1xf32>
    %355 = vector.broadcast %354 : vector<64x1xf32> to vector<64x64xf32>
    %356 = arith.subf %352, %355 : vector<64x64xf32>
    %357 = math.exp %356 : vector<64x64xf32>
    %cst_122 = arith.constant dense<0.000000e+00> : vector<64xf32>
    %358 = vector.multi_reduction <add>, %357, %cst_122 [1] : vector<64x64xf32> to vector<64xf32>
    %359 = vector.shape_cast %358 : vector<64xf32> to vector<64x1xf32>
    %360 = tpu.reciprocal %359 : vector<64x1xf32> -> vector<64x1xf32>
    %361 = vector.broadcast %360 : vector<64x1xf32> to vector<64x64xf32>
    %362 = arith.mulf %357, %361 : vector<64x64xf32>
    %363 = arith.truncf %362 : vector<64x64xf32> to vector<64x64xbf16>
    %cst_123 = arith.constant dense<0.000000e+00> : vector<64x8xf32>
    %364 = tpu.matmul %363, %348, %cst_123 {dimension_numbers = #tpu.dot_dimension_numbers<[1], [0], [0], [1], [0, 0, 1, 1], [], []>} : vector<64x64xbf16>, vector<64x8xbf16>, vector<64x8xf32> -> vector<64x8xf32>
    %365 = vector.extract_strided_slice %364 {offsets = [0, 0], sizes = [16, 8], strides = [1, 1]} : vector<64x8xf32> to vector<16x8xf32>
    %366 = vector.extract_strided_slice %364 {offsets = [16, 0], sizes = [16, 8], strides = [1, 1]} : vector<64x8xf32> to vector<16x8xf32>
    %367 = vector.extract_strided_slice %364 {offsets = [32, 0], sizes = [16, 8], strides = [1, 1]} : vector<64x8xf32> to vector<16x8xf32>
    %368 = vector.extract_strided_slice %364 {offsets = [48, 0], sizes = [16, 8], strides = [1, 1]} : vector<64x8xf32> to vector<16x8xf32>
    %369 = tpu.concatenate %365, %366, %367, %368 in 1 : vector<16x8xf32>, vector<16x8xf32>, vector<16x8xf32>, vector<16x8xf32> -> vector<16x32xf32>
    %c0_124 = arith.constant 0 : index
    %c40_125 = arith.constant 40 : index
    %c0_126 = arith.constant 0 : index
    %370 = vector.load %arg7[%c0_124, %c40_125, %c0_126] : memref<2x320x96xbf16, #tpu.memory_space<vmem>>, vector<1x32x32xbf16>
    %371 = vector.shape_cast %370 : vector<1x32x32xbf16> to vector<32x32xbf16>
    %c0_127 = arith.constant 0 : index
    %c72_128 = arith.constant 72 : index
    %c0_129 = arith.constant 0 : index
    %372 = vector.load %arg7[%c0_127, %c72_128, %c0_129] : memref<2x320x96xbf16, #tpu.memory_space<vmem>>, vector<1x1x32xbf16>
    %373 = vector.shape_cast %372 : vector<1x1x32xbf16> to vector<1x32xbf16>
    %374 = arith.truncf %369 : vector<16x32xf32> to vector<16x32xbf16>
    %cst_130 = arith.constant dense<0.000000e+00> : vector<16x32xf32>
    %375 = tpu.matmul %374, %371, %cst_130 {dimension_numbers = #tpu.dot_dimension_numbers<[1], [0], [0], [1], [0, 0, 1, 1], [], []>} : vector<16x32xbf16>, vector<32x32xbf16>, vector<16x32xf32> -> vector<16x32xf32>
    %376 = arith.extf %373 : vector<1x32xbf16> to vector<1x32xf32>
    %377 = vector.broadcast %376 : vector<1x32xf32> to vector<16x32xf32>
    %378 = arith.addf %375, %377 : vector<16x32xf32>
    %379 = arith.addf %293, %378 : vector<16x32xf32>
    %c12 = arith.constant 12 : index
    %c0_131 = arith.constant 0 : index
    %380 = vector.load %arg8[%c12, %c0_131] : memref<24x32xf32, #tpu.memory_space<vmem>>, vector<1x32xf32>
    %c13 = arith.constant 13 : index
    %c0_132 = arith.constant 0 : index
    %381 = vector.load %arg8[%c13, %c0_132] : memref<24x32xf32, #tpu.memory_space<vmem>>, vector<1x32xf32>
    %cst_133 = arith.constant dense<0.000000e+00> : vector<16xf32>
    %382 = vector.multi_reduction <add>, %379, %cst_133 [1] : vector<16x32xf32> to vector<16xf32>
    %383 = vector.shape_cast %382 : vector<16xf32> to vector<16x1xf32>
    %cst_134 = arith.constant 3.200000e+01 : f32
    %384 = vector.broadcast %cst_134 : f32 to vector<16x1xf32>
    %385 = arith.divf %383, %384 : vector<16x1xf32>
    %386 = vector.broadcast %385 : vector<16x1xf32> to vector<16x32xf32>
    %387 = arith.subf %379, %386 : vector<16x32xf32>
    %388 = arith.mulf %387, %387 : vector<16x32xf32>
    %cst_135 = arith.constant dense<0.000000e+00> : vector<16xf32>
    %389 = vector.multi_reduction <add>, %388, %cst_135 [1] : vector<16x32xf32> to vector<16xf32>
    %390 = vector.shape_cast %389 : vector<16xf32> to vector<16x1xf32>
    %cst_136 = arith.constant 0.0322580636 : f32
    %391 = vector.broadcast %cst_136 : f32 to vector<16x1xf32>
    %392 = arith.mulf %390, %391 : vector<16x1xf32>
    %393 = math.sqrt %392 : vector<16x1xf32>
    %cst_137 = arith.constant 9.99999997E-7 : f32
    %394 = vector.broadcast %cst_137 : f32 to vector<16x1xf32>
    %395 = arith.addf %393, %394 : vector<16x1xf32>
    %396 = tpu.reciprocal %395 : vector<16x1xf32> -> vector<16x1xf32>
    %397 = vector.broadcast %385 : vector<16x1xf32> to vector<16x32xf32>
    %398 = arith.subf %379, %397 : vector<16x32xf32>
    %399 = vector.broadcast %380 : vector<1x32xf32> to vector<16x32xf32>
    %400 = arith.mulf %399, %398 : vector<16x32xf32>
    %401 = vector.broadcast %396 : vector<16x1xf32> to vector<16x32xf32>
    %402 = arith.mulf %400, %401 : vector<16x32xf32>
    %403 = vector.broadcast %381 : vector<1x32xf32> to vector<16x32xf32>
    %404 = arith.addf %402, %403 : vector<16x32xf32>
    %c0_138 = arith.constant 0 : index
    %c80_139 = arith.constant 80 : index
    %c0_140 = arith.constant 0 : index
    %405 = vector.load %arg7[%c0_138, %c80_139, %c0_140] : memref<2x320x96xbf16, #tpu.memory_space<vmem>>, vector<1x32x32xbf16>
    %406 = vector.shape_cast %405 : vector<1x32x32xbf16> to vector<32x32xbf16>
    %c0_141 = arith.constant 0 : index
    %c112_142 = arith.constant 112 : index
    %c0_143 = arith.constant 0 : index
    %407 = vector.load %arg7[%c0_141, %c112_142, %c0_143] : memref<2x320x96xbf16, #tpu.memory_space<vmem>>, vector<1x1x32xbf16>
    %408 = vector.shape_cast %407 : vector<1x1x32xbf16> to vector<1x32xbf16>
    %409 = arith.truncf %404 : vector<16x32xf32> to vector<16x32xbf16>
    %cst_144 = arith.constant dense<0.000000e+00> : vector<16x32xf32>
    %410 = tpu.matmul %409, %406, %cst_144 {dimension_numbers = #tpu.dot_dimension_numbers<[1], [0], [0], [1], [0, 0, 1, 1], [], []>} : vector<16x32xbf16>, vector<32x32xbf16>, vector<16x32xf32> -> vector<16x32xf32>
    %411 = arith.extf %408 : vector<1x32xbf16> to vector<1x32xf32>
    %412 = vector.broadcast %411 : vector<1x32xf32> to vector<16x32xf32>
    %413 = arith.addf %410, %412 : vector<16x32xf32>
    %c0_145 = arith.constant 0 : index
    %c120_146 = arith.constant 120 : index
    %c0_147 = arith.constant 0 : index
    %414 = vector.load %arg7[%c0_145, %c120_146, %c0_147] : memref<2x320x96xbf16, #tpu.memory_space<vmem>>, vector<1x32x64xbf16>
    %415 = vector.shape_cast %414 : vector<1x32x64xbf16> to vector<32x64xbf16>
    %c0_148 = arith.constant 0 : index
    %c152 = arith.constant 152 : index
    %c0_149 = arith.constant 0 : index
    %416 = vector.load %arg7[%c0_148, %c152, %c0_149] : memref<2x320x96xbf16, #tpu.memory_space<vmem>>, vector<1x1x64xbf16>
    %417 = vector.shape_cast %416 : vector<1x1x64xbf16> to vector<1x64xbf16>
    %418 = arith.truncf %292 : vector<16x32xf32> to vector<16x32xbf16>
    %cst_150 = arith.constant dense<0.000000e+00> : vector<16x64xf32>
    %419 = tpu.matmul %418, %415, %cst_150 {dimension_numbers = #tpu.dot_dimension_numbers<[1], [0], [0], [1], [0, 0, 1, 1], [], []>} : vector<16x32xbf16>, vector<32x64xbf16>, vector<16x64xf32> -> vector<16x64xf32>
    %420 = arith.extf %417 : vector<1x64xbf16> to vector<1x64xf32>
    %421 = vector.broadcast %420 : vector<1x64xf32> to vector<16x64xf32>
    %422 = arith.addf %419, %421 : vector<16x64xf32>
    %423 = vector.extract_strided_slice %422 {offsets = [0, 0], sizes = [16, 32], strides = [1, 1]} : vector<16x64xf32> to vector<16x32xf32>
    %424 = vector.extract_strided_slice %422 {offsets = [0, 32], sizes = [16, 32], strides = [1, 1]} : vector<16x64xf32> to vector<16x32xf32>
    %425 = vector.extract_strided_slice %413 {offsets = [0, 0], sizes = [16, 8], strides = [1, 1]} : vector<16x32xf32> to vector<16x8xf32>
    %426 = vector.extract_strided_slice %413 {offsets = [0, 8], sizes = [16, 8], strides = [1, 1]} : vector<16x32xf32> to vector<16x8xf32>
    %427 = vector.extract_strided_slice %413 {offsets = [0, 16], sizes = [16, 8], strides = [1, 1]} : vector<16x32xf32> to vector<16x8xf32>
    %428 = vector.extract_strided_slice %413 {offsets = [0, 24], sizes = [16, 8], strides = [1, 1]} : vector<16x32xf32> to vector<16x8xf32>
    %429 = tpu.concatenate %425, %426, %427, %428 in 0 : vector<16x8xf32>, vector<16x8xf32>, vector<16x8xf32>, vector<16x8xf32> -> vector<64x8xf32>
    %430 = arith.truncf %429 : vector<64x8xf32> to vector<64x8xbf16>
    %431 = vector.extract_strided_slice %423 {offsets = [0, 0], sizes = [16, 8], strides = [1, 1]} : vector<16x32xf32> to vector<16x8xf32>
    %432 = vector.extract_strided_slice %423 {offsets = [0, 8], sizes = [16, 8], strides = [1, 1]} : vector<16x32xf32> to vector<16x8xf32>
    %433 = vector.extract_strided_slice %423 {offsets = [0, 16], sizes = [16, 8], strides = [1, 1]} : vector<16x32xf32> to vector<16x8xf32>
    %434 = vector.extract_strided_slice %423 {offsets = [0, 24], sizes = [16, 8], strides = [1, 1]} : vector<16x32xf32> to vector<16x8xf32>
    %435 = tpu.concatenate %431, %432, %433, %434 in 0 : vector<16x8xf32>, vector<16x8xf32>, vector<16x8xf32>, vector<16x8xf32> -> vector<64x8xf32>
    %436 = arith.truncf %435 : vector<64x8xf32> to vector<64x8xbf16>
    %437 = vector.extract_strided_slice %424 {offsets = [0, 0], sizes = [16, 8], strides = [1, 1]} : vector<16x32xf32> to vector<16x8xf32>
    %438 = vector.extract_strided_slice %424 {offsets = [0, 8], sizes = [16, 8], strides = [1, 1]} : vector<16x32xf32> to vector<16x8xf32>
    %439 = vector.extract_strided_slice %424 {offsets = [0, 16], sizes = [16, 8], strides = [1, 1]} : vector<16x32xf32> to vector<16x8xf32>
    %440 = vector.extract_strided_slice %424 {offsets = [0, 24], sizes = [16, 8], strides = [1, 1]} : vector<16x32xf32> to vector<16x8xf32>
    %441 = tpu.concatenate %437, %438, %439, %440 in 0 : vector<16x8xf32>, vector<16x8xf32>, vector<16x8xf32>, vector<16x8xf32> -> vector<64x8xf32>
    %442 = arith.truncf %441 : vector<64x8xf32> to vector<64x8xbf16>
    %cst_151 = arith.constant dense<0.000000e+00> : vector<64x64xf32>
    %443 = tpu.matmul %430, %436, %cst_151 {dimension_numbers = #tpu.dot_dimension_numbers<[1], [1], [0], [0], [0, 0, 1, 0], [], []>} : vector<64x8xbf16>, vector<64x8xbf16>, vector<64x64xf32> -> vector<64x64xf32>
    %cst_152 = arith.constant 0.353553385 : f32
    %444 = vector.broadcast %cst_152 : f32 to vector<64x64xf32>
    %445 = arith.mulf %443, %444 : vector<64x64xf32>
    %446 = arith.addf %445, %2 : vector<64x64xf32>
    %cst_153 = arith.constant dense<0xFF800000> : vector<64xf32>
    %447 = vector.multi_reduction <maximumf>, %446, %cst_153 [1] : vector<64x64xf32> to vector<64xf32>
    %448 = vector.shape_cast %447 : vector<64xf32> to vector<64x1xf32>
    %449 = vector.broadcast %448 : vector<64x1xf32> to vector<64x64xf32>
    %450 = arith.subf %446, %449 : vector<64x64xf32>
    %451 = math.exp %450 : vector<64x64xf32>
    %cst_154 = arith.constant dense<0.000000e+00> : vector<64xf32>
    %452 = vector.multi_reduction <add>, %451, %cst_154 [1] : vector<64x64xf32> to vector<64xf32>
    %453 = vector.shape_cast %452 : vector<64xf32> to vector<64x1xf32>
    %454 = tpu.reciprocal %453 : vector<64x1xf32> -> vector<64x1xf32>
    %455 = vector.broadcast %454 : vector<64x1xf32> to vector<64x64xf32>
    %456 = arith.mulf %451, %455 : vector<64x64xf32>
    %457 = arith.truncf %456 : vector<64x64xf32> to vector<64x64xbf16>
    %cst_155 = arith.constant dense<0.000000e+00> : vector<64x8xf32>
    %458 = tpu.matmul %457, %442, %cst_155 {dimension_numbers = #tpu.dot_dimension_numbers<[1], [0], [0], [1], [0, 0, 1, 1], [], []>} : vector<64x64xbf16>, vector<64x8xbf16>, vector<64x8xf32> -> vector<64x8xf32>
    %459 = vector.extract_strided_slice %458 {offsets = [0, 0], sizes = [16, 8], strides = [1, 1]} : vector<64x8xf32> to vector<16x8xf32>
    %460 = vector.extract_strided_slice %458 {offsets = [16, 0], sizes = [16, 8], strides = [1, 1]} : vector<64x8xf32> to vector<16x8xf32>
    %461 = vector.extract_strided_slice %458 {offsets = [32, 0], sizes = [16, 8], strides = [1, 1]} : vector<64x8xf32> to vector<16x8xf32>
    %462 = vector.extract_strided_slice %458 {offsets = [48, 0], sizes = [16, 8], strides = [1, 1]} : vector<64x8xf32> to vector<16x8xf32>
    %463 = tpu.concatenate %459, %460, %461, %462 in 1 : vector<16x8xf32>, vector<16x8xf32>, vector<16x8xf32>, vector<16x8xf32> -> vector<16x32xf32>
    %c0_156 = arith.constant 0 : index
    %c160 = arith.constant 160 : index
    %c0_157 = arith.constant 0 : index
    %464 = vector.load %arg7[%c0_156, %c160, %c0_157] : memref<2x320x96xbf16, #tpu.memory_space<vmem>>, vector<1x32x32xbf16>
    %465 = vector.shape_cast %464 : vector<1x32x32xbf16> to vector<32x32xbf16>
    %c0_158 = arith.constant 0 : index
    %c192 = arith.constant 192 : index
    %c0_159 = arith.constant 0 : index
    %466 = vector.load %arg7[%c0_158, %c192, %c0_159] : memref<2x320x96xbf16, #tpu.memory_space<vmem>>, vector<1x1x32xbf16>
    %467 = vector.shape_cast %466 : vector<1x1x32xbf16> to vector<1x32xbf16>
    %468 = arith.truncf %463 : vector<16x32xf32> to vector<16x32xbf16>
    %cst_160 = arith.constant dense<0.000000e+00> : vector<16x32xf32>
    %469 = tpu.matmul %468, %465, %cst_160 {dimension_numbers = #tpu.dot_dimension_numbers<[1], [0], [0], [1], [0, 0, 1, 1], [], []>} : vector<16x32xbf16>, vector<32x32xbf16>, vector<16x32xf32> -> vector<16x32xf32>
    %470 = arith.extf %467 : vector<1x32xbf16> to vector<1x32xf32>
    %471 = vector.broadcast %470 : vector<1x32xf32> to vector<16x32xf32>
    %472 = arith.addf %469, %471 : vector<16x32xf32>
    %473 = arith.addf %379, %472 : vector<16x32xf32>
    %c14 = arith.constant 14 : index
    %c0_161 = arith.constant 0 : index
    %474 = vector.load %arg8[%c14, %c0_161] : memref<24x32xf32, #tpu.memory_space<vmem>>, vector<1x32xf32>
    %c15 = arith.constant 15 : index
    %c0_162 = arith.constant 0 : index
    %475 = vector.load %arg8[%c15, %c0_162] : memref<24x32xf32, #tpu.memory_space<vmem>>, vector<1x32xf32>
    %cst_163 = arith.constant dense<0.000000e+00> : vector<16xf32>
    %476 = vector.multi_reduction <add>, %473, %cst_163 [1] : vector<16x32xf32> to vector<16xf32>
    %477 = vector.shape_cast %476 : vector<16xf32> to vector<16x1xf32>
    %cst_164 = arith.constant 3.200000e+01 : f32
    %478 = vector.broadcast %cst_164 : f32 to vector<16x1xf32>
    %479 = arith.divf %477, %478 : vector<16x1xf32>
    %480 = vector.broadcast %479 : vector<16x1xf32> to vector<16x32xf32>
    %481 = arith.subf %473, %480 : vector<16x32xf32>
    %482 = arith.mulf %481, %481 : vector<16x32xf32>
    %cst_165 = arith.constant dense<0.000000e+00> : vector<16xf32>
    %483 = vector.multi_reduction <add>, %482, %cst_165 [1] : vector<16x32xf32> to vector<16xf32>
    %484 = vector.shape_cast %483 : vector<16xf32> to vector<16x1xf32>
    %cst_166 = arith.constant 0.0322580636 : f32
    %485 = vector.broadcast %cst_166 : f32 to vector<16x1xf32>
    %486 = arith.mulf %484, %485 : vector<16x1xf32>
    %487 = math.sqrt %486 : vector<16x1xf32>
    %cst_167 = arith.constant 9.99999997E-7 : f32
    %488 = vector.broadcast %cst_167 : f32 to vector<16x1xf32>
    %489 = arith.addf %487, %488 : vector<16x1xf32>
    %490 = tpu.reciprocal %489 : vector<16x1xf32> -> vector<16x1xf32>
    %491 = vector.broadcast %479 : vector<16x1xf32> to vector<16x32xf32>
    %492 = arith.subf %473, %491 : vector<16x32xf32>
    %493 = vector.broadcast %474 : vector<1x32xf32> to vector<16x32xf32>
    %494 = arith.mulf %493, %492 : vector<16x32xf32>
    %495 = vector.broadcast %490 : vector<16x1xf32> to vector<16x32xf32>
    %496 = arith.mulf %494, %495 : vector<16x32xf32>
    %497 = vector.broadcast %475 : vector<1x32xf32> to vector<16x32xf32>
    %498 = arith.addf %496, %497 : vector<16x32xf32>
    %c0_168 = arith.constant 0 : index
    %c200 = arith.constant 200 : index
    %c0_169 = arith.constant 0 : index
    %499 = vector.load %arg7[%c0_168, %c200, %c0_169] : memref<2x320x96xbf16, #tpu.memory_space<vmem>>, vector<1x32x64xbf16>
    %500 = vector.shape_cast %499 : vector<1x32x64xbf16> to vector<32x64xbf16>
    %c0_170 = arith.constant 0 : index
    %c232 = arith.constant 232 : index
    %c0_171 = arith.constant 0 : index
    %501 = vector.load %arg7[%c0_170, %c232, %c0_171] : memref<2x320x96xbf16, #tpu.memory_space<vmem>>, vector<1x1x64xbf16>
    %502 = vector.shape_cast %501 : vector<1x1x64xbf16> to vector<1x64xbf16>
    %503 = arith.truncf %498 : vector<16x32xf32> to vector<16x32xbf16>
    %cst_172 = arith.constant dense<0.000000e+00> : vector<16x64xf32>
    %504 = tpu.matmul %503, %500, %cst_172 {dimension_numbers = #tpu.dot_dimension_numbers<[1], [0], [0], [1], [0, 0, 1, 1], [], []>} : vector<16x32xbf16>, vector<32x64xbf16>, vector<16x64xf32> -> vector<16x64xf32>
    %505 = arith.extf %502 : vector<1x64xbf16> to vector<1x64xf32>
    %506 = vector.broadcast %505 : vector<1x64xf32> to vector<16x64xf32>
    %507 = arith.addf %504, %506 : vector<16x64xf32>
    %cst_173 = arith.constant 0.000000e+00 : f32
    %508 = vector.broadcast %cst_173 : f32 to vector<16x64xf32>
    %509 = arith.maximumf %507, %508 : vector<16x64xf32>
    %c0_174 = arith.constant 0 : index
    %c240 = arith.constant 240 : index
    %c0_175 = arith.constant 0 : index
    %510 = vector.load %arg7[%c0_174, %c240, %c0_175] : memref<2x320x96xbf16, #tpu.memory_space<vmem>>, vector<1x64x32xbf16>
    %511 = vector.shape_cast %510 : vector<1x64x32xbf16> to vector<64x32xbf16>
    %c0_176 = arith.constant 0 : index
    %c304 = arith.constant 304 : index
    %c0_177 = arith.constant 0 : index
    %512 = vector.load %arg7[%c0_176, %c304, %c0_177] : memref<2x320x96xbf16, #tpu.memory_space<vmem>>, vector<1x1x32xbf16>
    %513 = vector.shape_cast %512 : vector<1x1x32xbf16> to vector<1x32xbf16>
    %514 = arith.truncf %509 : vector<16x64xf32> to vector<16x64xbf16>
    %cst_178 = arith.constant dense<0.000000e+00> : vector<16x32xf32>
    %515 = tpu.matmul %514, %511, %cst_178 {dimension_numbers = #tpu.dot_dimension_numbers<[1], [0], [0], [1], [0, 0, 1, 1], [], []>} : vector<16x64xbf16>, vector<64x32xbf16>, vector<16x32xf32> -> vector<16x32xf32>
    %516 = arith.extf %513 : vector<1x32xbf16> to vector<1x32xf32>
    %517 = vector.broadcast %516 : vector<1x32xf32> to vector<16x32xf32>
    %518 = arith.addf %515, %517 : vector<16x32xf32>
    %519 = arith.addf %473, %518 : vector<16x32xf32>
    %c16 = arith.constant 16 : index
    %c0_179 = arith.constant 0 : index
    %520 = vector.load %arg8[%c16, %c0_179] : memref<24x32xf32, #tpu.memory_space<vmem>>, vector<1x32xf32>
    %c17 = arith.constant 17 : index
    %c0_180 = arith.constant 0 : index
    %521 = vector.load %arg8[%c17, %c0_180] : memref<24x32xf32, #tpu.memory_space<vmem>>, vector<1x32xf32>
    %cst_181 = arith.constant dense<0.000000e+00> : vector<16xf32>
    %522 = vector.multi_reduction <add>, %519, %cst_181 [1] : vector<16x32xf32> to vector<16xf32>
    %523 = vector.shape_cast %522 : vector<16xf32> to vector<16x1xf32>
    %cst_182 = arith.constant 3.200000e+01 : f32
    %524 = vector.broadcast %cst_182 : f32 to vector<16x1xf32>
    %525 = arith.divf %523, %524 : vector<16x1xf32>
    %526 = vector.broadcast %525 : vector<16x1xf32> to vector<16x32xf32>
    %527 = arith.subf %519, %526 : vector<16x32xf32>
    %528 = arith.mulf %527, %527 : vector<16x32xf32>
    %cst_183 = arith.constant dense<0.000000e+00> : vector<16xf32>
    %529 = vector.multi_reduction <add>, %528, %cst_183 [1] : vector<16x32xf32> to vector<16xf32>
    %530 = vector.shape_cast %529 : vector<16xf32> to vector<16x1xf32>
    %cst_184 = arith.constant 0.0322580636 : f32
    %531 = vector.broadcast %cst_184 : f32 to vector<16x1xf32>
    %532 = arith.mulf %530, %531 : vector<16x1xf32>
    %533 = math.sqrt %532 : vector<16x1xf32>
    %cst_185 = arith.constant 9.99999997E-7 : f32
    %534 = vector.broadcast %cst_185 : f32 to vector<16x1xf32>
    %535 = arith.addf %533, %534 : vector<16x1xf32>
    %536 = tpu.reciprocal %535 : vector<16x1xf32> -> vector<16x1xf32>
    %537 = vector.broadcast %525 : vector<16x1xf32> to vector<16x32xf32>
    %538 = arith.subf %519, %537 : vector<16x32xf32>
    %539 = vector.broadcast %520 : vector<1x32xf32> to vector<16x32xf32>
    %540 = arith.mulf %539, %538 : vector<16x32xf32>
    %541 = vector.broadcast %536 : vector<16x1xf32> to vector<16x32xf32>
    %542 = arith.mulf %540, %541 : vector<16x32xf32>
    %543 = vector.broadcast %521 : vector<1x32xf32> to vector<16x32xf32>
    %544 = arith.addf %542, %543 : vector<16x32xf32>
    %c1_186 = arith.constant 1 : index
    %c0_187 = arith.constant 0 : index
    %c0_188 = arith.constant 0 : index
    %545 = vector.load %arg7[%c1_186, %c0_187, %c0_188] : memref<2x320x96xbf16, #tpu.memory_space<vmem>>, vector<1x32x96xbf16>
    %546 = vector.shape_cast %545 : vector<1x32x96xbf16> to vector<32x96xbf16>
    %c1_189 = arith.constant 1 : index
    %c32_190 = arith.constant 32 : index
    %c0_191 = arith.constant 0 : index
    %547 = vector.load %arg7[%c1_189, %c32_190, %c0_191] : memref<2x320x96xbf16, #tpu.memory_space<vmem>>, vector<1x1x96xbf16>
    %548 = vector.shape_cast %547 : vector<1x1x96xbf16> to vector<1x96xbf16>
    %549 = arith.truncf %544 : vector<16x32xf32> to vector<16x32xbf16>
    %cst_192 = arith.constant dense<0.000000e+00> : vector<16x96xf32>
    %550 = tpu.matmul %549, %546, %cst_192 {dimension_numbers = #tpu.dot_dimension_numbers<[1], [0], [0], [1], [0, 0, 1, 1], [], []>} : vector<16x32xbf16>, vector<32x96xbf16>, vector<16x96xf32> -> vector<16x96xf32>
    %551 = arith.extf %548 : vector<1x96xbf16> to vector<1x96xf32>
    %552 = vector.broadcast %551 : vector<1x96xf32> to vector<16x96xf32>
    %553 = arith.addf %550, %552 : vector<16x96xf32>
    %554 = vector.extract_strided_slice %553 {offsets = [0, 0], sizes = [16, 32], strides = [1, 1]} : vector<16x96xf32> to vector<16x32xf32>
    %555 = vector.extract_strided_slice %553 {offsets = [0, 32], sizes = [16, 32], strides = [1, 1]} : vector<16x96xf32> to vector<16x32xf32>
    %556 = vector.extract_strided_slice %553 {offsets = [0, 64], sizes = [16, 32], strides = [1, 1]} : vector<16x96xf32> to vector<16x32xf32>
    %557 = vector.extract_strided_slice %554 {offsets = [0, 0], sizes = [16, 8], strides = [1, 1]} : vector<16x32xf32> to vector<16x8xf32>
    %558 = vector.extract_strided_slice %554 {offsets = [0, 8], sizes = [16, 8], strides = [1, 1]} : vector<16x32xf32> to vector<16x8xf32>
    %559 = vector.extract_strided_slice %554 {offsets = [0, 16], sizes = [16, 8], strides = [1, 1]} : vector<16x32xf32> to vector<16x8xf32>
    %560 = vector.extract_strided_slice %554 {offsets = [0, 24], sizes = [16, 8], strides = [1, 1]} : vector<16x32xf32> to vector<16x8xf32>
    %561 = tpu.concatenate %557, %558, %559, %560 in 0 : vector<16x8xf32>, vector<16x8xf32>, vector<16x8xf32>, vector<16x8xf32> -> vector<64x8xf32>
    %562 = arith.truncf %561 : vector<64x8xf32> to vector<64x8xbf16>
    %563 = vector.extract_strided_slice %555 {offsets = [0, 0], sizes = [16, 8], strides = [1, 1]} : vector<16x32xf32> to vector<16x8xf32>
    %564 = vector.extract_strided_slice %555 {offsets = [0, 8], sizes = [16, 8], strides = [1, 1]} : vector<16x32xf32> to vector<16x8xf32>
    %565 = vector.extract_strided_slice %555 {offsets = [0, 16], sizes = [16, 8], strides = [1, 1]} : vector<16x32xf32> to vector<16x8xf32>
    %566 = vector.extract_strided_slice %555 {offsets = [0, 24], sizes = [16, 8], strides = [1, 1]} : vector<16x32xf32> to vector<16x8xf32>
    %567 = tpu.concatenate %563, %564, %565, %566 in 0 : vector<16x8xf32>, vector<16x8xf32>, vector<16x8xf32>, vector<16x8xf32> -> vector<64x8xf32>
    %568 = arith.truncf %567 : vector<64x8xf32> to vector<64x8xbf16>
    %569 = vector.extract_strided_slice %556 {offsets = [0, 0], sizes = [16, 8], strides = [1, 1]} : vector<16x32xf32> to vector<16x8xf32>
    %570 = vector.extract_strided_slice %556 {offsets = [0, 8], sizes = [16, 8], strides = [1, 1]} : vector<16x32xf32> to vector<16x8xf32>
    %571 = vector.extract_strided_slice %556 {offsets = [0, 16], sizes = [16, 8], strides = [1, 1]} : vector<16x32xf32> to vector<16x8xf32>
    %572 = vector.extract_strided_slice %556 {offsets = [0, 24], sizes = [16, 8], strides = [1, 1]} : vector<16x32xf32> to vector<16x8xf32>
    %573 = tpu.concatenate %569, %570, %571, %572 in 0 : vector<16x8xf32>, vector<16x8xf32>, vector<16x8xf32>, vector<16x8xf32> -> vector<64x8xf32>
    %574 = arith.truncf %573 : vector<64x8xf32> to vector<64x8xbf16>
    %cst_193 = arith.constant dense<0.000000e+00> : vector<64x64xf32>
    %575 = tpu.matmul %562, %568, %cst_193 {dimension_numbers = #tpu.dot_dimension_numbers<[1], [1], [0], [0], [0, 0, 1, 0], [], []>} : vector<64x8xbf16>, vector<64x8xbf16>, vector<64x64xf32> -> vector<64x64xf32>
    %cst_194 = arith.constant 0.353553385 : f32
    %576 = vector.broadcast %cst_194 : f32 to vector<64x64xf32>
    %577 = arith.mulf %575, %576 : vector<64x64xf32>
    %578 = arith.addf %577, %1 : vector<64x64xf32>
    %cst_195 = arith.constant dense<0xFF800000> : vector<64xf32>
    %579 = vector.multi_reduction <maximumf>, %578, %cst_195 [1] : vector<64x64xf32> to vector<64xf32>
    %580 = vector.shape_cast %579 : vector<64xf32> to vector<64x1xf32>
    %581 = vector.broadcast %580 : vector<64x1xf32> to vector<64x64xf32>
    %582 = arith.subf %578, %581 : vector<64x64xf32>
    %583 = math.exp %582 : vector<64x64xf32>
    %cst_196 = arith.constant dense<0.000000e+00> : vector<64xf32>
    %584 = vector.multi_reduction <add>, %583, %cst_196 [1] : vector<64x64xf32> to vector<64xf32>
    %585 = vector.shape_cast %584 : vector<64xf32> to vector<64x1xf32>
    %586 = tpu.reciprocal %585 : vector<64x1xf32> -> vector<64x1xf32>
    %587 = vector.broadcast %586 : vector<64x1xf32> to vector<64x64xf32>
    %588 = arith.mulf %583, %587 : vector<64x64xf32>
    %589 = arith.truncf %588 : vector<64x64xf32> to vector<64x64xbf16>
    %cst_197 = arith.constant dense<0.000000e+00> : vector<64x8xf32>
    %590 = tpu.matmul %589, %574, %cst_197 {dimension_numbers = #tpu.dot_dimension_numbers<[1], [0], [0], [1], [0, 0, 1, 1], [], []>} : vector<64x64xbf16>, vector<64x8xbf16>, vector<64x8xf32> -> vector<64x8xf32>
    %591 = vector.extract_strided_slice %590 {offsets = [0, 0], sizes = [16, 8], strides = [1, 1]} : vector<64x8xf32> to vector<16x8xf32>
    %592 = vector.extract_strided_slice %590 {offsets = [16, 0], sizes = [16, 8], strides = [1, 1]} : vector<64x8xf32> to vector<16x8xf32>
    %593 = vector.extract_strided_slice %590 {offsets = [32, 0], sizes = [16, 8], strides = [1, 1]} : vector<64x8xf32> to vector<16x8xf32>
    %594 = vector.extract_strided_slice %590 {offsets = [48, 0], sizes = [16, 8], strides = [1, 1]} : vector<64x8xf32> to vector<16x8xf32>
    %595 = tpu.concatenate %591, %592, %593, %594 in 1 : vector<16x8xf32>, vector<16x8xf32>, vector<16x8xf32>, vector<16x8xf32> -> vector<16x32xf32>
    %c1_198 = arith.constant 1 : index
    %c40_199 = arith.constant 40 : index
    %c0_200 = arith.constant 0 : index
    %596 = vector.load %arg7[%c1_198, %c40_199, %c0_200] : memref<2x320x96xbf16, #tpu.memory_space<vmem>>, vector<1x32x32xbf16>
    %597 = vector.shape_cast %596 : vector<1x32x32xbf16> to vector<32x32xbf16>
    %c1_201 = arith.constant 1 : index
    %c72_202 = arith.constant 72 : index
    %c0_203 = arith.constant 0 : index
    %598 = vector.load %arg7[%c1_201, %c72_202, %c0_203] : memref<2x320x96xbf16, #tpu.memory_space<vmem>>, vector<1x1x32xbf16>
    %599 = vector.shape_cast %598 : vector<1x1x32xbf16> to vector<1x32xbf16>
    %600 = arith.truncf %595 : vector<16x32xf32> to vector<16x32xbf16>
    %cst_204 = arith.constant dense<0.000000e+00> : vector<16x32xf32>
    %601 = tpu.matmul %600, %597, %cst_204 {dimension_numbers = #tpu.dot_dimension_numbers<[1], [0], [0], [1], [0, 0, 1, 1], [], []>} : vector<16x32xbf16>, vector<32x32xbf16>, vector<16x32xf32> -> vector<16x32xf32>
    %602 = arith.extf %599 : vector<1x32xbf16> to vector<1x32xf32>
    %603 = vector.broadcast %602 : vector<1x32xf32> to vector<16x32xf32>
    %604 = arith.addf %601, %603 : vector<16x32xf32>
    %605 = arith.addf %519, %604 : vector<16x32xf32>
    %c18 = arith.constant 18 : index
    %c0_205 = arith.constant 0 : index
    %606 = vector.load %arg8[%c18, %c0_205] : memref<24x32xf32, #tpu.memory_space<vmem>>, vector<1x32xf32>
    %c19 = arith.constant 19 : index
    %c0_206 = arith.constant 0 : index
    %607 = vector.load %arg8[%c19, %c0_206] : memref<24x32xf32, #tpu.memory_space<vmem>>, vector<1x32xf32>
    %cst_207 = arith.constant dense<0.000000e+00> : vector<16xf32>
    %608 = vector.multi_reduction <add>, %605, %cst_207 [1] : vector<16x32xf32> to vector<16xf32>
    %609 = vector.shape_cast %608 : vector<16xf32> to vector<16x1xf32>
    %cst_208 = arith.constant 3.200000e+01 : f32
    %610 = vector.broadcast %cst_208 : f32 to vector<16x1xf32>
    %611 = arith.divf %609, %610 : vector<16x1xf32>
    %612 = vector.broadcast %611 : vector<16x1xf32> to vector<16x32xf32>
    %613 = arith.subf %605, %612 : vector<16x32xf32>
    %614 = arith.mulf %613, %613 : vector<16x32xf32>
    %cst_209 = arith.constant dense<0.000000e+00> : vector<16xf32>
    %615 = vector.multi_reduction <add>, %614, %cst_209 [1] : vector<16x32xf32> to vector<16xf32>
    %616 = vector.shape_cast %615 : vector<16xf32> to vector<16x1xf32>
    %cst_210 = arith.constant 0.0322580636 : f32
    %617 = vector.broadcast %cst_210 : f32 to vector<16x1xf32>
    %618 = arith.mulf %616, %617 : vector<16x1xf32>
    %619 = math.sqrt %618 : vector<16x1xf32>
    %cst_211 = arith.constant 9.99999997E-7 : f32
    %620 = vector.broadcast %cst_211 : f32 to vector<16x1xf32>
    %621 = arith.addf %619, %620 : vector<16x1xf32>
    %622 = tpu.reciprocal %621 : vector<16x1xf32> -> vector<16x1xf32>
    %623 = vector.broadcast %611 : vector<16x1xf32> to vector<16x32xf32>
    %624 = arith.subf %605, %623 : vector<16x32xf32>
    %625 = vector.broadcast %606 : vector<1x32xf32> to vector<16x32xf32>
    %626 = arith.mulf %625, %624 : vector<16x32xf32>
    %627 = vector.broadcast %622 : vector<16x1xf32> to vector<16x32xf32>
    %628 = arith.mulf %626, %627 : vector<16x32xf32>
    %629 = vector.broadcast %607 : vector<1x32xf32> to vector<16x32xf32>
    %630 = arith.addf %628, %629 : vector<16x32xf32>
    %c1_212 = arith.constant 1 : index
    %c80_213 = arith.constant 80 : index
    %c0_214 = arith.constant 0 : index
    %631 = vector.load %arg7[%c1_212, %c80_213, %c0_214] : memref<2x320x96xbf16, #tpu.memory_space<vmem>>, vector<1x32x32xbf16>
    %632 = vector.shape_cast %631 : vector<1x32x32xbf16> to vector<32x32xbf16>
    %c1_215 = arith.constant 1 : index
    %c112_216 = arith.constant 112 : index
    %c0_217 = arith.constant 0 : index
    %633 = vector.load %arg7[%c1_215, %c112_216, %c0_217] : memref<2x320x96xbf16, #tpu.memory_space<vmem>>, vector<1x1x32xbf16>
    %634 = vector.shape_cast %633 : vector<1x1x32xbf16> to vector<1x32xbf16>
    %635 = arith.truncf %630 : vector<16x32xf32> to vector<16x32xbf16>
    %cst_218 = arith.constant dense<0.000000e+00> : vector<16x32xf32>
    %636 = tpu.matmul %635, %632, %cst_218 {dimension_numbers = #tpu.dot_dimension_numbers<[1], [0], [0], [1], [0, 0, 1, 1], [], []>} : vector<16x32xbf16>, vector<32x32xbf16>, vector<16x32xf32> -> vector<16x32xf32>
    %637 = arith.extf %634 : vector<1x32xbf16> to vector<1x32xf32>
    %638 = vector.broadcast %637 : vector<1x32xf32> to vector<16x32xf32>
    %639 = arith.addf %636, %638 : vector<16x32xf32>
    %c1_219 = arith.constant 1 : index
    %c120_220 = arith.constant 120 : index
    %c0_221 = arith.constant 0 : index
    %640 = vector.load %arg7[%c1_219, %c120_220, %c0_221] : memref<2x320x96xbf16, #tpu.memory_space<vmem>>, vector<1x32x64xbf16>
    %641 = vector.shape_cast %640 : vector<1x32x64xbf16> to vector<32x64xbf16>
    %c1_222 = arith.constant 1 : index
    %c152_223 = arith.constant 152 : index
    %c0_224 = arith.constant 0 : index
    %642 = vector.load %arg7[%c1_222, %c152_223, %c0_224] : memref<2x320x96xbf16, #tpu.memory_space<vmem>>, vector<1x1x64xbf16>
    %643 = vector.shape_cast %642 : vector<1x1x64xbf16> to vector<1x64xbf16>
    %644 = arith.truncf %292 : vector<16x32xf32> to vector<16x32xbf16>
    %cst_225 = arith.constant dense<0.000000e+00> : vector<16x64xf32>
    %645 = tpu.matmul %644, %641, %cst_225 {dimension_numbers = #tpu.dot_dimension_numbers<[1], [0], [0], [1], [0, 0, 1, 1], [], []>} : vector<16x32xbf16>, vector<32x64xbf16>, vector<16x64xf32> -> vector<16x64xf32>
    %646 = arith.extf %643 : vector<1x64xbf16> to vector<1x64xf32>
    %647 = vector.broadcast %646 : vector<1x64xf32> to vector<16x64xf32>
    %648 = arith.addf %645, %647 : vector<16x64xf32>
    %649 = vector.extract_strided_slice %648 {offsets = [0, 0], sizes = [16, 32], strides = [1, 1]} : vector<16x64xf32> to vector<16x32xf32>
    %650 = vector.extract_strided_slice %648 {offsets = [0, 32], sizes = [16, 32], strides = [1, 1]} : vector<16x64xf32> to vector<16x32xf32>
    %651 = vector.extract_strided_slice %639 {offsets = [0, 0], sizes = [16, 8], strides = [1, 1]} : vector<16x32xf32> to vector<16x8xf32>
    %652 = vector.extract_strided_slice %639 {offsets = [0, 8], sizes = [16, 8], strides = [1, 1]} : vector<16x32xf32> to vector<16x8xf32>
    %653 = vector.extract_strided_slice %639 {offsets = [0, 16], sizes = [16, 8], strides = [1, 1]} : vector<16x32xf32> to vector<16x8xf32>
    %654 = vector.extract_strided_slice %639 {offsets = [0, 24], sizes = [16, 8], strides = [1, 1]} : vector<16x32xf32> to vector<16x8xf32>
    %655 = tpu.concatenate %651, %652, %653, %654 in 0 : vector<16x8xf32>, vector<16x8xf32>, vector<16x8xf32>, vector<16x8xf32> -> vector<64x8xf32>
    %656 = arith.truncf %655 : vector<64x8xf32> to vector<64x8xbf16>
    %657 = vector.extract_strided_slice %649 {offsets = [0, 0], sizes = [16, 8], strides = [1, 1]} : vector<16x32xf32> to vector<16x8xf32>
    %658 = vector.extract_strided_slice %649 {offsets = [0, 8], sizes = [16, 8], strides = [1, 1]} : vector<16x32xf32> to vector<16x8xf32>
    %659 = vector.extract_strided_slice %649 {offsets = [0, 16], sizes = [16, 8], strides = [1, 1]} : vector<16x32xf32> to vector<16x8xf32>
    %660 = vector.extract_strided_slice %649 {offsets = [0, 24], sizes = [16, 8], strides = [1, 1]} : vector<16x32xf32> to vector<16x8xf32>
    %661 = tpu.concatenate %657, %658, %659, %660 in 0 : vector<16x8xf32>, vector<16x8xf32>, vector<16x8xf32>, vector<16x8xf32> -> vector<64x8xf32>
    %662 = arith.truncf %661 : vector<64x8xf32> to vector<64x8xbf16>
    %663 = vector.extract_strided_slice %650 {offsets = [0, 0], sizes = [16, 8], strides = [1, 1]} : vector<16x32xf32> to vector<16x8xf32>
    %664 = vector.extract_strided_slice %650 {offsets = [0, 8], sizes = [16, 8], strides = [1, 1]} : vector<16x32xf32> to vector<16x8xf32>
    %665 = vector.extract_strided_slice %650 {offsets = [0, 16], sizes = [16, 8], strides = [1, 1]} : vector<16x32xf32> to vector<16x8xf32>
    %666 = vector.extract_strided_slice %650 {offsets = [0, 24], sizes = [16, 8], strides = [1, 1]} : vector<16x32xf32> to vector<16x8xf32>
    %667 = tpu.concatenate %663, %664, %665, %666 in 0 : vector<16x8xf32>, vector<16x8xf32>, vector<16x8xf32>, vector<16x8xf32> -> vector<64x8xf32>
    %668 = arith.truncf %667 : vector<64x8xf32> to vector<64x8xbf16>
    %cst_226 = arith.constant dense<0.000000e+00> : vector<64x64xf32>
    %669 = tpu.matmul %656, %662, %cst_226 {dimension_numbers = #tpu.dot_dimension_numbers<[1], [1], [0], [0], [0, 0, 1, 0], [], []>} : vector<64x8xbf16>, vector<64x8xbf16>, vector<64x64xf32> -> vector<64x64xf32>
    %cst_227 = arith.constant 0.353553385 : f32
    %670 = vector.broadcast %cst_227 : f32 to vector<64x64xf32>
    %671 = arith.mulf %669, %670 : vector<64x64xf32>
    %672 = arith.addf %671, %2 : vector<64x64xf32>
    %cst_228 = arith.constant dense<0xFF800000> : vector<64xf32>
    %673 = vector.multi_reduction <maximumf>, %672, %cst_228 [1] : vector<64x64xf32> to vector<64xf32>
    %674 = vector.shape_cast %673 : vector<64xf32> to vector<64x1xf32>
    %675 = vector.broadcast %674 : vector<64x1xf32> to vector<64x64xf32>
    %676 = arith.subf %672, %675 : vector<64x64xf32>
    %677 = math.exp %676 : vector<64x64xf32>
    %cst_229 = arith.constant dense<0.000000e+00> : vector<64xf32>
    %678 = vector.multi_reduction <add>, %677, %cst_229 [1] : vector<64x64xf32> to vector<64xf32>
    %679 = vector.shape_cast %678 : vector<64xf32> to vector<64x1xf32>
    %680 = tpu.reciprocal %679 : vector<64x1xf32> -> vector<64x1xf32>
    %681 = vector.broadcast %680 : vector<64x1xf32> to vector<64x64xf32>
    %682 = arith.mulf %677, %681 : vector<64x64xf32>
    %683 = arith.truncf %682 : vector<64x64xf32> to vector<64x64xbf16>
    %cst_230 = arith.constant dense<0.000000e+00> : vector<64x8xf32>
    %684 = tpu.matmul %683, %668, %cst_230 {dimension_numbers = #tpu.dot_dimension_numbers<[1], [0], [0], [1], [0, 0, 1, 1], [], []>} : vector<64x64xbf16>, vector<64x8xbf16>, vector<64x8xf32> -> vector<64x8xf32>
    %685 = vector.extract_strided_slice %684 {offsets = [0, 0], sizes = [16, 8], strides = [1, 1]} : vector<64x8xf32> to vector<16x8xf32>
    %686 = vector.extract_strided_slice %684 {offsets = [16, 0], sizes = [16, 8], strides = [1, 1]} : vector<64x8xf32> to vector<16x8xf32>
    %687 = vector.extract_strided_slice %684 {offsets = [32, 0], sizes = [16, 8], strides = [1, 1]} : vector<64x8xf32> to vector<16x8xf32>
    %688 = vector.extract_strided_slice %684 {offsets = [48, 0], sizes = [16, 8], strides = [1, 1]} : vector<64x8xf32> to vector<16x8xf32>
    %689 = tpu.concatenate %685, %686, %687, %688 in 1 : vector<16x8xf32>, vector<16x8xf32>, vector<16x8xf32>, vector<16x8xf32> -> vector<16x32xf32>
    %c1_231 = arith.constant 1 : index
    %c160_232 = arith.constant 160 : index
    %c0_233 = arith.constant 0 : index
    %690 = vector.load %arg7[%c1_231, %c160_232, %c0_233] : memref<2x320x96xbf16, #tpu.memory_space<vmem>>, vector<1x32x32xbf16>
    %691 = vector.shape_cast %690 : vector<1x32x32xbf16> to vector<32x32xbf16>
    %c1_234 = arith.constant 1 : index
    %c192_235 = arith.constant 192 : index
    %c0_236 = arith.constant 0 : index
    %692 = vector.load %arg7[%c1_234, %c192_235, %c0_236] : memref<2x320x96xbf16, #tpu.memory_space<vmem>>, vector<1x1x32xbf16>
    %693 = vector.shape_cast %692 : vector<1x1x32xbf16> to vector<1x32xbf16>
    %694 = arith.truncf %689 : vector<16x32xf32> to vector<16x32xbf16>
    %cst_237 = arith.constant dense<0.000000e+00> : vector<16x32xf32>
    %695 = tpu.matmul %694, %691, %cst_237 {dimension_numbers = #tpu.dot_dimension_numbers<[1], [0], [0], [1], [0, 0, 1, 1], [], []>} : vector<16x32xbf16>, vector<32x32xbf16>, vector<16x32xf32> -> vector<16x32xf32>
    %696 = arith.extf %693 : vector<1x32xbf16> to vector<1x32xf32>
    %697 = vector.broadcast %696 : vector<1x32xf32> to vector<16x32xf32>
    %698 = arith.addf %695, %697 : vector<16x32xf32>
    %699 = arith.addf %605, %698 : vector<16x32xf32>
    %c20 = arith.constant 20 : index
    %c0_238 = arith.constant 0 : index
    %700 = vector.load %arg8[%c20, %c0_238] : memref<24x32xf32, #tpu.memory_space<vmem>>, vector<1x32xf32>
    %c21 = arith.constant 21 : index
    %c0_239 = arith.constant 0 : index
    %701 = vector.load %arg8[%c21, %c0_239] : memref<24x32xf32, #tpu.memory_space<vmem>>, vector<1x32xf32>
    %cst_240 = arith.constant dense<0.000000e+00> : vector<16xf32>
    %702 = vector.multi_reduction <add>, %699, %cst_240 [1] : vector<16x32xf32> to vector<16xf32>
    %703 = vector.shape_cast %702 : vector<16xf32> to vector<16x1xf32>
    %cst_241 = arith.constant 3.200000e+01 : f32
    %704 = vector.broadcast %cst_241 : f32 to vector<16x1xf32>
    %705 = arith.divf %703, %704 : vector<16x1xf32>
    %706 = vector.broadcast %705 : vector<16x1xf32> to vector<16x32xf32>
    %707 = arith.subf %699, %706 : vector<16x32xf32>
    %708 = arith.mulf %707, %707 : vector<16x32xf32>
    %cst_242 = arith.constant dense<0.000000e+00> : vector<16xf32>
    %709 = vector.multi_reduction <add>, %708, %cst_242 [1] : vector<16x32xf32> to vector<16xf32>
    %710 = vector.shape_cast %709 : vector<16xf32> to vector<16x1xf32>
    %cst_243 = arith.constant 0.0322580636 : f32
    %711 = vector.broadcast %cst_243 : f32 to vector<16x1xf32>
    %712 = arith.mulf %710, %711 : vector<16x1xf32>
    %713 = math.sqrt %712 : vector<16x1xf32>
    %cst_244 = arith.constant 9.99999997E-7 : f32
    %714 = vector.broadcast %cst_244 : f32 to vector<16x1xf32>
    %715 = arith.addf %713, %714 : vector<16x1xf32>
    %716 = tpu.reciprocal %715 : vector<16x1xf32> -> vector<16x1xf32>
    %717 = vector.broadcast %705 : vector<16x1xf32> to vector<16x32xf32>
    %718 = arith.subf %699, %717 : vector<16x32xf32>
    %719 = vector.broadcast %700 : vector<1x32xf32> to vector<16x32xf32>
    %720 = arith.mulf %719, %718 : vector<16x32xf32>
    %721 = vector.broadcast %716 : vector<16x1xf32> to vector<16x32xf32>
    %722 = arith.mulf %720, %721 : vector<16x32xf32>
    %723 = vector.broadcast %701 : vector<1x32xf32> to vector<16x32xf32>
    %724 = arith.addf %722, %723 : vector<16x32xf32>
    %c1_245 = arith.constant 1 : index
    %c200_246 = arith.constant 200 : index
    %c0_247 = arith.constant 0 : index
    %725 = vector.load %arg7[%c1_245, %c200_246, %c0_247] : memref<2x320x96xbf16, #tpu.memory_space<vmem>>, vector<1x32x64xbf16>
    %726 = vector.shape_cast %725 : vector<1x32x64xbf16> to vector<32x64xbf16>
    %c1_248 = arith.constant 1 : index
    %c232_249 = arith.constant 232 : index
    %c0_250 = arith.constant 0 : index
    %727 = vector.load %arg7[%c1_248, %c232_249, %c0_250] : memref<2x320x96xbf16, #tpu.memory_space<vmem>>, vector<1x1x64xbf16>
    %728 = vector.shape_cast %727 : vector<1x1x64xbf16> to vector<1x64xbf16>
    %729 = arith.truncf %724 : vector<16x32xf32> to vector<16x32xbf16>
    %cst_251 = arith.constant dense<0.000000e+00> : vector<16x64xf32>
    %730 = tpu.matmul %729, %726, %cst_251 {dimension_numbers = #tpu.dot_dimension_numbers<[1], [0], [0], [1], [0, 0, 1, 1], [], []>} : vector<16x32xbf16>, vector<32x64xbf16>, vector<16x64xf32> -> vector<16x64xf32>
    %731 = arith.extf %728 : vector<1x64xbf16> to vector<1x64xf32>
    %732 = vector.broadcast %731 : vector<1x64xf32> to vector<16x64xf32>
    %733 = arith.addf %730, %732 : vector<16x64xf32>
    %cst_252 = arith.constant 0.000000e+00 : f32
    %734 = vector.broadcast %cst_252 : f32 to vector<16x64xf32>
    %735 = arith.maximumf %733, %734 : vector<16x64xf32>
    %c1_253 = arith.constant 1 : index
    %c240_254 = arith.constant 240 : index
    %c0_255 = arith.constant 0 : index
    %736 = vector.load %arg7[%c1_253, %c240_254, %c0_255] : memref<2x320x96xbf16, #tpu.memory_space<vmem>>, vector<1x64x32xbf16>
    %737 = vector.shape_cast %736 : vector<1x64x32xbf16> to vector<64x32xbf16>
    %c1_256 = arith.constant 1 : index
    %c304_257 = arith.constant 304 : index
    %c0_258 = arith.constant 0 : index
    %738 = vector.load %arg7[%c1_256, %c304_257, %c0_258] : memref<2x320x96xbf16, #tpu.memory_space<vmem>>, vector<1x1x32xbf16>
    %739 = vector.shape_cast %738 : vector<1x1x32xbf16> to vector<1x32xbf16>
    %740 = arith.truncf %735 : vector<16x64xf32> to vector<16x64xbf16>
    %cst_259 = arith.constant dense<0.000000e+00> : vector<16x32xf32>
    %741 = tpu.matmul %740, %737, %cst_259 {dimension_numbers = #tpu.dot_dimension_numbers<[1], [0], [0], [1], [0, 0, 1, 1], [], []>} : vector<16x64xbf16>, vector<64x32xbf16>, vector<16x32xf32> -> vector<16x32xf32>
    %742 = arith.extf %739 : vector<1x32xbf16> to vector<1x32xf32>
    %743 = vector.broadcast %742 : vector<1x32xf32> to vector<16x32xf32>
    %744 = arith.addf %741, %743 : vector<16x32xf32>
    %745 = arith.addf %699, %744 : vector<16x32xf32>
    %c22 = arith.constant 22 : index
    %c0_260 = arith.constant 0 : index
    %746 = vector.load %arg8[%c22, %c0_260] : memref<24x32xf32, #tpu.memory_space<vmem>>, vector<1x32xf32>
    %c23 = arith.constant 23 : index
    %c0_261 = arith.constant 0 : index
    %747 = vector.load %arg8[%c23, %c0_261] : memref<24x32xf32, #tpu.memory_space<vmem>>, vector<1x32xf32>
    %cst_262 = arith.constant dense<0.000000e+00> : vector<16xf32>
    %748 = vector.multi_reduction <add>, %745, %cst_262 [1] : vector<16x32xf32> to vector<16xf32>
    %749 = vector.shape_cast %748 : vector<16xf32> to vector<16x1xf32>
    %cst_263 = arith.constant 3.200000e+01 : f32
    %750 = vector.broadcast %cst_263 : f32 to vector<16x1xf32>
    %751 = arith.divf %749, %750 : vector<16x1xf32>
    %752 = vector.broadcast %751 : vector<16x1xf32> to vector<16x32xf32>
    %753 = arith.subf %745, %752 : vector<16x32xf32>
    %754 = arith.mulf %753, %753 : vector<16x32xf32>
    %cst_264 = arith.constant dense<0.000000e+00> : vector<16xf32>
    %755 = vector.multi_reduction <add>, %754, %cst_264 [1] : vector<16x32xf32> to vector<16xf32>
    %756 = vector.shape_cast %755 : vector<16xf32> to vector<16x1xf32>
    %cst_265 = arith.constant 0.0322580636 : f32
    %757 = vector.broadcast %cst_265 : f32 to vector<16x1xf32>
    %758 = arith.mulf %756, %757 : vector<16x1xf32>
    %759 = math.sqrt %758 : vector<16x1xf32>
    %cst_266 = arith.constant 9.99999997E-7 : f32
    %760 = vector.broadcast %cst_266 : f32 to vector<16x1xf32>
    %761 = arith.addf %759, %760 : vector<16x1xf32>
    %762 = tpu.reciprocal %761 : vector<16x1xf32> -> vector<16x1xf32>
    %763 = vector.broadcast %751 : vector<16x1xf32> to vector<16x32xf32>
    %764 = arith.subf %745, %763 : vector<16x32xf32>
    %765 = vector.broadcast %746 : vector<1x32xf32> to vector<16x32xf32>
    %766 = arith.mulf %765, %764 : vector<16x32xf32>
    %767 = vector.broadcast %762 : vector<16x1xf32> to vector<16x32xf32>
    %768 = arith.mulf %766, %767 : vector<16x32xf32>
    %769 = vector.broadcast %747 : vector<1x32xf32> to vector<16x32xf32>
    %770 = arith.addf %768, %769 : vector<16x32xf32>
    %c0_267 = arith.constant 0 : index
    %c0_268 = arith.constant 0 : index
    %771 = vector.load %arg9[%c0_267, %c0_268] : memref<16x32xf32, #tpu.memory_space<vmem>>, vector<16x32xf32>
    tpu.vector_store %arg9[%c0_267, %c0_268], %770 {strides = array<i32>} : memref<16x32xf32, #tpu.memory_space<vmem>>, vector<16x32xf32>,
    return
  }
  func.func @transform_0(%arg0: i32) -> (i32, i32) {
    %c0_i32 = arith.constant 0 : i32
    %c0_i32_0 = arith.constant 0 : i32
    %c0_i32_1 = arith.constant 0 : i32
    return %c0_i32, %c0_i32_0 : i32, i32
  }
  func.func @transform_1(%arg0: i32) -> (i32, i32) {
    %c0_i32 = arith.constant 0 : i32
    %c0_i32_0 = arith.constant 0 : i32
    %c0_i32_1 = arith.constant 0 : i32
    return %c0_i32, %c0_i32_0 : i32, i32
  }
  func.func @transform_2(%arg0: i32) -> (i32, i32) {
    %c0_i32 = arith.constant 0 : i32
    %c0_i32_0 = arith.constant 0 : i32
    %c0_i32_1 = arith.constant 0 : i32
    return %c0_i32, %c0_i32_0 : i32, i32
  }
  func.func @transform_3(%arg0: i32) -> (i32, i32) {
    %c0_i32 = arith.constant 0 : i32
    %c0_i32_0 = arith.constant 0 : i32
    %c0_i32_1 = arith.constant 0 : i32
    return %c0_i32, %c0_i32_0 : i32, i32
  }
  func.func @transform_4(%arg0: i32) -> (i32, i32) {
    %c0_i32 = arith.constant 0 : i32
    %c0_i32_0 = arith.constant 0 : i32
    %c0_i32_1 = arith.constant 0 : i32
    return %c0_i32, %c0_i32_0 : i32, i32
  }
  func.func @transform_5(%arg0: i32) -> (i32, i32, i32) {
    %c0_i32 = arith.constant 0 : i32
    %c0_i32_0 = arith.constant 0 : i32
    %c0_i32_1 = arith.constant 0 : i32
    %c0_i32_2 = arith.constant 0 : i32
    return %c0_i32, %c0_i32_0, %c0_i32_1 : i32, i32, i32
  }
  func.func @transform_6(%arg0: i32) -> (i32, i32, i32) {
    %c0_i32 = arith.constant 0 : i32
    %c0_i32_0 = arith.constant 0 : i32
    %c0_i32_1 = arith.constant 0 : i32
    %c0_i32_2 = arith.constant 0 : i32
    return %c0_i32, %c0_i32_0, %c0_i32_1 : i32, i32, i32
  }
  func.func @transform_7(%arg0: i32) -> (i32, i32) {
    %c0_i32 = arith.constant 0 : i32
    %c0_i32_0 = arith.constant 0 : i32
    %c0_i32_1 = arith.constant 0 : i32
    return %c0_i32, %c0_i32_0 : i32, i32
  }
  func.func @transform_8(%arg0: i32) -> (i32, i32) {
    %c0_i32 = arith.constant 0 : i32
    %c0_i32_0 = arith.constant 0 : i32
    %c0_i32_1 = arith.constant 0 : i32
    return %c0_i32, %c0_i32_0 : i32, i32
  }
}

</mosaic_0001>

<bundles_post_ra>
// kernel: encoder_decoder_forward.1
= control target key start
LH: loop header
LB: loop body
LE: loop exit
PB: predicated region body
PF: predicated region fallthrough
CT: control target
= control target key end

     0   :  { %vm59_vm0 = vcmask 261120   ;;  %s7189_s0 = inlined_call_operand.vmem [shape: f32[16,32], index: 0, kind: input, shape index: {}]   ;;  %s7190_s1 = inlined_call_operand.vmem [shape: f32[16,32], index: 1, kind: input, shape index: {}]   ;;  %s7191_s2 = inlined_call_operand.vmem [shape: f32[64,64], index: 2, kind: input, shape index: {}, may-alias: {2,4}]   ;;  %s7192_s3 = inlined_call_operand.vmem [shape: f32[64,64], index: 3, kind: input, shape index: {}]   ;;  %s7193_s4 = inlined_call_operand.vmem [shape: f32[64,64], index: 4, kind: input, shape index: {}, may-alias: {2,4}]   ;;  %s7194_s5 = inlined_call_operand.vmem [shape: bf16[2,192,96], index: 5, kind: input, shape index: {}]   ;;  %s7195_s6 = inlined_call_operand.vmem [shape: bf16[2,320,96], index: 6, kind: input, shape index: {}]   ;;  %s7196_s7 = inlined_call_operand.vmem [shape: f32[24,32], index: 7, kind: input, shape index: {}]   ;;  %s7197_s8 = inlined_call_operand.hbm [shape: f32[16,32], index: 8, kind: output, shape index: {}]  }
   0x1   :  { %v5886_v0 = vld [vmem:[%s7189_s0] sm:$0xff]  ;;  %v5891_v1 = vld [vmem:[%s7189_s0 + $0x8] sm:$0xff] }
   0x2   :  { %v60_v2 = vsel %vm59_vm0, %v5886_v0, 0.0  ;;  %v63_v3 = vsel %vm59_vm0, %v5891_v1, 0.0 }
   0x3   :  { %61 = vadd.xlane.f32.xlu0 %v60_v2 }
   0x7   :  { %64 = vadd.xlane.f32.xlu0 %v63_v3 }
   0x8   :  { %13 = vsyncpa [#allocation3], 0  ;;  %v5448_v14 = vld [vmem:[%s7194_s5 + $0x8] sm:$0xff]   ;;  %v5826_v15 = vmov 0.0   ;;  %vm5827_vm1 = vmmov 0   ;;  %v5449_v16 = vld [vmem:[%s7194_s5] sm:$0xff]   ;;  %v120_v44 = vlaneseq }
   0x9   :  { %4818 = vmatprep.subr.bf16.mxu0 %v5826_v15  ;;  %4822 = vmatprep.mubr.msk.bf16.mxu0 %vm5827_vm1, %v5826_v15  ;;  %v4439_v33 = vld [vmem:[%s7196_s7] ss:$0 sm:$0xff]  ;;  %v4440_v39 = vld [vmem:[%s7196_s7 + $0x1] ss:$0 sm:$0xff]  ;;  %v117_v46 = vld [vmem:[%s7194_s5 + $0x10] sm:$0x1] }
   0xa   :  { %4819 = vmatpush3.bf16.msra.mxu0 %v5448_v14  ;;  %v121_v45 = vshrl.u32 %v120_v44, 7  ;;  %v119_v47 = vunpack.c.l.bf16 %v117_v46  ;;  %vm216_vm6 = vcmask 64512   ;;  %s5828_s18 = smov 112   ;;  %s5829_s19 = smov 104   ;;  %vm322_vm7 = vcmask 523264   ;;  %v6004_v46 = vld [vmem:[%s7191_s2 + $0x28] sm:$0xff] }
   0xb   :  { %4820 = vmatprep.subr.bf16.mxu0 %v5826_v15  ;;  %s5830_s20 = smov 120   ;;  %s5831_s21 = smov 96   ;;  %vm530_vm8 = vcmask 130048   ;;  %vm533_vm9 = vcmask 195584  }
   0xc   :  { %v5921_v48 = vsub.s32 0, %v121_v45  ;;  %s5832_s15 = smov 64   ;;  %s5833_s23 = smov 8  }
   0xd   :  { %s5834_s24 = smov 24   ;;  %s5835_s25 = smov 16  }
   0xe   :  { %4821 = vmatpush3.bf16.msra.mxu0 %v5449_v16  ;;  %v123_v50 = vrot.slane %v119_v47, %v5921_v48  ;;  %s5836_s30 = smov [#allocation2]  }
   0xf   :  { %s4428_s0 = sshll.u32 %s5836_s30, 4  ;;  %s4429_s0 = int_to_ptr.vmem [resolvable:$true] %s4428_s0 }
  0x10   :  { %p5809_p1 = scmp.lt.s32.totalorder %s4429_s0, %s4429_s0 }
  0x8c   :  { %v62_v4 = vpop.xlane.xlu0 %61 }
  0x8d   :  { %v67_v5 = vmul.f32 0.03125, %v62_v4 }
  0x8f   :  { %v69_v6 = vsub.f32 %v5886_v0, %v67_v5 }
  0x90   :  { %v65_v7 = vpop.xlane.xlu0 %64 }
  0x91   :  { %v68_v8 = vmul.f32 0.03125, %v65_v7  ;;  %v71_v9 = vmul.f32 %v69_v6, %v69_v6  ;;  %v103_v35 = vmul.f32 %v4439_v33, %v69_v6 }
  0x93   :  { %v70_v10 = vsub.f32 %v5891_v1, %v68_v8  ;;  %v73_v11 = vsel %vm59_vm0, %v71_v9, 0.0 }
  0x94   :  { %74 = vadd.xlane.f32.xlu1 %v73_v11 }
  0x95   :  { %v72_v12 = vmul.f32 %v70_v10, %v70_v10  ;;  %v104_v36 = vmul.f32 %v4439_v33, %v70_v10 }
  0x97   :  { %v76_v13 = vsel %vm59_vm0, %v72_v12, 0.0 }
  0x98   :  { %77 = vadd.xlane.f32.xlu1 %v76_v13 }
 0x11d   :  { %v75_v17 = vpop.xlane.xlu1 %74 }
 0x11e   :  { %v79_v18 = vmul.f32 0.032258064, %v75_v17 }
 0x120   :  { %5500 = vrsqrt.f32 %v79_v18  ;;  %vm83_vm2 = vcmp.eq.f32.partialorder %v79_v18, inf  ;;  %v86_v23 = vand.u32 2147483648, %v79_v18  ;;  %vm85_vm3 = vcmp.eq.f32.partialorder %v79_v18, 0.0 }
 0x121   :  { %v78_v19 = vpop.xlane.xlu1 %77 }
 0x122   :  { %v80_v20 = vmul.f32 0.032258064, %v78_v19 }
 0x124   :  { %5502 = vrsqrt.f32 %v80_v20  ;;  %vm90_vm4 = vcmp.eq.f32.partialorder %v80_v20, inf  ;;  %v93_v29 = vand.u32 2147483648, %v80_v20  ;;  %vm92_vm5 = vcmp.eq.f32.partialorder %v80_v20, 0.0 }
 0x12d   :  { %v5501_v21 = vpop.eup %5500 }
 0x12e   :  { %v82_v22 = vmul.f32 %v5501_v21, %v79_v18  ;;  %v5970_v21 = vld [vmem:[%s7191_s2] sm:$0xff] }
 0x130   :  { %v84_v24 = vsel %vm83_vm2, %v79_v18, %v82_v22  ;;  %v5965_v18 = vld [vmem:[%s7191_s2 + $0x10] sm:$0xff] }
 0x131   :  { %v5503_v25 = vpop.eup %5502  ;;  %v87_v26 = vsel %vm85_vm3, %v86_v23, %v84_v24 }
 0x132   :  { %v95_v27 = vadd.f32 1e-06, %v87_v26  ;;  %v89_v28 = vmul.f32 %v5503_v25, %v80_v20 }
 0x134   :  { %5504 = vrcp.f32 %v95_v27  ;;  %v91_v30 = vsel %vm90_vm4, %v80_v20, %v89_v28 }
 0x135   :  { %v94_v31 = vsel %vm92_vm5, %v93_v29, %v91_v30  ;;  %v5978_v29 = vld [vmem:[%s7191_s2 + $0x8] sm:$0xff] }
 0x136   :  { %v96_v32 = vadd.f32 1e-06, %v94_v31 }
 0x138   :  { %5506 = vrcp.f32 %v96_v32  ;;  %v5984_v32 = vld [vmem:[%s7191_s2 + $0x18] sm:$0xff] }
 0x141   :  { %v5505_v34 = vpop.eup %5504 }
 0x142   :  { %v105_v37 = vmul.f32 %v5505_v34, %v103_v35 }
 0x144   :  { %v111_v41 = vadd.f32 %v4440_v39, %v105_v37  ;;  %v5991_v37 = vld [vmem:[%s7191_s2 + $0x20] sm:$0xff] }
 0x145   :  { %v5507_v38 = vpop.eup %5506 }
 0x146   :  { %v106_v40 = vmul.f32 %v5507_v38, %v104_v36 }
 0x148   :  { %v112_v42 = vadd.f32 %v4440_v39, %v106_v40 }
 0x14a   :  { %v118_v43 = vpack.c.bf16 %v112_v42, %v111_v41  ;;  %v5997_v42 = vld [vmem:[%s7191_s2 + $0x30] sm:$0xff] }
 0x14c   :  { %4823 = vmatmul.mubr.msk.bf16.vlgmr.msra.gmra.mxu0 %vm59_vm0, %v118_v43 }
 0x20c   :  { %v173_v49 = vpop.f32.mrf.mxu0 }
 0x20d   :  { %v174_v53 = vadd.f32 %v173_v49, %v123_v50 }
 0x20e   :  { %v4824_v51 = vpop.f32.mrf.mxu0 }
 0x210   :  { %v176_v52 = vpop.f32.mrf.mxu0 }
 0x211   :  { %v177_v54 = vadd.f32 %v176_v52, %v123_v50  ;;  %v6011_v52 = vld [vmem:[%s7191_s2 + $0x38] sm:$0xff] }
 0x212   :  { %v4825_v55 = vpop.f32.mrf.mxu0 }
 0x213   :  { %v5243_v56 = vpack.i.bf16 %v177_v54, %v174_v53  ;;  %v5924_v57 = vpack.c.bf16 %v177_v54, %v174_v53 }
 0x215   :  { %5244 = vrot.lane.b32.xlu1 %v5243_v56, %s5828_s18  ;;  %5239 = vrot.lane.b32.xlu0 %v5243_v56, %s5829_s19 }
 0x216   :  { %4834 = vmatprep.mubr.msk.bf16.mxu1 %vm216_vm6, %v5924_v57 }
 0x219   :  { %5249 = vrot.lane.b32.xlu1 %v5243_v56, %s5830_s20 }
 0x287   :  { %v5245_v58 = vpop.permute.xlu1 %5244  ;;  %v5240_v59 = vpop.permute.xlu0 %5239 }
 0x288   :  { %v5247_v60 = vunpack.i.h.bf16 %v5245_v58  ;;  %v5246_v61 = vunpack.i.l.bf16 %v5245_v58  ;;  %v5242_v62 = vunpack.i.h.bf16 %v5240_v59  ;;  %v5241_v63 = vunpack.i.l.bf16 %v5240_v59 }
 0x28a   :  { %v5931_v2 = vpack.c.bf16 %v5247_v60, %v5246_v61  ;;  %v5933_v3 = vpack.c.bf16 %v5242_v62, %v5241_v63 }
 0x28b   :  { %v5250_v4 = vpop.permute.xlu1 %5249 }
 0x28c   :  { %v5252_v5 = vunpack.i.h.bf16 %v5250_v4  ;;  %v5251_v6 = vunpack.i.l.bf16 %v5250_v4  ;;  %212 = vrot.lane.b32.xlu0 %v5931_v2, %s5831_s21  ;;  %214 = vrot.lane.b32.xlu1 %v5933_v3, %s5831_s21 }
 0x28e   :  { %v5939_v7 = vpack.c.bf16 %v5252_v5, %v5251_v6 }
 0x290   :  { %210 = vrot.lane.b32.xlu1 %v5939_v7, %s5831_s21  ;;  %208 = vrot.lane.b32.xlu0 %v5924_v57, %s5831_s21 }
 0x2fe   :  { %v215_v8 = vpop.permute.xlu1 %214  ;;  %v213_v10 = vpop.permute.xlu0 %212 }
 0x2ff   :  { %5202 = vmatprep.subr.msk.bf16.mxu1 %vm216_vm6, %v215_v8  ;;  %v239_v9 = vsel %vm216_vm6, %v215_v8, 0  ;;  %v236_v11 = vsel %vm216_vm6, %v213_v10, 0 }
 0x300   :  { %4827 = vmatpush3.bf16.xpose.msra.mxu1 %v239_v9 }
 0x301   :  { %5203 = vmatprep.subr.msk.bf16.mxu1 %vm216_vm6, %v213_v10 }
 0x302   :  { %v211_v12 = vpop.permute.xlu1 %210  ;;  %v209_v14 = vpop.permute.xlu0 %208 }
 0x303   :  { %v233_v13 = vsel %vm216_vm6, %v211_v12, 0  ;;  %v230_v16 = vsel %vm216_vm6, %v209_v14, 0 }
 0x308   :  { %4829 = vmatpush3.bf16.xpose.msra.mxu1 %v236_v11 }
 0x309   :  { %5204 = vmatprep.subr.msk.bf16.mxu1 %vm216_vm6, %v211_v12 }
 0x310   :  { %4831 = vmatpush3.bf16.xpose.msra.mxu1 %v233_v13 }
 0x311   :  { %5205 = vmatprep.subr.msk.bf16.mxu1 %vm216_vm6, %v209_v14 }
 0x318   :  { %4833 = vmatpush3.bf16.xpose.msra.mxu1 %v230_v16 }
 0x319   :  { %4874 = vmatprep.subr.bf16.mxu1 %v5826_v15 }
 0x31f   :  { %4835 = vmatmul.mubr.msk.bf16.vlgmr.msra.gmra.mxu1 %vm216_vm6, %v5939_v7 }
 0x320   :  { %4838 = vmatprep.mubr.msk.bf16.mxu1 %vm216_vm6, %v5931_v2 }
 0x327   :  { %4839 = vmatmul.mubr.msk.bf16.gmra.mxu1 %vm216_vm6, %v5933_v3 }
 0x328   :  { %4882 = vmatprep.mubr.msk.bf16.mxu1 %vm5827_vm1, %v5826_v15 }
 0x3df   :  { %v4836_v17 = vpop.f32.mrf.mxu1 }
 0x3e0   :  { %v308_v19 = vmul.f32 0.35355338, %v4836_v17 }
 0x3e1   :  { %v275_v20 = vpop.f32.mrf.mxu1 }
 0x3e2   :  { %v306_v22 = vmul.f32 0.35355338, %v275_v20  ;;  %v316_v23 = vadd.f32 %v308_v19, %v5965_v18 }
 0x3e3   :  { %v4837_v24 = vpop.f32.mrf.mxu1 }
 0x3e4   :  { %v329_v25 = vsel %vm322_vm7, %v316_v23, -inf  ;;  %v314_v26 = vadd.f32 %v306_v22, %v5970_v21  ;;  %v309_v27 = vmul.f32 0.35355338, %v4837_v24 }
 0x3e5   :  { %v278_v28 = vpop.f32.mrf.mxu1  ;;  %330 = vmax.xlane.f32.xlu0 %v329_v25 }
 0x3e6   :  { %v307_v30 = vmul.f32 0.35355338, %v278_v28  ;;  %v323_v31 = vsel %vm322_vm7, %v314_v26, -inf  ;;  %v317_v36 = vadd.f32 %v309_v27, %v5984_v32 }
 0x3e7   :  { %v4840_v33 = vpop.f32.mrf.mxu1  ;;  %324 = vmax.xlane.f32.xlu1 %v323_v31 }
 0x3e8   :  { %v315_v34 = vadd.f32 %v307_v30, %v5978_v29  ;;  %v312_v38 = vmul.f32 0.35355338, %v4840_v33  ;;  %v332_v45 = vsel %vm322_vm7, %v317_v36, -inf }
 0x3e9   :  { %v291_v35 = vpop.f32.mrf.mxu1 }
 0x3ea   :  { %v310_v39 = vmul.f32 0.35355338, %v291_v35  ;;  %v326_v40 = vsel %vm322_vm7, %v315_v34, -inf  ;;  %v320_v51 = vadd.f32 %v312_v38, %v5997_v42 }
 0x3eb   :  { %v4841_v41 = vpop.f32.mrf.mxu1  ;;  %327 = vmax.xlane.f32.xlu0 %v326_v40 }
 0x3ec   :  { %v318_v43 = vadd.f32 %v310_v39, %v5991_v37  ;;  %v313_v47 = vmul.f32 0.35355338, %v4841_v41  ;;  %v341_v55 = vsel %vm322_vm7, %v320_v51, -inf }
 0x3ed   :  { %v294_v44 = vpop.f32.mrf.mxu1 }
 0x3ee   :  { %v311_v49 = vmul.f32 0.35355338, %v294_v44  ;;  %v335_v50 = vsel %vm322_vm7, %v318_v43, -inf  ;;  %v321_v56 = vadd.f32 %v313_v47, %v6011_v52 }
 0x3ef   :  { %333 = vmax.xlane.f32.xlu0 %v332_v45  ;;  %336 = vmax.xlane.f32.xlu1 %v335_v50 }
 0x3f0   :  { %v319_v53 = vadd.f32 %v311_v49, %v6004_v46  ;;  %v344_v58 = vsel %vm322_vm7, %v321_v56, -inf }
 0x3f2   :  { %v338_v54 = vsel %vm322_vm7, %v319_v53, -inf }
 0x3f3   :  { %339 = vmax.xlane.f32.xlu0 %v338_v54  ;;  %342 = vmax.xlane.f32.xlu1 %v341_v55 }
 0x3f7   :  { %345 = vmax.xlane.f32.xlu0 %v344_v58 }
 0x404   :  { %421 = vrot.lane.b32.xlu1 %v5933_v3, %s5832_s15 }
 0x46e   :  { %v331_v59 = vpop.xlane.xlu0 %330 }
 0x46f   :  { %v349_v60 = vsub.f32 %v316_v23, %v331_v59 }
 0x470   :  { %v325_v61 = vpop.xlane.xlu1 %324 }
 0x471   :  { %v359_v62 = vmul.f32 1.442695, %v349_v60  ;;  %v347_v63 = vsub.f32 %v314_v26, %v325_v61 }
 0x473   :  { %5508 = vpow2.f32 %v359_v62  ;;  %v355_v4 = vmul.f32 1.442695, %v347_v63 }
 0x474   :  { %v328_v5 = vpop.xlane.xlu0 %327 }
 0x475   :  { %5510 = vpow2.f32 %v355_v4  ;;  %v348_v6 = vsub.f32 %v315_v34, %v328_v5 }
 0x477   :  { %v357_v11 = vmul.f32 1.442695, %v348_v6 }
 0x478   :  { %v334_v8 = vpop.xlane.xlu0 %333  ;;  %v337_v9 = vpop.xlane.xlu1 %336 }
 0x479   :  { %v350_v10 = vsub.f32 %v317_v36, %v334_v8  ;;  %v351_v13 = vsub.f32 %v318_v43, %v337_v9 }
 0x47b   :  { %v361_v12 = vmul.f32 1.442695, %v350_v10  ;;  %v363_v22 = vmul.f32 1.442695, %v351_v13 }
 0x47c   :  { %v340_v14 = vpop.xlane.xlu0 %339  ;;  %v343_v16 = vpop.xlane.xlu1 %342 }
 0x47d   :  { %5512 = vpow2.f32 %v361_v12  ;;  %v353_v3 = vsub.f32 %v320_v51, %v343_v16  ;;  %v352_v17 = vsub.f32 %v319_v53, %v340_v14 }
 0x47e   :  { %5514 = vpow2.f32 %v357_v11 }
 0x47f   :  { %v367_v19 = vmul.f32 1.442695, %v353_v3  ;;  %v365_v28 = vmul.f32 1.442695, %v352_v17 }
 0x480   :  { %v6020_v20 = vpop.eup %5508  ;;  %v346_v23 = vpop.xlane.xlu0 %345 }
 0x481   :  { %v422_v24 = vpop.permute.xlu1 %421  ;;  %v354_v25 = vsub.f32 %v321_v56, %v346_v23  ;;  %v377_v26 = vsel %vm322_vm7, %v6020_v20, 0.0  ;;  %5516 = vpow2.f32 %v367_v19 }
 0x482   :  { %4842 = vmatprep.subr.bf16.mxu0 %v422_v24  ;;  %v5511_v27 = vpop.eup %5510  ;;  %378 = vadd.xlane.f32.xlu1 %v377_v26  ;;  %5518 = vpow2.f32 %v363_v22 }
 0x483   :  { %4843 = vmatpush3.bf16.msra.mxu0 %v422_v24  ;;  %v369_v30 = vmul.f32 1.442695, %v354_v25  ;;  %v371_v31 = vsel %vm322_vm7, %v5511_v27, 0.0  ;;  %v5451_v25 = vld [vmem:[%s7194_s5 + $0x14] sm:$0xff]  }
 0x485   :  { %5520 = vpow2.f32 %v369_v30 }
 0x486   :  { %372 = vadd.xlane.f32.xlu1 %v371_v31  ;;  %5522 = vpow2.f32 %v365_v28 }
 0x48a   :  { %v5513_v33 = vpop.eup %5512 }
 0x48b   :  { %v380_v34 = vsel %vm322_vm7, %v5513_v33, 0.0  ;;  %v5515_v35 = vpop.eup %5514 }
 0x48c   :  { %381 = vadd.xlane.f32.xlu0 %v380_v34  ;;  %v374_v38 = vsel %vm322_vm7, %v5515_v35, 0.0 }
 0x48e   :  { %v6026_v36 = vpop.eup %5516 }
 0x48f   :  { %v389_v39 = vsel %vm322_vm7, %v6026_v36, 0.0  ;;  %v5519_v40 = vpop.eup %5518 }
 0x490   :  { %375 = vadd.xlane.f32.xlu0 %v374_v38  ;;  %390 = vadd.xlane.f32.xlu1 %v389_v39  ;;  %v383_v45 = vsel %vm322_vm7, %v5519_v40, 0.0 }
 0x492   :  { %v5521_v41 = vpop.eup %5520 }
 0x493   :  { %v392_v43 = vsel %vm322_vm7, %v5521_v41, 0.0  ;;  %v5523_v44 = vpop.eup %5522 }
 0x494   :  { %393 = vadd.xlane.f32.xlu0 %v392_v43  ;;  %384 = vadd.xlane.f32.xlu1 %v383_v45  ;;  %v386_v47 = vsel %vm322_vm7, %v5523_v44, 0.0 }
 0x498   :  { %387 = vadd.xlane.f32.xlu0 %v386_v47 }
 0x4a5   :  { %417 = vrot.lane.b32.xlu1 %v5939_v7, %s5832_s15 }
 0x4a9   :  { %415 = vrot.lane.b32.xlu1 %v5924_v57, %s5832_s15 }
 0x4ae   :  { %419 = vrot.lane.b32.xlu0 %v5931_v2, %s5832_s15 }
 0x50b   :  { %v379_v49 = vpop.xlane.xlu1 %378 }
 0x50f   :  { %v373_v50 = vpop.xlane.xlu1 %372 }
 0x510   :  { %5524 = vrcp.f32 %v373_v50 }
 0x515   :  { %v382_v51 = vpop.xlane.xlu0 %381 }
 0x519   :  { %v376_v53 = vpop.xlane.xlu0 %375  ;;  %v391_v54 = vpop.xlane.xlu1 %390 }
 0x51a   :  { %5526 = vrcp.f32 %v376_v53 }
 0x51b   :  { %5528 = vrcp.f32 %v382_v51 }
 0x51c   :  { %5530 = vrcp.f32 %v379_v49 }
 0x51d   :  { %v394_v55 = vpop.xlane.xlu0 %393  ;;  %v385_v56 = vpop.xlane.xlu1 %384 }
 0x51e   :  { %5532 = vrcp.f32 %v385_v56  ;;  %v5525_v7 = vpop.eup %5524 }
 0x51f   :  { %v403_v60 = vmul.f32 %v5525_v7, %v5511_v27  ;;  %v540_v7 = vld [vmem:[%s7194_s5 + $0x24] sm:$0x1] }
 0x521   :  { %v388_v58 = vpop.xlane.xlu0 %387  ;;  %v418_v57 = vpop.permute.xlu1 %417 }
 0x522   :  { %5534 = vrcp.f32 %v388_v58 }
 0x523   :  { %5536 = vrcp.f32 %v394_v55 }
 0x524   :  { %5538 = vrcp.f32 %v391_v54 }
 0x525   :  { %v420_v59 = vpop.permute.xlu0 %419  ;;  %v416_v5 = vpop.permute.xlu1 %415 }
 0x526   :  { %4844 = vmatprep.subr.bf16.mxu0 %v420_v59 }
 0x527   :  { %v5527_v2 = vpop.eup %5526  ;;  %4845 = vmatpush3.bf16.msra.mxu0 %v420_v59 }
 0x528   :  { %4846 = vmatprep.subr.bf16.mxu0 %v418_v57  ;;  %v404_v61 = vmul.f32 %v5527_v2, %v5515_v35  ;;  %v5529_v62 = vpop.eup %5528 }
 0x529   :  { %v5531_v4 = vpop.eup %5530  ;;  %v406_v6 = vmul.f32 %v5529_v62, %v5513_v33 }
 0x52a   :  { %v411_v63 = vpack.c.bf16 %v404_v61, %v403_v60  ;;  %v405_v9 = vmul.f32 %v5531_v4, %v6020_v20  ;;  %v5450_v20 = vld [vmem:[%s7194_s5 + $0x1c] sm:$0xff]  }
 0x52b   :  { %4847 = vmatpush3.bf16.msra.mxu0 %v418_v57  ;;  %v5533_v8 = vpop.eup %5532  ;;  %v542_v57 = vunpack.c.l.bf16 %v540_v7  ;;  %v5456_v7 = vld [vmem:[%s7194_s5 + $0x44] sm:$0xff]  }
 0x52c   :  { %4848 = vmatprep.subr.bf16.mxu0 %v416_v5  ;;  %4850 = vmatprep.mubr.msk.bf16.mxu0 %vm322_vm7, %v411_v63  ;;  %v412_v11 = vpack.c.bf16 %v406_v6, %v405_v9  ;;  %v407_v12 = vmul.f32 %v5533_v8, %v5519_v40 }
 0x52d   :  { %v546_v59 = vrot.slane %v542_v57, %v5921_v48  ;;  %v5457_v57 = vld [vmem:[%s7194_s5 + $0x3c] sm:$0xff]  }
 0x52f   :  { %v5535_v10 = vpop.eup %5534  ;;  %4849 = vmatpush3.bf16.msra.mxu0 %v416_v5 }
 0x530   :  { %v408_v13 = vmul.f32 %v5535_v10, %v5523_v44  ;;  %4858 = vmatprep.subr.bf16.mxu0 %v5826_v15  ;;  %v5537_v14 = vpop.eup %5536 }
 0x531   :  { %v5539_v3 = vpop.eup %5538  ;;  %v410_v17 = vmul.f32 %v5537_v14, %v5521_v41 }
 0x532   :  { %4851 = vmatmul.mubr.msk.bf16.vlgmr.msra.gmra.mxu0 %vm322_vm7, %v412_v11  ;;  %v413_v16 = vpack.c.bf16 %v408_v13, %v407_v12  ;;  %v409_v19 = vmul.f32 %v5539_v3, %v6026_v36 }
 0x533   :  { %4859 = vmatpush3.bf16.msra.mxu0 %v5450_v20  ;;  %v5454_v20 = vld [vmem:[%s7194_s5 + $0x54] sm:$0xff]  }
 0x534   :  { %4854 = vmatprep.mubr.msk.bf16.mxu0 %vm322_vm7, %v413_v16  ;;  %v414_v22 = vpack.c.bf16 %v410_v17, %v409_v19  ;;  %4860 = vmatprep.subr.bf16.mxu0 %v5826_v15  ;;  %v5452_v19 = vld [vmem:[%s7194_s5 + $0x30] sm:$0xff]  }
 0x535   :  { %4875 = vmatpush3.bf16.msra.mxu1 %v5454_v20 }
 0x536   :  { %4876 = vmatprep.subr.bf16.mxu1 %v5826_v15 }
 0x537   :  { %4861 = vmatpush3.bf16.msra.mxu0 %v5451_v25 }
 0x538   :  { %4866 = vmatprep.subr.bf16.mxu0 %v5826_v15 }
 0x53a   :  { %4855 = vmatmul.mubr.msk.bf16.gmra.mxu0 %vm322_vm7, %v414_v22  ;;  %v5453_v22 = vld [vmem:[%s7194_s5 + $0x28] sm:$0xff]  }
 0x53b   :  { %4862 = vmatprep.mubr.msk.bf16.mxu0 %vm5827_vm1, %v5826_v15 }
 0x5f2   :  { %v4852_v23 = vpop.f32.mrf.mxu0 }
 0x5f4   :  { %v473_v24 = vpop.f32.mrf.mxu0 }
 0x5f6   :  { %v4853_v26 = vpop.f32.mrf.mxu0 }
 0x5f7   :  { %v5253_v27 = vpack.i.bf16 %v4853_v26, %v4852_v23  ;;  %v5455_v23 = vld [vmem:[%s7194_s5 + $0x4c] sm:$0xff]  }
 0x5f8   :  { %v476_v28 = vpop.f32.mrf.mxu0  ;;  %4877 = vmatpush3.bf16.msra.mxu1 %v5455_v23 }
 0x5f9   :  { %5254 = vrot.lane.b32.xlu1 %v5253_v27, %s5833_s23  ;;  %4878 = vmatprep.subr.bf16.mxu1 %v5826_v15 }
 0x5fa   :  { %v4856_v30 = vpop.f32.mrf.mxu0 }
 0x5fc   :  { %v489_v31 = vpop.f32.mrf.mxu0  ;;  %4879 = vmatpush3.bf16.msra.mxu1 %v5456_v7 }
 0x5fd   :  { %4880 = vmatprep.subr.bf16.mxu1 %v5826_v15 }
 0x5fe   :  { %v4857_v33 = vpop.f32.mrf.mxu0 }
 0x5ff   :  { %v5263_v34 = vpack.i.bf16 %v4857_v33, %v4856_v30 }
 0x600   :  { %v492_v35 = vpop.f32.mrf.mxu0  ;;  %4881 = vmatpush3.bf16.msra.mxu1 %v5457_v57  ;;  %v4465_v57 = vld [vmem:[%s7196_s7 + $0x4] ss:$0 sm:$0xff] }
 0x601   :  { %v5258_v36 = vpack.i.bf16 %v492_v35, %v489_v31  ;;  %5264 = vrot.lane.b32.xlu1 %v5263_v34, %s5834_s24 }
 0x603   :  { %5259 = vrot.lane.b32.xlu0 %v5258_v36, %s5835_s25 }
 0x66b   :  { %v5255_v38 = vpop.permute.xlu1 %5254 }
 0x66c   :  { %v5257_v39 = vunpack.i.h.bf16 %v5255_v38  ;;  %v5256_v40 = vunpack.i.l.bf16 %v5255_v38 }
 0x66e   :  { %v528_v47 = vsel %vm216_vm6, %v473_v24, %v5256_v40  ;;  %v529_v49 = vsel %vm216_vm6, %v476_v28, %v5257_v39 }
 0x673   :  { %v5265_v41 = vpop.permute.xlu1 %5264 }
 0x674   :  { %v5267_v50 = vunpack.i.h.bf16 %v5265_v41  ;;  %v5266_v51 = vunpack.i.l.bf16 %v5265_v41 }
 0x675   :  { %v5260_v43 = vpop.permute.xlu0 %5259 }
 0x676   :  { %v5262_v44 = vunpack.i.h.bf16 %v5260_v43  ;;  %v5261_v45 = vunpack.i.l.bf16 %v5260_v43 }
 0x678   :  { %v532_v53 = vsel %vm530_vm8, %v529_v49, %v5262_v44  ;;  %v531_v54 = vsel %vm530_vm8, %v528_v47, %v5261_v45  ;;  %v4455_v44 = vld [vmem:[%s7196_s7 + $0x2] ss:$0 sm:$0xff] }
 0x679   :  { %v535_v55 = vsel %vm533_vm9, %v532_v53, %v5267_v50  ;;  %v534_v56 = vsel %vm533_vm9, %v531_v54, %v5266_v51  ;;  %v4456_v53 = vld [vmem:[%s7196_s7 + $0x3] ss:$0 sm:$0xff] }
 0x67a   :  { %v541_v58 = vpack.c.bf16 %v535_v55, %v534_v56 }
 0x67c   :  { %4863 = vmatmul.mubr.msk.bf16.vlgmr.msra.gmra.mxu0 %vm59_vm0, %v541_v58 }
 0x67d   :  { %4870 = vmatprep.mubr.msk.bf16.mxu0 %vm5827_vm1, %v5826_v15  ;;  %4867 = vmatpush3.bf16.msra.mxu0 %v5452_v19 }
 0x67e   :  { %4868 = vmatprep.subr.bf16.mxu0 %v5826_v15 }
 0x681   :  { %4869 = vmatpush3.bf16.msra.mxu0 %v5453_v22 }
 0x682   :  { %4886 = vmatprep.subr.bf16.mxu0 %v5826_v15 }
 0x73c   :  { %v596_v2 = vpop.f32.mrf.mxu0 }
 0x73d   :  { %v597_v60 = vadd.f32 %v596_v2, %v546_v59 }
 0x73e   :  { %v4864_v61 = vpop.f32.mrf.mxu0 }
 0x73f   :  { %v6074_v62 = vadd.f32 %v597_v60, %v5886_v0 }
 0x740   :  { %v599_v63 = vpop.f32.mrf.mxu0 }
 0x741   :  { %v600_v4 = vadd.f32 %v599_v63, %v546_v59  ;;  %v607_v5 = vsel %vm59_vm0, %v6074_v62, 0.0  ;;  %v663_v59 = vld [vmem:[%s7194_s5 + $0x38] sm:$0x1] }
 0x742   :  { %608 = vadd.xlane.f32.xlu0 %v607_v5  ;;  %v4865_v6 = vpop.f32.mrf.mxu0  ;;  %v665_v2 = vunpack.c.l.bf16 %v663_v59 }
 0x743   :  { %v6079_v8 = vadd.f32 %v600_v4, %v5891_v1 }
 0x744   :  { %v669_v60 = vrot.slane %v665_v2, %v5921_v48 }
 0x745   :  { %v610_v9 = vsel %vm59_vm0, %v6079_v8, 0.0 }
 0x746   :  { %611 = vadd.xlane.f32.xlu1 %v610_v9 }
 0x7cb   :  { %v609_v10 = vpop.xlane.xlu0 %608 }
 0x7cc   :  { %v613_v11 = vmul.f32 0.03125, %v609_v10 }
 0x7ce   :  { %v615_v12 = vsub.f32 %v6074_v62, %v613_v11 }
 0x7cf   :  { %v612_v0 = vpop.xlane.xlu1 %611 }
 0x7d0   :  { %v614_v13 = vmul.f32 0.03125, %v612_v0  ;;  %v617_v14 = vmul.f32 %v615_v12, %v615_v12  ;;  %v649_v47 = vmul.f32 %v4455_v44, %v615_v12  ;;  %v736_v0 = vld [vmem:[%s7194_s5 + $0x5c] sm:$0x1] }
 0x7d2   :  { %v616_v16 = vsub.f32 %v6079_v8, %v614_v13  ;;  %v619_v3 = vsel %vm59_vm0, %v617_v14, 0.0  ;;  %v738_v13 = vunpack.c.l.bf16 %v736_v0 }
 0x7d3   :  { %620 = vadd.xlane.f32.xlu0 %v619_v3 }
 0x7d4   :  { %v618_v17 = vmul.f32 %v616_v16, %v616_v16  ;;  %v650_v49 = vmul.f32 %v4455_v44, %v616_v16  ;;  %v742_v14 = vrot.slane %v738_v13, %v5921_v48 }
 0x7d6   :  { %v622_v1 = vsel %vm59_vm0, %v618_v17, 0.0 }
 0x7d7   :  { %623 = vadd.xlane.f32.xlu0 %v622_v1 }
 0x85c   :  { %v621_v24 = vpop.xlane.xlu0 %620 }
 0x85d   :  { %v625_v25 = vmul.f32 0.032258064, %v621_v24 }
 0x85f   :  { %5540 = vrsqrt.f32 %v625_v25  ;;  %vm629_vm10 = vcmp.eq.f32.partialorder %v625_v25, inf  ;;  %v632_v31 = vand.u32 2147483648, %v625_v25  ;;  %vm631_vm11 = vcmp.eq.f32.partialorder %v625_v25, 0.0 }
 0x860   :  { %v624_v26 = vpop.xlane.xlu0 %623 }
 0x861   :  { %v626_v27 = vmul.f32 0.032258064, %v624_v26 }
 0x863   :  { %5542 = vrsqrt.f32 %v626_v27  ;;  %vm636_vm12 = vcmp.eq.f32.partialorder %v626_v27, inf  ;;  %v639_v39 = vand.u32 2147483648, %v626_v27  ;;  %vm638_vm13 = vcmp.eq.f32.partialorder %v626_v27, 0.0 }
 0x86c   :  { %v5541_v28 = vpop.eup %5540 }
 0x86d   :  { %v628_v30 = vmul.f32 %v5541_v28, %v625_v25 }
 0x86f   :  { %v630_v33 = vsel %vm629_vm10, %v625_v25, %v628_v30 }
 0x870   :  { %v5543_v34 = vpop.eup %5542  ;;  %v633_v35 = vsel %vm631_vm11, %v632_v31, %v630_v33 }
 0x871   :  { %v641_v36 = vadd.f32 1e-06, %v633_v35  ;;  %v635_v38 = vmul.f32 %v5543_v34, %v626_v27 }
 0x873   :  { %5544 = vrcp.f32 %v641_v36  ;;  %v637_v40 = vsel %vm636_vm12, %v626_v27, %v635_v38  ;;  %v5458_v36 = vld [vmem:[%s7194_s5 + $0x68] sm:$0xff]   ;;  %v5459_v38 = vld [vmem:[%s7194_s5 + $0x60] sm:$0xff]  }
 0x874   :  { %v640_v41 = vsel %vm638_vm13, %v639_v39, %v637_v40 }
 0x875   :  { %v642_v43 = vadd.f32 1e-06, %v640_v41 }
 0x877   :  { %5546 = vrcp.f32 %v642_v43 }
 0x880   :  { %v5545_v45 = vpop.eup %5544 }
 0x881   :  { %v651_v50 = vmul.f32 %v5545_v45, %v649_v47 }
 0x883   :  { %v657_v55 = vadd.f32 %v4456_v53, %v651_v50 }
 0x884   :  { %v5547_v51 = vpop.eup %5546 }
 0x885   :  { %v652_v54 = vmul.f32 %v5547_v51, %v650_v49 }
 0x887   :  { %v658_v56 = vadd.f32 %v4456_v53, %v652_v54 }
 0x889   :  { %v664_v58 = vpack.c.bf16 %v658_v56, %v657_v55 }
 0x88b   :  { %4871 = vmatmul.mubr.msk.bf16.vlgmr.msra.gmra.mxu0 %vm59_vm0, %v664_v58 }
 0x88c   :  { %4890 = vmatprep.mubr.msk.bf16.mxu0 %vm5827_vm1, %v5826_v15  ;;  %4887 = vmatpush3.bf16.msra.mxu0 %v5458_v36 }
 0x88d   :  { %4888 = vmatprep.subr.bf16.mxu0 %v5826_v15 }
 0x890   :  { %4889 = vmatpush3.bf16.msra.mxu0 %v5459_v38 }
 0x94b   :  { %v719_v61 = vpop.f32.mrf.mxu0 }
 0x94c   :  { %v720_v4 = vadd.f32 %v719_v61, %v669_v60 }
 0x94d   :  { %v4872_v63 = vpop.f32.mrf.mxu0 }
 0x94e   :  { %v726_v10 = vmax.f32 %v720_v4, 0.0  ;;  %v4466_v4 = vld [vmem:[%s7196_s7 + $0x5] ss:$0 sm:$0xff] }
 0x94f   :  { %v722_v5 = vpop.f32.mrf.mxu0 }
 0x950   :  { %v723_v6 = vadd.f32 %v722_v5, %v669_v60 }
 0x951   :  { %v4873_v9 = vpop.f32.mrf.mxu0 }
 0x952   :  { %v727_v11 = vmax.f32 %v723_v6, 0.0 }
 0x954   :  { %v737_v12 = vpack.c.bf16 %v727_v11, %v726_v10  ;;  %v4471_v11 = vld [vmem:[%s7194_s5 + $0x70] sm:$0x1] }
 0x956   :  { %4883 = vmatmul.mubr.msk.bf16.vlgmr.msra.gmra.mxu1 %vm322_vm7, %v737_v12  ;;  %v874_v12 = vunpack.c.l.bf16 %v4471_v11 }
 0x958   :  { %v878_v13 = vrot.slane %v874_v12, %v5921_v48 }
 0xa16   :  { %v804_v16 = vpop.f32.mrf.mxu1 }
 0xa17   :  { %v805_v3 = vadd.f32 %v804_v16, %v742_v14 }
 0xa18   :  { %v4884_v17 = vpop.f32.mrf.mxu1 }
 0xa19   :  { %v6129_v1 = vadd.f32 %v805_v3, %v6074_v62 }
 0xa1a   :  { %v807_v19 = vpop.f32.mrf.mxu1 }
 0xa1b   :  { %v808_v22 = vadd.f32 %v807_v19, %v742_v14  ;;  %v815_v20 = vsel %vm59_vm0, %v6129_v1, 0.0 }
 0xa1c   :  { %816 = vadd.xlane.f32.xlu0 %v815_v20  ;;  %v4885_v23 = vpop.f32.mrf.mxu1 }
 0xa1d   :  { %v6134_v24 = vadd.f32 %v808_v22, %v6079_v8 }
 0xa1f   :  { %v818_v25 = vsel %vm59_vm0, %v6134_v24, 0.0 }
 0xa20   :  { %819 = vadd.xlane.f32.xlu1 %v818_v25 }
 0xaa5   :  { %v817_v26 = vpop.xlane.xlu0 %816 }
 0xaa6   :  { %v821_v27 = vmul.f32 0.03125, %v817_v26 }
 0xaa8   :  { %v823_v28 = vsub.f32 %v6129_v1, %v821_v27 }
 0xaa9   :  { %v820_v62 = vpop.xlane.xlu1 %819 }
 0xaaa   :  { %v822_v30 = vmul.f32 0.03125, %v820_v62  ;;  %v825_v31 = vmul.f32 %v823_v28, %v823_v28  ;;  %v857_v2 = vmul.f32 %v4465_v57, %v823_v28 }
 0xaac   :  { %v824_v33 = vsub.f32 %v6134_v24, %v822_v30  ;;  %v827_v34 = vsel %vm59_vm0, %v825_v31, 0.0 }
 0xaad   :  { %828 = vadd.xlane.f32.xlu0 %v827_v34 }
 0xaae   :  { %v826_v35 = vmul.f32 %v824_v33, %v824_v33  ;;  %v858_v60 = vmul.f32 %v4465_v57, %v824_v33 }
 0xab0   :  { %v830_v8 = vsel %vm59_vm0, %v826_v35, 0.0 }
 0xab1   :  { %831 = vadd.xlane.f32.xlu1 %v830_v8 }
 0xb36   :  { %v829_v39 = vpop.xlane.xlu0 %828 }
 0xb37   :  { %v833_v40 = vmul.f32 0.032258064, %v829_v39 }
 0xb39   :  { %5548 = vrsqrt.f32 %v833_v40  ;;  %vm837_vm14 = vcmp.eq.f32.partialorder %v833_v40, inf  ;;  %v840_v47 = vand.u32 2147483648, %v833_v40  ;;  %vm839_vm15 = vcmp.eq.f32.partialorder %v833_v40, 0.0 }
 0xb3a   :  { %v832_v41 = vpop.xlane.xlu1 %831 }
 0xb3b   :  { %v834_v43 = vmul.f32 0.032258064, %v832_v41 }
 0xb3d   :  { %5550 = vrsqrt.f32 %v834_v43  ;;  %vm844_vm2 = vcmp.eq.f32.partialorder %v834_v43, inf  ;;  %v847_v55 = vand.u32 2147483648, %v834_v43  ;;  %vm846_vm3 = vcmp.eq.f32.partialorder %v834_v43, 0.0 }
 0xb46   :  { %v5549_v44 = vpop.eup %5548 }
 0xb47   :  { %v836_v45 = vmul.f32 %v5549_v44, %v833_v40 }
 0xb49   :  { %v838_v49 = vsel %vm837_vm14, %v833_v40, %v836_v45 }
 0xb4a   :  { %v5551_v50 = vpop.eup %5550  ;;  %v841_v51 = vsel %vm839_vm15, %v840_v47, %v838_v49 }
 0xb4b   :  { %v849_v53 = vadd.f32 1e-06, %v841_v51  ;;  %v843_v54 = vmul.f32 %v5551_v50, %v834_v43 }
 0xb4d   :  { %5552 = vrcp.f32 %v849_v53  ;;  %v845_v56 = vsel %vm844_vm2, %v834_v43, %v843_v54 }
 0xb4e   :  { %v848_v58 = vsel %vm846_vm3, %v847_v55, %v845_v56 }
 0xb4f   :  { %v850_v7 = vadd.f32 1e-06, %v848_v58 }
 0xb51   :  { %5554 = vrcp.f32 %v850_v7 }
 0xb5a   :  { %v5553_v59 = vpop.eup %5552 }
 0xb5b   :  { %v859_v61 = vmul.f32 %v5553_v59, %v857_v2 }
 0xb5d   :  { %v865_v6 = vadd.f32 %v4466_v4, %v859_v61 }
 0xb5e   :  { %v5555_v63 = vpop.eup %5554 }
 0xb5f   :  { %v860_v5 = vmul.f32 %v5555_v63, %v858_v60 }
 0xb61   :  { %v866_v9 = vadd.f32 %v4466_v4, %v860_v5 }
 0xb63   :  { %v873_v10 = vpack.c.bf16 %v866_v9, %v865_v6 }
 0xb65   :  { %4891 = vmatmul.mubr.msk.bf16.vlgmr.msra.gmra.mxu0 %vm59_vm0, %v873_v10 }
 0xc25   :  { %v928_v0 = vpop.f32.mrf.mxu0 }
 0xc26   :  { %v929_v3 = vadd.f32 %v928_v0, %v878_v13 }
 0xc27   :  { %v4892_v14 = vpop.f32.mrf.mxu0 }
 0xc29   :  { %v931_v16 = vpop.f32.mrf.mxu0 }
 0xc2a   :  { %v932_v17 = vadd.f32 %v931_v16, %v878_v13 }
 0xc2b   :  { %v4893_v19 = vpop.f32.mrf.mxu0 }
 0xc2c   :  { %v5273_v22 = vpack.i.bf16 %v932_v17, %v929_v3  ;;  %v6160_v20 = vpack.c.bf16 %v932_v17, %v929_v3 }
 0xc2e   :  { %5274 = vrot.lane.b32.xlu1 %v5273_v22, %s5828_s18  ;;  %5269 = vrot.lane.b32.xlu0 %v5273_v22, %s5829_s19 }
 0xc2f   :  { %4902 = vmatprep.mubr.msk.bf16.mxu1 %vm216_vm6, %v6160_v20 }
 0xc32   :  { %5279 = vrot.lane.b32.xlu1 %v5273_v22, %s5830_s20 }
 0xca0   :  { %v5275_v23 = vpop.permute.xlu1 %5274  ;;  %v5270_v25 = vpop.permute.xlu0 %5269 }
 0xca1   :  { %v5277_v26 = vunpack.i.h.bf16 %v5275_v23  ;;  %v5276_v27 = vunpack.i.l.bf16 %v5275_v23  ;;  %v5272_v28 = vunpack.i.h.bf16 %v5270_v25  ;;  %v5271_v62 = vunpack.i.l.bf16 %v5270_v25 }
 0xca3   :  { %v6167_v30 = vpack.c.bf16 %v5277_v26, %v5276_v27  ;;  %v6169_v31 = vpack.c.bf16 %v5272_v28, %v5271_v62 }
 0xca4   :  { %v5280_v33 = vpop.permute.xlu1 %5279 }
 0xca5   :  { %v5282_v34 = vunpack.i.h.bf16 %v5280_v33  ;;  %v5281_v35 = vunpack.i.l.bf16 %v5280_v33  ;;  %967 = vrot.lane.b32.xlu0 %v6167_v30, %s5831_s21  ;;  %969 = vrot.lane.b32.xlu1 %v6169_v31, %s5831_s21 }
 0xca7   :  { %v6175_v8 = vpack.c.bf16 %v5282_v34, %v5281_v35 }
 0xca9   :  { %965 = vrot.lane.b32.xlu1 %v6175_v8, %s5831_s21  ;;  %963 = vrot.lane.b32.xlu0 %v6160_v20, %s5831_s21 }
 0xd17   :  { %v970_v36 = vpop.permute.xlu1 %969  ;;  %v968_v39 = vpop.permute.xlu0 %967 }
 0xd18   :  { %5206 = vmatprep.subr.msk.bf16.mxu1 %vm216_vm6, %v970_v36  ;;  %v993_v38 = vsel %vm216_vm6, %v970_v36, 0  ;;  %v990_v40 = vsel %vm216_vm6, %v968_v39, 0 }
 0xd19   :  { %4895 = vmatpush3.bf16.xpose.msra.mxu1 %v993_v38 }
 0xd1a   :  { %5207 = vmatprep.subr.msk.bf16.mxu1 %vm216_vm6, %v968_v39 }
 0xd1b   :  { %v966_v41 = vpop.permute.xlu1 %965  ;;  %v964_v44 = vpop.permute.xlu0 %963 }
 0xd1c   :  { %v987_v43 = vsel %vm216_vm6, %v966_v41, 0  ;;  %v984_v45 = vsel %vm216_vm6, %v964_v44, 0 }
 0xd21   :  { %4897 = vmatpush3.bf16.xpose.msra.mxu1 %v990_v40 }
 0xd22   :  { %5208 = vmatprep.subr.msk.bf16.mxu1 %vm216_vm6, %v966_v41 }
 0xd29   :  { %4899 = vmatpush3.bf16.xpose.msra.mxu1 %v987_v43 }
 0xd2a   :  { %5209 = vmatprep.subr.msk.bf16.mxu1 %vm216_vm6, %v964_v44 }
 0xd31   :  { %4901 = vmatpush3.bf16.xpose.msra.mxu1 %v984_v45 }
 0xd32   :  { %4942 = vmatprep.subr.bf16.mxu1 %v5826_v15 }
 0xd38   :  { %4903 = vmatmul.mubr.msk.bf16.vlgmr.msra.gmra.mxu1 %vm216_vm6, %v6175_v8 }
 0xd39   :  { %4906 = vmatprep.mubr.msk.bf16.mxu1 %vm216_vm6, %v6167_v30 }
 0xd40   :  { %4907 = vmatmul.mubr.msk.bf16.gmra.mxu1 %vm216_vm6, %v6169_v31 }
 0xd41   :  { %4950 = vmatprep.mubr.msk.bf16.mxu1 %vm5827_vm1, %v5826_v15 }
 0xdf8   :  { %v4904_v47 = vpop.f32.mrf.mxu1 }
 0xdf9   :  { %v1062_v49 = vmul.f32 0.35355338, %v4904_v47 }
 0xdfa   :  { %v1029_v50 = vpop.f32.mrf.mxu1 }
 0xdfb   :  { %v1060_v51 = vmul.f32 0.35355338, %v1029_v50  ;;  %v1070_v53 = vadd.f32 %v1062_v49, %v5965_v18 }
 0xdfc   :  { %v4905_v54 = vpop.f32.mrf.mxu1 }
 0xdfd   :  { %v1082_v55 = vsel %vm322_vm7, %v1070_v53, -inf  ;;  %v1068_v56 = vadd.f32 %v1060_v51, %v5970_v21  ;;  %v1063_v58 = vmul.f32 0.35355338, %v4905_v54 }
 0xdfe   :  { %1083 = vmax.xlane.f32.xlu0 %v1082_v55  ;;  %v1032_v7 = vpop.f32.mrf.mxu1 }
 0xdff   :  { %v1061_v57 = vmul.f32 0.35355338, %v1032_v7  ;;  %v1076_v59 = vsel %vm322_vm7, %v1068_v56, -inf  ;;  %v1071_v63 = vadd.f32 %v1063_v58, %v5984_v32 }
 0xe00   :  { %1077 = vmax.xlane.f32.xlu1 %v1076_v59  ;;  %v4908_v2 = vpop.f32.mrf.mxu1 }
 0xe01   :  { %v1069_v60 = vadd.f32 %v1061_v57, %v5978_v29  ;;  %v1066_v4 = vmul.f32 0.35355338, %v4908_v2  ;;  %v1085_v10 = vsel %vm322_vm7, %v1071_v63, -inf }
 0xe02   :  { %v1045_v61 = vpop.f32.mrf.mxu1 }
 0xe03   :  { %v1064_v18 = vmul.f32 0.35355338, %v1045_v61  ;;  %v1079_v5 = vsel %vm322_vm7, %v1069_v60, -inf  ;;  %v1074_v29 = vadd.f32 %v1066_v4, %v5997_v42 }
 0xe04   :  { %1080 = vmax.xlane.f32.xlu0 %v1079_v5  ;;  %v4909_v6 = vpop.f32.mrf.mxu1 }
 0xe05   :  { %v1072_v21 = vadd.f32 %v1064_v18, %v5991_v37  ;;  %v1067_v11 = vmul.f32 0.35355338, %v4909_v6  ;;  %v1094_v13 = vsel %vm322_vm7, %v1074_v29, -inf }
 0xe06   :  { %v1048_v9 = vpop.f32.mrf.mxu1 }
 0xe07   :  { %v1065_v12 = vmul.f32 0.35355338, %v1048_v9  ;;  %v1088_v0 = vsel %vm322_vm7, %v1072_v21, -inf  ;;  %v1075_v16 = vadd.f32 %v1067_v11, %v6011_v52 }
 0xe08   :  { %1086 = vmax.xlane.f32.xlu0 %v1085_v10  ;;  %1089 = vmax.xlane.f32.xlu1 %v1088_v0 }
 0xe09   :  { %v1073_v32 = vadd.f32 %v1065_v12, %v6004_v46  ;;  %v1097_v37 = vsel %vm322_vm7, %v1075_v16, -inf }
 0xe0b   :  { %v1091_v14 = vsel %vm322_vm7, %v1073_v32, -inf }
 0xe0c   :  { %1095 = vmax.xlane.f32.xlu1 %v1094_v13  ;;  %1092 = vmax.xlane.f32.xlu0 %v1091_v14 }
 0xe10   :  { %1098 = vmax.xlane.f32.xlu0 %v1097_v37 }
 0xe1d   :  { %1174 = vrot.lane.b32.xlu1 %v6169_v31, %s5832_s15 }
 0xe87   :  { %v1084_v3 = vpop.xlane.xlu0 %1083 }
 0xe88   :  { %v1102_v42 = vsub.f32 %v1070_v53, %v1084_v3 }
 0xe89   :  { %v1078_v17 = vpop.xlane.xlu1 %1077 }
 0xe8a   :  { %v1112_v19 = vmul.f32 1.442695, %v1102_v42  ;;  %v1100_v22 = vsub.f32 %v1068_v56, %v1078_v17 }
 0xe8c   :  { %5556 = vpow2.f32 %v1112_v19  ;;  %v1108_v46 = vmul.f32 1.442695, %v1100_v22 }
 0xe8d   :  { %v1081_v23 = vpop.xlane.xlu0 %1080 }
 0xe8e   :  { %5558 = vpow2.f32 %v1108_v46  ;;  %v1101_v25 = vsub.f32 %v1069_v60, %v1081_v23 }
 0xe90   :  { %v1110_v28 = vmul.f32 1.442695, %v1101_v25 }
 0xe91   :  { %v1087_v26 = vpop.xlane.xlu0 %1086  ;;  %v1090_v52 = vpop.xlane.xlu1 %1089 }
 0xe92   :  { %v1103_v27 = vsub.f32 %v1071_v63, %v1087_v26  ;;  %v1104_v33 = vsub.f32 %v1072_v21, %v1090_v52 }
 0xe94   :  { %v1114_v62 = vmul.f32 1.442695, %v1103_v27  ;;  %v1116_v36 = vmul.f32 1.442695, %v1104_v33 }
 0xe95   :  { %v1096_v34 = vpop.xlane.xlu1 %1095  ;;  %v1093_v35 = vpop.xlane.xlu0 %1092 }
 0xe96   :  { %5560 = vpow2.f32 %v1114_v62  ;;  %v1106_v31 = vsub.f32 %v1074_v29, %v1096_v34  ;;  %v1105_v39 = vsub.f32 %v1073_v32, %v1093_v35  ;;  %v5460_v62 = vld [vmem:[%s7194_s5 + $0x7c] sm:$0xff]   ;;  %v5461_v35 = vld [vmem:[%s7194_s5 + $0x74] sm:$0xff]  }
 0xe97   :  { %5562 = vpow2.f32 %v1110_v28 }
 0xe98   :  { %v1120_v38 = vmul.f32 1.442695, %v1106_v31  ;;  %v1118_v49 = vmul.f32 1.442695, %v1105_v39 }
 0xe99   :  { %v6216_v40 = vpop.eup %5556  ;;  %v1175_v41 = vpop.permute.xlu1 %1174 }
 0xe9a   :  { %v1099_v43 = vpop.xlane.xlu0 %1098  ;;  %5564 = vpow2.f32 %v1120_v38  ;;  %4910 = vmatprep.subr.bf16.mxu0 %v1175_v41  ;;  %v1130_v45 = vsel %vm322_vm7, %v6216_v40, 0.0 }
 0xe9b   :  { %v1107_v44 = vsub.f32 %v1075_v16, %v1099_v43  ;;  %v5559_v47 = vpop.eup %5558  ;;  %1131 = vadd.xlane.f32.xlu1 %v1130_v45  ;;  %4911 = vmatpush3.bf16.msra.mxu0 %v1175_v41  ;;  %5566 = vpow2.f32 %v1116_v36 }
 0xe9c   :  { %v1124_v51 = vsel %vm322_vm7, %v5559_v47, 0.0 }
 0xe9d   :  { %v1122_v50 = vmul.f32 1.442695, %v1107_v44 }
 0xe9f   :  { %5568 = vpow2.f32 %v1122_v50  ;;  %1125 = vadd.xlane.f32.xlu1 %v1124_v51 }
 0xea0   :  { %5570 = vpow2.f32 %v1118_v49 }
 0xea3   :  { %v5561_v53 = vpop.eup %5560 }
 0xea4   :  { %v1133_v54 = vsel %vm322_vm7, %v5561_v53, 0.0  ;;  %v5563_v55 = vpop.eup %5562 }
 0xea5   :  { %1134 = vadd.xlane.f32.xlu0 %v1133_v54  ;;  %v1127_v7 = vsel %vm322_vm7, %v5563_v55, 0.0 }
 0xea7   :  { %v6222_v56 = vpop.eup %5564 }
 0xea8   :  { %v1142_v58 = vsel %vm322_vm7, %v6222_v56, 0.0  ;;  %v5567_v57 = vpop.eup %5566 }
 0xea9   :  { %1143 = vadd.xlane.f32.xlu1 %v1142_v58  ;;  %1128 = vadd.xlane.f32.xlu0 %v1127_v7  ;;  %v1136_v2 = vsel %vm322_vm7, %v5567_v57, 0.0 }
 0xeac   :  { %v5569_v59 = vpop.eup %5568 }
 0xead   :  { %v1145_v60 = vsel %vm322_vm7, %v5569_v59, 0.0  ;;  %v5571_v61 = vpop.eup %5570  ;;  %1137 = vadd.xlane.f32.xlu1 %v1136_v2 }
 0xeae   :  { %1146 = vadd.xlane.f32.xlu0 %v1145_v60  ;;  %v1139_v63 = vsel %vm322_vm7, %v5571_v61, 0.0 }
 0xeb2   :  { %1140 = vadd.xlane.f32.xlu0 %v1139_v63 }
 0xebe   :  { %1170 = vrot.lane.b32.xlu1 %v6175_v8, %s5832_s15 }
 0xec2   :  { %1168 = vrot.lane.b32.xlu1 %v6160_v20, %s5832_s15 }
 0xec8   :  { %1172 = vrot.lane.b32.xlu0 %v6167_v30, %s5832_s15 }
 0xf24   :  { %v1132_v4 = vpop.xlane.xlu1 %1131 }
 0xf28   :  { %v1126_v18 = vpop.xlane.xlu1 %1125 }
 0xf29   :  { %5572 = vrcp.f32 %v1126_v18 }
 0xf2e   :  { %v1135_v5 = vpop.xlane.xlu0 %1134 }
 0xf32   :  { %v1144_v6 = vpop.xlane.xlu1 %1143  ;;  %v1129_v21 = vpop.xlane.xlu0 %1128 }
 0xf33   :  { %5574 = vrcp.f32 %v1129_v21 }
 0xf34   :  { %5576 = vrcp.f32 %v1135_v5 }
 0xf35   :  { %5578 = vrcp.f32 %v1132_v4  ;;  %v4487_v4 = vld [vmem:[%s7194_s5 + $0x84] sm:$0x1] }
 0xf36   :  { %v1138_v9 = vpop.xlane.xlu1 %1137  ;;  %v5573_v12 = vpop.eup %5572  ;;  %v1293_v18 = vunpack.c.l.bf16 %v4487_v4 }
 0xf37   :  { %v1147_v10 = vpop.xlane.xlu0 %1146  ;;  %5580 = vrcp.f32 %v1138_v9  ;;  %v1156_v29 = vmul.f32 %v5573_v12, %v5559_v47 }
 0xf38   :  { %v1297_v5 = vrot.slane %v1293_v18, %v5921_v48 }
 0xf3a   :  { %v1171_v8 = vpop.permute.xlu1 %1170 }
 0xf3b   :  { %v1141_v11 = vpop.xlane.xlu0 %1140 }
 0xf3c   :  { %5582 = vrcp.f32 %v1141_v11 }
 0xf3d   :  { %5584 = vrcp.f32 %v1147_v10 }
 0xf3e   :  { %5586 = vrcp.f32 %v1144_v6  ;;  %v1169_v14 = vpop.permute.xlu1 %1168 }
 0xf3f   :  { %v1173_v20 = vpop.permute.xlu0 %1172 }
 0xf40   :  { %4912 = vmatprep.subr.bf16.mxu0 %v1173_v20  ;;  %v5575_v30 = vpop.eup %5574 }
 0xf41   :  { %4913 = vmatpush3.bf16.msra.mxu0 %v1173_v20  ;;  %v5577_v0 = vpop.eup %5576  ;;  %v1157_v32 = vmul.f32 %v5575_v30, %v5563_v55 }
 0xf42   :  { %4914 = vmatprep.subr.bf16.mxu0 %v1171_v8  ;;  %v5579_v13 = vpop.eup %5578  ;;  %v1159_v37 = vmul.f32 %v5577_v0, %v5561_v53 }
 0xf43   :  { %v1164_v16 = vpack.c.bf16 %v1157_v32, %v1156_v29  ;;  %v1158_v42 = vmul.f32 %v5579_v13, %v6216_v40 }
 0xf44   :  { %v5581_v3 = vpop.eup %5580 }
 0xf45   :  { %4915 = vmatpush3.bf16.msra.mxu0 %v1171_v8  ;;  %4918 = vmatprep.mubr.msk.bf16.mxu0 %vm322_vm7, %v1164_v16  ;;  %v1165_v19 = vpack.c.bf16 %v1159_v37, %v1158_v42  ;;  %v1160_v22 = vmul.f32 %v5581_v3, %v5567_v57  ;;  %v6275_v8 = vld [vmem:[%s7190_s1] sm:$0xff] }
 0xf46   :  { %4916 = vmatprep.subr.bf16.mxu0 %v1169_v14  ;;  %v1622_v29 = vsel %vm59_vm0, %v6275_v8, 0.0 }
 0xf49   :  { %v5583_v17 = vpop.eup %5582  ;;  %4917 = vmatpush3.bf16.msra.mxu0 %v1169_v14 }
 0xf4a   :  { %v1161_v46 = vmul.f32 %v5583_v17, %v5571_v61  ;;  %4926 = vmatprep.subr.bf16.mxu0 %v5826_v15  ;;  %v5585_v23 = vpop.eup %5584 }
 0xf4b   :  { %v5587_v26 = vpop.eup %5586  ;;  %v1163_v52 = vmul.f32 %v5585_v23, %v5569_v59 }
 0xf4c   :  { %4919 = vmatmul.mubr.msk.bf16.vlgmr.msra.gmra.mxu0 %vm322_vm7, %v1165_v19  ;;  %v1166_v25 = vpack.c.bf16 %v1161_v46, %v1160_v22  ;;  %v1162_v27 = vmul.f32 %v5587_v26, %v6222_v56 }
 0xf4d   :  { %4927 = vmatpush3.bf16.msra.mxu0 %v5460_v62 }
 0xf4e   :  { %4922 = vmatprep.mubr.msk.bf16.mxu0 %vm322_vm7, %v1166_v25  ;;  %v1167_v28 = vpack.c.bf16 %v1163_v52, %v1162_v27  ;;  %4928 = vmatprep.subr.bf16.mxu0 %v5826_v15 }
 0xf51   :  { %4929 = vmatpush3.bf16.msra.mxu0 %v5461_v35 }
 0xf52   :  { %4934 = vmatprep.subr.bf16.mxu0 %v5826_v15 }
 0xf54   :  { %4923 = vmatmul.mubr.msk.bf16.gmra.mxu0 %vm322_vm7, %v1167_v28 }
 0xf55   :  { %4930 = vmatprep.mubr.msk.bf16.mxu0 %vm5827_vm1, %v5826_v15 }
0x100c   :  { %v4920_v33 = vpop.f32.mrf.mxu0 }
0x100e   :  { %v1226_v34 = vpop.f32.mrf.mxu0 }
0x1010   :  { %v4921_v31 = vpop.f32.mrf.mxu0 }
0x1011   :  { %v5283_v36 = vpack.i.bf16 %v4921_v31, %v4920_v33  ;;  %v5462_v31 = vld [vmem:[%s7194_s5 + $0x90] sm:$0xff]  }
0x1012   :  { %v1229_v38 = vpop.f32.mrf.mxu0 }
0x1013   :  { %5284 = vrot.lane.b32.xlu1 %v5283_v36, %s5833_s23  ;;  %v5463_v36 = vld [vmem:[%s7194_s5 + $0x88] sm:$0xff]  }
0x1014   :  { %v4924_v39 = vpop.f32.mrf.mxu0 }
0x1016   :  { %v1242_v40 = vpop.f32.mrf.mxu0 }
0x1018   :  { %v4925_v41 = vpop.f32.mrf.mxu0 }
0x1019   :  { %v5293_v43 = vpack.i.bf16 %v4925_v41, %v4924_v39 }
0x101a   :  { %v1245_v44 = vpop.f32.mrf.mxu0 }
0x101b   :  { %v5288_v45 = vpack.i.bf16 %v1245_v44, %v1242_v40  ;;  %5294 = vrot.lane.b32.xlu1 %v5293_v43, %s5834_s24 }
0x101d   :  { %5289 = vrot.lane.b32.xlu0 %v5288_v45, %s5835_s25 }
0x1085   :  { %v5285_v47 = vpop.permute.xlu1 %5284 }
0x1086   :  { %v5287_v49 = vunpack.i.h.bf16 %v5285_v47  ;;  %v5286_v50 = vunpack.i.l.bf16 %v5285_v47 }
0x1088   :  { %v1281_v56 = vsel %vm216_vm6, %v1226_v34, %v5286_v50  ;;  %v1282_v58 = vsel %vm216_vm6, %v1229_v38, %v5287_v49  ;;  %v5466_v38 = vld [vmem:[%s7194_s5 + $0xb4] sm:$0xff]  }
0x1089   :  { %4943 = vmatpush3.bf16.msra.mxu1 %v5466_v38  ;;  %v5468_v38 = vld [vmem:[%s7194_s5 + $0xa4] sm:$0xff]  }
0x108a   :  { %4944 = vmatprep.subr.bf16.mxu1 %v5826_v15 }
0x108d   :  { %v5295_v51 = vpop.permute.xlu1 %5294 }
0x108e   :  { %v5297_v7 = vunpack.i.h.bf16 %v5295_v51  ;;  %v5296_v57 = vunpack.i.l.bf16 %v5295_v51 }
0x108f   :  { %v5290_v53 = vpop.permute.xlu0 %5289 }
0x1090   :  { %v5292_v54 = vunpack.i.h.bf16 %v5290_v53  ;;  %v5291_v55 = vunpack.i.l.bf16 %v5290_v53 }
0x1092   :  { %v1284_v59 = vsel %vm530_vm8, %v1282_v58, %v5292_v54  ;;  %v1283_v2 = vsel %vm530_vm8, %v1281_v56, %v5291_v55 }
0x1093   :  { %v1286_v60 = vsel %vm533_vm9, %v1284_v59, %v5297_v7  ;;  %v1285_v61 = vsel %vm533_vm9, %v1283_v2, %v5296_v57 }
0x1094   :  { %v1292_v63 = vpack.c.bf16 %v1286_v60, %v1285_v61 }
0x1096   :  { %4931 = vmatmul.mubr.msk.bf16.vlgmr.msra.gmra.mxu0 %vm59_vm0, %v1292_v63 }
0x1097   :  { %4938 = vmatprep.mubr.msk.bf16.mxu0 %vm5827_vm1, %v5826_v15  ;;  %4935 = vmatpush3.bf16.msra.mxu0 %v5462_v31 }
0x1098   :  { %4936 = vmatprep.subr.bf16.mxu0 %v5826_v15 }
0x109b   :  { %4937 = vmatpush3.bf16.msra.mxu0 %v5463_v36  ;;  %v5467_v36 = vld [vmem:[%s7194_s5 + $0xac] sm:$0xff]  }
0x109c   :  { %4954 = vmatprep.subr.bf16.mxu0 %v5826_v15  ;;  %4945 = vmatpush3.bf16.msra.mxu1 %v5467_v36 }
0x109d   :  { %4946 = vmatprep.subr.bf16.mxu1 %v5826_v15 }
0x10a0   :  { %4947 = vmatpush3.bf16.msra.mxu1 %v5468_v38 }
0x10a1   :  { %4948 = vmatprep.subr.bf16.mxu1 %v5826_v15 }
0x1156   :  { %v1347_v6 = vpop.f32.mrf.mxu0 }
0x1157   :  { %v1348_v21 = vadd.f32 %v1347_v6, %v1297_v5 }
0x1158   :  { %v4932_v9 = vpop.f32.mrf.mxu0 }
0x1159   :  { %v6270_v10 = vadd.f32 %v1348_v21, %v6129_v1  ;;  %v6287_v1 = vld [vmem:[%s7190_s1 + $0x8] sm:$0xff] }
0x115a   :  { %v1350_v11 = vpop.f32.mrf.mxu0  ;;  %v1625_v13 = vsel %vm59_vm0, %v6287_v1, 0.0 }
0x115b   :  { %v1351_v20 = vadd.f32 %v1350_v11, %v1297_v5  ;;  %v1358_v12 = vsel %vm59_vm0, %v6270_v10, 0.0 }
0x115c   :  { %1359 = vadd.xlane.f32.xlu0 %v1358_v12  ;;  %v4933_v30 = vpop.f32.mrf.mxu0 }
0x115d   :  { %v6280_v0 = vadd.f32 %v1351_v20, %v6134_v24 }
0x115f   :  { %v1361_v32 = vsel %vm59_vm0, %v6280_v0, 0.0 }
0x1160   :  { %1623 = vadd.xlane.f32.xlu0 %v1622_v29  ;;  %1362 = vadd.xlane.f32.xlu1 %v1361_v32  ;;  %v4491_v29 = vld [vmem:[%s7196_s7 + $0x6] ss:$0 sm:$0xff] }
0x1164   :  { %1626 = vadd.xlane.f32.xlu0 %v1625_v13 }
0x11e5   :  { %v1360_v14 = vpop.xlane.xlu0 %1359 }
0x11e6   :  { %v1364_v24 = vmul.f32 0.03125, %v1360_v14  ;;  %v4517_v14 = vld [vmem:[%s7196_s7 + $0xa] ss:$0 sm:$0xff] }
0x11e8   :  { %v6294_v16 = vsub.f32 %v6270_v10, %v1364_v24 }
0x11e9   :  { %v1624_v37 = vpop.xlane.xlu0 %1623  ;;  %v1363_v3 = vpop.xlane.xlu1 %1362 }
0x11ea   :  { %v1628_v42 = vmul.f32 0.03125, %v1624_v37  ;;  %v1365_v17 = vmul.f32 0.03125, %v1363_v3  ;;  %v1368_v19 = vmul.f32 %v6294_v16, %v6294_v16  ;;  %v1400_v13 = vmul.f32 %v4491_v29, %v6294_v16 }
0x11ec   :  { %v6299_v22 = vsub.f32 %v6275_v8, %v1628_v42  ;;  %v6302_v46 = vsub.f32 %v6280_v0, %v1365_v17  ;;  %v1370_v23 = vsel %vm59_vm0, %v1368_v19, 0.0  ;;  %v4492_v17 = vld [vmem:[%s7196_s7 + $0x7] ss:$0 sm:$0xff] }
0x11ed   :  { %1371 = vadd.xlane.f32.xlu0 %v1370_v23  ;;  %v1627_v25 = vpop.xlane.xlu0 %1626 }
0x11ee   :  { %v1629_v26 = vmul.f32 0.03125, %v1627_v25  ;;  %v1632_v52 = vmul.f32 %v6299_v22, %v6299_v22  ;;  %v1369_v27 = vmul.f32 %v6302_v46, %v6302_v46  ;;  %v1401_v37 = vmul.f32 %v4491_v29, %v6302_v46  ;;  %v4518_v46 = vld [vmem:[%s7196_s7 + $0xb] ss:$0 sm:$0xff] }
0x11ef   :  { %v1664_v19 = vmul.f32 %v4517_v14, %v6299_v22 }
0x11f0   :  { %v6310_v28 = vsub.f32 %v6287_v1, %v1629_v26  ;;  %v1634_v62 = vsel %vm59_vm0, %v1632_v52, 0.0  ;;  %v1373_v33 = vsel %vm59_vm0, %v1369_v27, 0.0 }
0x11f1   :  { %1635 = vadd.xlane.f32.xlu0 %v1634_v62  ;;  %1374 = vadd.xlane.f32.xlu1 %v1373_v33  ;;  %v5464_v62 = vld [vmem:[%s7195_s6 + $0x8] sm:$0xff]  }
0x11f2   :  { %v1633_v34 = vmul.f32 %v6310_v28, %v6310_v28  ;;  %v1665_v25 = vmul.f32 %v4517_v14, %v6310_v28  ;;  %v5465_v28 = vld [vmem:[%s7195_s6] sm:$0xff]  }
0x11f4   :  { %v1637_v35 = vsel %vm59_vm0, %v1633_v34, 0.0 }
0x11f5   :  { %1638 = vadd.xlane.f32.xlu1 %v1637_v35 }
0x1276   :  { %v1372_v39 = vpop.xlane.xlu0 %1371 }
0x1277   :  { %v1376_v40 = vmul.f32 0.032258064, %v1372_v39  ;;  %v5469_v39 = vld [vmem:[%s7194_s5 + $0x9c] sm:$0xff]  }
0x1278   :  { %4949 = vmatpush3.bf16.msra.mxu1 %v5469_v39 }
0x1279   :  { %5588 = vrsqrt.f32 %v1376_v40  ;;  %vm1380_vm4 = vcmp.eq.f32.partialorder %v1376_v40, inf  ;;  %v1383_v53 = vand.u32 2147483648, %v1376_v40  ;;  %vm1382_vm5 = vcmp.eq.f32.partialorder %v1376_v40, 0.0 }
0x127a   :  { %v1636_v41 = vpop.xlane.xlu0 %1635  ;;  %v1375_v44 = vpop.xlane.xlu1 %1374 }
0x127b   :  { %v1640_v43 = vmul.f32 0.032258064, %v1636_v41  ;;  %v1377_v45 = vmul.f32 0.032258064, %v1375_v44 }
0x127d   :  { %5590 = vrsqrt.f32 %v1640_v43  ;;  %vm1644_vm10 = vcmp.eq.f32.partialorder %v1640_v43, inf  ;;  %v1647_v59 = vand.u32 2147483648, %v1640_v43  ;;  %vm1646_vm11 = vcmp.eq.f32.partialorder %v1640_v43, 0.0 }
0x127e   :  { %5592 = vrsqrt.f32 %v1377_v45  ;;  %v1639_v47 = vpop.xlane.xlu1 %1638  ;;  %vm1387_vm12 = vcmp.eq.f32.partialorder %v1377_v45, inf  ;;  %v1390_v61 = vand.u32 2147483648, %v1377_v45  ;;  %vm1389_vm13 = vcmp.eq.f32.partialorder %v1377_v45, 0.0 }
0x127f   :  { %v1641_v49 = vmul.f32 0.032258064, %v1639_v47  ;;  %v1678_v47 = vld [vmem:[%s7195_s6 + $0x10] sm:$0x1] }
0x1281   :  { %5594 = vrsqrt.f32 %v1641_v49  ;;  %vm1651_vm14 = vcmp.eq.f32.partialorder %v1641_v49, inf  ;;  %v1654_v11 = vand.u32 2147483648, %v1641_v49  ;;  %vm1653_vm15 = vcmp.eq.f32.partialorder %v1641_v49, 0.0 }
0x1286   :  { %v5589_v50 = vpop.eup %5588 }
0x1287   :  { %v1379_v51 = vmul.f32 %v5589_v50, %v1376_v40 }
0x1289   :  { %v1381_v54 = vsel %vm1380_vm4, %v1376_v40, %v1379_v51  ;;  %v4497_v40 = vld [vmem:[%s7194_s5 + $0x98] sm:$0x1] }
0x128a   :  { %v5591_v55 = vpop.eup %5590  ;;  %v1384_v56 = vsel %vm1382_vm5, %v1383_v53, %v1381_v54  ;;  %v1416_v41 = vunpack.c.l.bf16 %v4497_v40  ;;  %v1680_v53 = vunpack.c.l.bf16 %v1678_v47 }
0x128b   :  { %v5593_v58 = vpop.eup %5592  ;;  %v1392_v7 = vadd.f32 1e-06, %v1384_v56  ;;  %v1643_v57 = vmul.f32 %v5591_v55, %v1640_v43 }
0x128c   :  { %v1386_v2 = vmul.f32 %v5593_v58, %v1377_v45 }
0x128d   :  { %v1645_v60 = vsel %vm1644_vm10, %v1640_v43, %v1643_v57  ;;  %5596 = vrcp.f32 %v1392_v7  ;;  %v1420_v43 = vrot.slane %v1416_v41, %v5921_v48  ;;  %v1684_v57 = vrot.slane %v1680_v53, %v5921_v48  ;;  %v40_v41 = vld [vmem:[%s7192_s3 + $0x8] sm:$0xff]  ;;  %v43_v53 = vld [vmem:[%s7192_s3 + $0x20] sm:$0xff] }
0x128e   :  { %v1648_v63 = vsel %vm1646_vm11, %v1647_v59, %v1645_v60  ;;  %v1388_v4 = vsel %vm1387_vm12, %v1377_v45, %v1386_v2  ;;  %v5595_v18 = vpop.eup %5594 }
0x128f   :  { %v1656_v5 = vadd.f32 1e-06, %v1648_v63  ;;  %v1391_v6 = vsel %vm1389_vm13, %v1390_v61, %v1388_v4  ;;  %v1650_v9 = vmul.f32 %v5595_v18, %v1641_v49 }
0x1290   :  { %v1393_v21 = vadd.f32 1e-06, %v1391_v6 }
0x1291   :  { %5598 = vrcp.f32 %v1656_v5  ;;  %v1652_v20 = vsel %vm1651_vm14, %v1641_v49, %v1650_v9 }
0x1292   :  { %5600 = vrcp.f32 %v1393_v21  ;;  %v1655_v12 = vsel %vm1653_vm15, %v1654_v11, %v1652_v20 }
0x1293   :  { %v1657_v30 = vadd.f32 1e-06, %v1655_v12 }
0x1295   :  { %5602 = vrcp.f32 %v1657_v30 }
0x129a   :  { %v5597_v32 = vpop.eup %5596 }
0x129b   :  { %v1402_v3 = vmul.f32 %v5597_v32, %v1400_v13 }
0x129d   :  { %v1408_v26 = vadd.f32 %v4492_v17, %v1402_v3 }
0x129e   :  { %v5599_v24 = vpop.eup %5598 }
0x129f   :  { %v5601_v42 = vpop.eup %5600  ;;  %v1666_v52 = vmul.f32 %v5599_v24, %v1664_v19 }
0x12a0   :  { %v1403_v23 = vmul.f32 %v5601_v42, %v1401_v37 }
0x12a1   :  { %v1672_v22 = vadd.f32 %v4518_v46, %v1666_v52 }
0x12a2   :  { %v1409_v16 = vadd.f32 %v4492_v17, %v1403_v23  ;;  %v5603_v27 = vpop.eup %5602 }
0x12a3   :  { %v1667_v34 = vmul.f32 %v5603_v27, %v1665_v25 }
0x12a4   :  { %v1415_v33 = vpack.c.bf16 %v1409_v16, %v1408_v26 }
0x12a5   :  { %v1673_v35 = vadd.f32 %v4518_v46, %v1667_v34  ;;  %v41_v46 = vld [vmem:[%s7192_s3 + $0x10] sm:$0xff] }
0x12a6   :  { %4939 = vmatmul.mubr.msk.bf16.vlgmr.msra.gmra.mxu0 %vm59_vm0, %v1415_v33 }
0x12a7   :  { %4955 = vmatpush3.bf16.msra.mxu0 %v5464_v62  ;;  %4958 = vmatprep.mubr.msk.bf16.mxu0 %vm5827_vm1, %v5826_v15  ;;  %v1679_v31 = vpack.c.bf16 %v1673_v35, %v1672_v22  ;;  %v39_v22 = vld [vmem:[%s7192_s3] sm:$0xff] }
0x12a8   :  { %4956 = vmatprep.subr.bf16.mxu0 %v5826_v15 }
0x12ab   :  { %4957 = vmatpush3.bf16.msra.mxu0 %v5465_v28 }
0x12ae   :  { %4959 = vmatmul.mubr.msk.bf16.vlgmr.msra.gmra.mxu0 %vm59_vm0, %v1679_v31 }
0x1366   :  { %v1470_v44 = vpop.f32.mrf.mxu0 }
0x1367   :  { %v1471_v49 = vadd.f32 %v1470_v44, %v1420_v43 }
0x1368   :  { %v4940_v45 = vpop.f32.mrf.mxu0 }
0x1369   :  { %v1477_v55 = vmax.f32 %v1471_v49, 0.0  ;;  %v42_v45 = vld [vmem:[%s7192_s3 + $0x18] sm:$0xff] }
0x136a   :  { %v1473_v50 = vpop.f32.mrf.mxu0 }
0x136b   :  { %v1474_v51 = vadd.f32 %v1473_v50, %v1420_v43 }
0x136c   :  { %v4941_v54 = vpop.f32.mrf.mxu0 }
0x136d   :  { %v1478_v56 = vmax.f32 %v1474_v51, 0.0 }
0x136e   :  { %v1734_v58 = vpop.f32.mrf.mxu0 }
0x136f   :  { %v1488_v7 = vpack.c.bf16 %v1478_v56, %v1477_v55  ;;  %v1735_v60 = vadd.f32 %v1734_v58, %v1684_v57 }
0x1370   :  { %v4960_v59 = vpop.f32.mrf.mxu0 }
0x1371   :  { %4951 = vmatmul.mubr.msk.bf16.vlgmr.msra.gmra.mxu1 %vm322_vm7, %v1488_v7  ;;  %v45_v7 = vld [vmem:[%s7192_s3 + $0x30] sm:$0xff] }
0x1372   :  { %v1737_v2 = vpop.f32.mrf.mxu0 }
0x1373   :  { %v1738_v61 = vadd.f32 %v1737_v2, %v1684_v57 }
0x1374   :  { %v4961_v63 = vpop.f32.mrf.mxu0 }
0x1375   :  { %v5303_v4 = vpack.i.bf16 %v1738_v61, %v1735_v60  ;;  %v6376_v18 = vpack.c.bf16 %v1738_v61, %v1735_v60  ;;  %v44_v60 = vld [vmem:[%s7192_s3 + $0x28] sm:$0xff] }
0x1377   :  { %5304 = vrot.lane.b32.xlu1 %v5303_v4, %s5828_s18  ;;  %5299 = vrot.lane.b32.xlu0 %v5303_v4, %s5829_s19 }
0x1378   :  { %4970 = vmatprep.mubr.msk.bf16.mxu1 %vm216_vm6, %v6376_v18 }
0x137b   :  { %5309 = vrot.lane.b32.xlu1 %v5303_v4, %s5830_s20 }
0x13e9   :  { %v5305_v5 = vpop.permute.xlu1 %5304  ;;  %v5300_v6 = vpop.permute.xlu0 %5299 }
0x13ea   :  { %v5307_v21 = vunpack.i.h.bf16 %v5305_v5  ;;  %v5306_v9 = vunpack.i.l.bf16 %v5305_v5  ;;  %v5302_v11 = vunpack.i.h.bf16 %v5300_v6  ;;  %v5301_v20 = vunpack.i.l.bf16 %v5300_v6  ;;  %v46_v6 = vld [vmem:[%s7192_s3 + $0x38] sm:$0xff] }
0x13ec   :  { %v6383_v12 = vpack.c.bf16 %v5307_v21, %v5306_v9  ;;  %v6385_v30 = vpack.c.bf16 %v5302_v11, %v5301_v20 }
0x13ed   :  { %v5310_v29 = vpop.permute.xlu1 %5309 }
0x13ee   :  { %v5312_v32 = vunpack.i.h.bf16 %v5310_v29  ;;  %v5311_v13 = vunpack.i.l.bf16 %v5310_v29  ;;  %1773 = vrot.lane.b32.xlu0 %v6383_v12, %s5831_s21  ;;  %1775 = vrot.lane.b32.xlu1 %v6385_v30, %s5831_s21 }
0x13f0   :  { %v6391_v14 = vpack.c.bf16 %v5312_v32, %v5311_v13 }
0x13f2   :  { %1771 = vrot.lane.b32.xlu1 %v6391_v14, %s5831_s21  ;;  %1769 = vrot.lane.b32.xlu0 %v6376_v18, %s5831_s21 }
0x1431   :  { %v6397_v24 = vpop.f32.mrf.mxu1 }
0x1433   :  { %v4952_v37 = vpop.f32.mrf.mxu1 }
0x1435   :  { %v6399_v3 = vpop.f32.mrf.mxu1 }
0x1437   :  { %v4953_v42 = vpop.f32.mrf.mxu1 }
0x1460   :  { %v1776_v17 = vpop.permute.xlu1 %1775  ;;  %v1774_v23 = vpop.permute.xlu0 %1773 }
0x1461   :  { %5210 = vmatprep.subr.msk.bf16.mxu1 %vm216_vm6, %v1776_v17  ;;  %v1799_v19 = vsel %vm216_vm6, %v1776_v17, 0  ;;  %v1796_v25 = vsel %vm216_vm6, %v1774_v23, 0 }
0x1462   :  { %4963 = vmatpush3.bf16.xpose.msra.mxu1 %v1799_v19 }
0x1463   :  { %5211 = vmatprep.subr.msk.bf16.mxu1 %vm216_vm6, %v1774_v23 }
0x1464   :  { %v1772_v26 = vpop.permute.xlu1 %1771  ;;  %v1770_v52 = vpop.permute.xlu0 %1769 }
0x1465   :  { %v1793_v16 = vsel %vm216_vm6, %v1772_v26, 0  ;;  %v1790_v27 = vsel %vm216_vm6, %v1770_v52, 0 }
0x146a   :  { %4965 = vmatpush3.bf16.xpose.msra.mxu1 %v1796_v25 }
0x146b   :  { %5212 = vmatprep.subr.msk.bf16.mxu1 %vm216_vm6, %v1772_v26 }
0x1472   :  { %4967 = vmatpush3.bf16.xpose.msra.mxu1 %v1793_v16 }
0x1473   :  { %5213 = vmatprep.subr.msk.bf16.mxu1 %vm216_vm6, %v1770_v52 }
0x147a   :  { %4969 = vmatpush3.bf16.xpose.msra.mxu1 %v1790_v27 }
0x147b   :  { %5010 = vmatprep.subr.bf16.mxu1 %v5826_v15 }
0x1481   :  { %4971 = vmatmul.mubr.msk.bf16.vlgmr.msra.gmra.mxu1 %vm216_vm6, %v6391_v14 }
0x1482   :  { %4974 = vmatprep.mubr.msk.bf16.mxu1 %vm216_vm6, %v6383_v12 }
0x1489   :  { %4975 = vmatmul.mubr.msk.bf16.gmra.mxu1 %vm216_vm6, %v6385_v30 }
0x148a   :  { %5014 = vmatprep.mubr.msk.bf16.mxu1 %vm5827_vm1, %v5826_v15 }
0x1541   :  { %v4972_v62 = vpop.f32.mrf.mxu1 }
0x1542   :  { %v1868_v33 = vmul.f32 0.35355338, %v4972_v62 }
0x1543   :  { %v1835_v34 = vpop.f32.mrf.mxu1 }
0x1544   :  { %v1866_v35 = vmul.f32 0.35355338, %v1835_v34  ;;  %v1876_v28 = vadd.f32 %v1868_v33, %v41_v46 }
0x1545   :  { %v4973_v31 = vpop.f32.mrf.mxu1 }
0x1546   :  { %v1888_v36 = vsel %vm322_vm7, %v1876_v28, -inf  ;;  %v1874_v38 = vadd.f32 %v1866_v35, %v39_v22  ;;  %v1869_v39 = vmul.f32 0.35355338, %v4973_v31 }
0x1547   :  { %1889 = vmax.xlane.f32.xlu0 %v1888_v36  ;;  %v1838_v40 = vpop.f32.mrf.mxu1 }
0x1548   :  { %v1867_v43 = vmul.f32 0.35355338, %v1838_v40  ;;  %v1882_v44 = vsel %vm322_vm7, %v1874_v38, -inf  ;;  %v1877_v51 = vadd.f32 %v1869_v39, %v42_v45 }
0x1549   :  { %1883 = vmax.xlane.f32.xlu1 %v1882_v44  ;;  %v4976_v47 = vpop.f32.mrf.mxu1 }
0x154a   :  { %v1875_v49 = vadd.f32 %v1867_v43, %v40_v41  ;;  %v1872_v54 = vmul.f32 0.35355338, %v4976_v47  ;;  %v1891_v2 = vsel %vm322_vm7, %v1877_v51, -inf }
0x154b   :  { %v1851_v50 = vpop.f32.mrf.mxu1 }
0x154c   :  { %v1870_v55 = vmul.f32 0.35355338, %v1851_v50  ;;  %v1885_v56 = vsel %vm322_vm7, %v1875_v49, -inf  ;;  %v1880_v5 = vadd.f32 %v1872_v54, %v45_v7 }
0x154d   :  { %1886 = vmax.xlane.f32.xlu0 %v1885_v56  ;;  %v4977_v58 = vpop.f32.mrf.mxu1 }
0x154e   :  { %v1878_v57 = vadd.f32 %v1870_v55, %v43_v53  ;;  %v1873_v61 = vmul.f32 0.35355338, %v4977_v58  ;;  %v1900_v9 = vsel %vm322_vm7, %v1880_v5, -inf }
0x154f   :  { %v1854_v59 = vpop.f32.mrf.mxu1 }
0x1550   :  { %v1871_v63 = vmul.f32 0.35355338, %v1854_v59  ;;  %v1894_v4 = vsel %vm322_vm7, %v1878_v57, -inf  ;;  %v1881_v20 = vadd.f32 %v1873_v61, %v46_v6 }
0x1551   :  { %1892 = vmax.xlane.f32.xlu0 %v1891_v2  ;;  %1895 = vmax.xlane.f32.xlu1 %v1894_v4 }
0x1552   :  { %v1879_v21 = vadd.f32 %v1871_v63, %v44_v60  ;;  %v1903_v29 = vsel %vm322_vm7, %v1881_v20, -inf }
0x1554   :  { %v1897_v11 = vsel %vm322_vm7, %v1879_v21, -inf }
0x1555   :  { %1901 = vmax.xlane.f32.xlu1 %v1900_v9  ;;  %1898 = vmax.xlane.f32.xlu0 %v1897_v11 }
0x1559   :  { %1904 = vmax.xlane.f32.xlu0 %v1903_v29 }
0x1566   :  { %1980 = vrot.lane.b32.xlu1 %v6385_v30, %s5832_s15 }
0x15d0   :  { %v1890_v32 = vpop.xlane.xlu0 %1889 }
0x15d1   :  { %v1908_v13 = vsub.f32 %v1876_v28, %v1890_v32 }
0x15d2   :  { %v1884_v37 = vpop.xlane.xlu1 %1883 }
0x15d3   :  { %v1918_v42 = vmul.f32 1.442695, %v1908_v13  ;;  %v1906_v17 = vsub.f32 %v1874_v38, %v1884_v37 }
0x15d5   :  { %5604 = vpow2.f32 %v1918_v42  ;;  %v1914_v19 = vmul.f32 1.442695, %v1906_v17 }
0x15d6   :  { %v1887_v23 = vpop.xlane.xlu0 %1886 }
0x15d7   :  { %5606 = vpow2.f32 %v1914_v19  ;;  %v1907_v25 = vsub.f32 %v1875_v49, %v1887_v23 }
0x15d9   :  { %v1916_v27 = vmul.f32 1.442695, %v1907_v25 }
0x15da   :  { %v1893_v26 = vpop.xlane.xlu0 %1892  ;;  %v1896_v16 = vpop.xlane.xlu1 %1895 }
0x15db   :  { %v1909_v52 = vsub.f32 %v1877_v51, %v1893_v26  ;;  %v1910_v46 = vsub.f32 %v1878_v57, %v1896_v16 }
0x15dd   :  { %v1920_v62 = vmul.f32 1.442695, %v1909_v52  ;;  %v1922_v22 = vmul.f32 1.442695, %v1910_v46 }
0x15de   :  { %v1902_v33 = vpop.xlane.xlu1 %1901  ;;  %v1899_v34 = vpop.xlane.xlu0 %1898 }
0x15df   :  { %5608 = vpow2.f32 %v1920_v62  ;;  %v1912_v30 = vsub.f32 %v1880_v5, %v1902_v33  ;;  %v1911_v28 = vsub.f32 %v1879_v21, %v1899_v34 }
0x15e0   :  { %5610 = vpow2.f32 %v1916_v27 }
0x15e1   :  { %v1926_v35 = vmul.f32 1.442695, %v1912_v30  ;;  %v1924_v43 = vmul.f32 1.442695, %v1911_v28  ;;  %v5470_v30 = vld [vmem:[%s7195_s6 + $0x1c] sm:$0xff]   ;;  %v5471_v28 = vld [vmem:[%s7195_s6 + $0x14] sm:$0xff]  }
0x15e2   :  { %v6452_v31 = vpop.eup %5604  ;;  %v1981_v36 = vpop.permute.xlu1 %1980 }
0x15e3   :  { %v1905_v38 = vpop.xlane.xlu0 %1904  ;;  %5612 = vpow2.f32 %v1926_v35  ;;  %4978 = vmatprep.subr.bf16.mxu0 %v1981_v36  ;;  %v1936_v40 = vsel %vm322_vm7, %v6452_v31, 0.0 }
0x15e4   :  { %v1913_v39 = vsub.f32 %v1881_v20, %v1905_v38  ;;  %v5607_v41 = vpop.eup %5606  ;;  %1937 = vadd.xlane.f32.xlu1 %v1936_v40  ;;  %4979 = vmatpush3.bf16.msra.mxu0 %v1981_v36  ;;  %5614 = vpow2.f32 %v1922_v22 }
0x15e5   :  { %v1930_v45 = vsel %vm322_vm7, %v5607_v41, 0.0 }
0x15e6   :  { %v1928_v44 = vmul.f32 1.442695, %v1913_v39 }
0x15e8   :  { %5616 = vpow2.f32 %v1928_v44  ;;  %1931 = vadd.xlane.f32.xlu1 %v1930_v45 }
0x15e9   :  { %5618 = vpow2.f32 %v1924_v43 }
0x15ec   :  { %v5609_v47 = vpop.eup %5608 }
0x15ed   :  { %v1939_v49 = vsel %vm322_vm7, %v5609_v47, 0.0  ;;  %v5611_v50 = vpop.eup %5610 }
0x15ee   :  { %1940 = vadd.xlane.f32.xlu0 %v1939_v49  ;;  %v1933_v54 = vsel %vm322_vm7, %v5611_v50, 0.0 }
0x15f0   :  { %v6458_v51 = vpop.eup %5612 }
0x15f1   :  { %v1948_v53 = vsel %vm322_vm7, %v6458_v51, 0.0  ;;  %v5615_v55 = vpop.eup %5614 }
0x15f2   :  { %1949 = vadd.xlane.f32.xlu1 %v1948_v53  ;;  %1934 = vadd.xlane.f32.xlu0 %v1933_v54  ;;  %v1942_v58 = vsel %vm322_vm7, %v5615_v55, 0.0 }
0x15f5   :  { %v5617_v56 = vpop.eup %5616 }
0x15f6   :  { %v1951_v7 = vsel %vm322_vm7, %v5617_v56, 0.0  ;;  %v5619_v57 = vpop.eup %5618  ;;  %1943 = vadd.xlane.f32.xlu1 %v1942_v58 }
0x15f7   :  { %1952 = vadd.xlane.f32.xlu0 %v1951_v7  ;;  %v1945_v59 = vsel %vm322_vm7, %v5619_v57, 0.0 }
0x15fb   :  { %1946 = vadd.xlane.f32.xlu0 %v1945_v59 }
0x1607   :  { %1976 = vrot.lane.b32.xlu1 %v6391_v14, %s5832_s15 }
0x160b   :  { %1974 = vrot.lane.b32.xlu1 %v6376_v18, %s5832_s15 }
0x1611   :  { %1978 = vrot.lane.b32.xlu0 %v6383_v12, %s5832_s15 }
0x166d   :  { %v1938_v2 = vpop.xlane.xlu1 %1937 }
0x1671   :  { %v1932_v60 = vpop.xlane.xlu1 %1931 }
0x1672   :  { %5620 = vrcp.f32 %v1932_v60 }
0x1677   :  { %v1941_v61 = vpop.xlane.xlu0 %1940 }
0x167b   :  { %v1950_v63 = vpop.xlane.xlu1 %1949  ;;  %v1935_v4 = vpop.xlane.xlu0 %1934 }
0x167c   :  { %5622 = vrcp.f32 %v1935_v4 }
0x167d   :  { %5624 = vrcp.f32 %v1941_v61 }
0x167e   :  { %5626 = vrcp.f32 %v1938_v2 }
0x167f   :  { %v1944_v5 = vpop.xlane.xlu1 %1943  ;;  %v5621_v9 = vpop.eup %5620 }
0x1680   :  { %v1953_v6 = vpop.xlane.xlu0 %1952  ;;  %5628 = vrcp.f32 %v1944_v5  ;;  %v1962_v20 = vmul.f32 %v5621_v9, %v5607_v41 }
0x1683   :  { %v1977_v14 = vpop.permute.xlu1 %1976 }
0x1684   :  { %v1947_v21 = vpop.xlane.xlu0 %1946 }
0x1685   :  { %5630 = vrcp.f32 %v1947_v21 }
0x1686   :  { %5632 = vrcp.f32 %v1953_v6 }
0x1687   :  { %5634 = vrcp.f32 %v1950_v63  ;;  %v1975_v13 = vpop.permute.xlu1 %1974 }
0x1688   :  { %v1979_v18 = vpop.permute.xlu0 %1978 }
0x1689   :  { %4980 = vmatprep.subr.bf16.mxu0 %v1979_v18  ;;  %v5623_v12 = vpop.eup %5622 }
0x168a   :  { %4981 = vmatpush3.bf16.msra.mxu0 %v1979_v18  ;;  %v5625_v11 = vpop.eup %5624  ;;  %v1963_v29 = vmul.f32 %v5623_v12, %v5611_v50 }
0x168b   :  { %4982 = vmatprep.subr.bf16.mxu0 %v1977_v14  ;;  %v5627_v32 = vpop.eup %5626  ;;  %v1965_v42 = vmul.f32 %v5625_v11, %v5609_v47  ;;  %v4509_v47 = vld [vmem:[%s7194_s5 + $0xbc] sm:$0x1] }
0x168c   :  { %v1970_v37 = vpack.c.bf16 %v1963_v29, %v1962_v20  ;;  %v1964_v19 = vmul.f32 %v5627_v32, %v6452_v31  ;;  %v1489_v49 = vunpack.c.l.bf16 %v4509_v47  ;;  %v2097_v29 = vld [vmem:[%s7195_s6 + $0x24] sm:$0x1] }
0x168d   :  { %v5629_v17 = vpop.eup %5628  ;;  %v2099_v32 = vunpack.c.l.bf16 %v2097_v29 }
0x168e   :  { %4983 = vmatpush3.bf16.msra.mxu0 %v1977_v14  ;;  %4986 = vmatprep.mubr.msk.bf16.mxu0 %vm322_vm7, %v1970_v37  ;;  %v1971_v25 = vpack.c.bf16 %v1965_v42, %v1964_v19  ;;  %v1966_v26 = vmul.f32 %v5629_v17, %v5615_v55  ;;  %v1493_v50 = vrot.slane %v1489_v49, %v5921_v48 }
0x168f   :  { %4984 = vmatprep.subr.bf16.mxu0 %v1975_v13 }
0x1690   :  { %v1559_v53 = vadd.f32 %v6399_v3, %v1493_v50 }
0x1692   :  { %v5631_v23 = vpop.eup %5630  ;;  %4985 = vmatpush3.bf16.msra.mxu0 %v1975_v13  ;;  %v1563_v55 = vadd.f32 %v1559_v53, %v6280_v0  ;;  %v2103_v13 = vrot.slane %v2099_v32, %v5921_v48 }
0x1693   :  { %v1967_v16 = vmul.f32 %v5631_v23, %v5619_v57  ;;  %4994 = vmatprep.subr.bf16.mxu0 %v5826_v15  ;;  %v5633_v52 = vpop.eup %5632 }
0x1694   :  { %v5635_v62 = vpop.eup %5634  ;;  %v1969_v46 = vmul.f32 %v5633_v52, %v5617_v56  ;;  %v1569_v58 = vsel %vm59_vm0, %v1563_v55, 0.0 }
0x1695   :  { %4987 = vmatmul.mubr.msk.bf16.vlgmr.msra.gmra.mxu0 %vm322_vm7, %v1971_v25  ;;  %v1972_v27 = vpack.c.bf16 %v1967_v16, %v1966_v26  ;;  %v1968_v33 = vmul.f32 %v5635_v62, %v6458_v51  ;;  %v1556_v51 = vadd.f32 %v6397_v24, %v1493_v50 }
0x1696   :  { %4995 = vmatpush3.bf16.msra.mxu0 %v5470_v30 }
0x1697   :  { %4990 = vmatprep.mubr.msk.bf16.mxu0 %vm322_vm7, %v1972_v27  ;;  %v1973_v34 = vpack.c.bf16 %v1969_v46, %v1968_v33  ;;  %4996 = vmatprep.subr.bf16.mxu0 %v5826_v15  ;;  %v1562_v54 = vadd.f32 %v1556_v51, %v6270_v10 }
0x1699   :  { %v1566_v56 = vsel %vm59_vm0, %v1562_v54, 0.0 }
0x169a   :  { %4997 = vmatpush3.bf16.msra.mxu0 %v5471_v28 }
0x169b   :  { %5002 = vmatprep.subr.bf16.mxu0 %v5826_v15 }
0x169d   :  { %4991 = vmatmul.mubr.msk.bf16.gmra.mxu0 %vm322_vm7, %v1973_v34 }
0x169e   :  { %4998 = vmatprep.mubr.msk.bf16.mxu0 %vm5827_vm1, %v5826_v15 }
0x1755   :  { %v4988_v22 = vpop.f32.mrf.mxu0 }
0x1757   :  { %v2032_v35 = vpop.f32.mrf.mxu0 }
0x1759   :  { %v4989_v31 = vpop.f32.mrf.mxu0 }
0x175a   :  { %v5313_v36 = vpack.i.bf16 %v4989_v31, %v4988_v22  ;;  %v5473_v22 = vld [vmem:[%s7195_s6 + $0x3c] sm:$0xff]  }
0x175b   :  { %v2035_v38 = vpop.f32.mrf.mxu0 }
0x175c   :  { %5314 = vrot.lane.b32.xlu1 %v5313_v36, %s5833_s23 }
0x175d   :  { %v4992_v39 = vpop.f32.mrf.mxu0 }
0x175f   :  { %v2048_v40 = vpop.f32.mrf.mxu0 }
0x1761   :  { %v4993_v41 = vpop.f32.mrf.mxu0 }
0x1762   :  { %v5323_v43 = vpack.i.bf16 %v4993_v41, %v4992_v39 }
0x1763   :  { %v2051_v44 = vpop.f32.mrf.mxu0 }
0x1764   :  { %v5318_v45 = vpack.i.bf16 %v2051_v44, %v2048_v40  ;;  %5324 = vrot.lane.b32.xlu1 %v5323_v43, %s5834_s24 }
0x1766   :  { %5319 = vrot.lane.b32.xlu0 %v5318_v45, %s5835_s25 }
0x1785   :  { %1567 = vadd.xlane.f32.xlu0 %v1566_v56 }
0x1788   :  { %1570 = vadd.xlane.f32.xlu1 %v1569_v58 }
0x17ce   :  { %v5315_v7 = vpop.permute.xlu1 %5314 }
0x17cf   :  { %v5317_v57 = vunpack.i.h.bf16 %v5315_v7  ;;  %v5316_v59 = vunpack.i.l.bf16 %v5315_v7 }
0x17d1   :  { %v2087_v24 = vsel %vm216_vm6, %v2032_v35, %v5316_v59  ;;  %v2088_v3 = vsel %vm216_vm6, %v2035_v38, %v5317_v57 }
0x17d6   :  { %v5325_v2 = vpop.permute.xlu1 %5324 }
0x17d7   :  { %v5327_v10 = vunpack.i.h.bf16 %v5325_v2  ;;  %v5326_v4 = vunpack.i.l.bf16 %v5325_v2 }
0x17d8   :  { %v5320_v60 = vpop.permute.xlu0 %5319 }
0x17d9   :  { %v5322_v61 = vunpack.i.h.bf16 %v5320_v60  ;;  %v5321_v63 = vunpack.i.l.bf16 %v5320_v60 }
0x17db   :  { %v2090_v0 = vsel %vm530_vm8, %v2088_v3, %v5322_v61  ;;  %v2089_v5 = vsel %vm530_vm8, %v2087_v24, %v5321_v63  ;;  %v4515_v63 = vld [vmem:[%s7196_s7 + $0x8] ss:$0 sm:$0xff] }
0x17dc   :  { %v2092_v6 = vsel %vm533_vm9, %v2090_v0, %v5327_v10  ;;  %v2091_v21 = vsel %vm533_vm9, %v2089_v5, %v5326_v4  ;;  %v4516_v0 = vld [vmem:[%s7196_s7 + $0x9] ss:$0 sm:$0xff] }
0x17dd   :  { %v2098_v14 = vpack.c.bf16 %v2092_v6, %v2091_v21  ;;  %v5474_v6 = vld [vmem:[%s7195_s6 + $0x30] sm:$0xff]  }
0x17df   :  { %4999 = vmatmul.mubr.msk.bf16.vlgmr.msra.gmra.mxu0 %vm59_vm0, %v2098_v14 }
0x17e0   :  { %5006 = vmatprep.mubr.msk.bf16.mxu0 %vm5827_vm1, %v5826_v15  ;;  %5003 = vmatpush3.bf16.msra.mxu0 %v5474_v6 }
0x17e1   :  { %5004 = vmatprep.subr.bf16.mxu0 %v5826_v15 }
0x180e   :  { %v1568_v37 = vpop.xlane.xlu0 %1567 }
0x180f   :  { %v1572_v17 = vmul.f32 0.03125, %v1568_v37 }
0x1811   :  { %v1571_v18 = vpop.xlane.xlu1 %1570  ;;  %v1574_v16 = vsub.f32 %v1562_v54, %v1572_v17 }
0x1812   :  { %v1573_v9 = vmul.f32 0.03125, %v1571_v18  ;;  %v5475_v18 = vld [vmem:[%s7195_s6 + $0x28] sm:$0xff]  }
0x1813   :  { %v1576_v34 = vmul.f32 %v1574_v16, %v1574_v16  ;;  %v1608_v3 = vmul.f32 %v4515_v63, %v1574_v16  ;;  %5005 = vmatpush3.bf16.msra.mxu0 %v5475_v18 }
0x1814   :  { %v6511_v12 = vsub.f32 %v1563_v55, %v1573_v9 }
0x1815   :  { %v1578_v30 = vsel %vm59_vm0, %v1576_v34, 0.0 }
0x1816   :  { %v1577_v11 = vmul.f32 %v6511_v12, %v6511_v12  ;;  %v1609_v24 = vmul.f32 %v4515_v63, %v6511_v12 }
0x1818   :  { %v1581_v20 = vsel %vm59_vm0, %v1577_v11, 0.0 }
0x1819   :  { %1582 = vadd.xlane.f32.xlu1 %v1581_v20 }
0x189f   :  { %v2153_v42 = vpop.f32.mrf.mxu0 }
0x18a0   :  { %v2154_v19 = vadd.f32 %v2153_v42, %v2103_v13 }
0x18a1   :  { %v5000_v23 = vpop.f32.mrf.mxu0 }
0x18a2   :  { %v6521_v25 = vadd.f32 %v2154_v19, %v6275_v8  ;;  %v5472_v8 = vld [vmem:[%s7195_s6 + $0x44] sm:$0xff]  }
0x18a3   :  { %v2156_v26 = vpop.f32.mrf.mxu0  ;;  %5011 = vmatpush3.bf16.msra.mxu1 %v5472_v8 }
0x18a4   :  { %v2157_v52 = vadd.f32 %v2156_v26, %v2103_v13  ;;  %v2164_v27 = vsel %vm59_vm0, %v6521_v25, 0.0  ;;  %5012 = vmatprep.subr.bf16.mxu1 %v5826_v15 }
0x18a5   :  { %2165 = vadd.xlane.f32.xlu0 %v2164_v27  ;;  %v5001_v62 = vpop.f32.mrf.mxu0 }
0x18a6   :  { %v6526_v46 = vadd.f32 %v2157_v52, %v6287_v1  ;;  %v1583_v1 = vpop.xlane.xlu1 %1582 }
0x18a7   :  { %5013 = vmatpush3.bf16.msra.mxu1 %v5473_v22  ;;  %v1585_v35 = vmul.f32 0.032258064, %v1583_v1 }
0x18a8   :  { %v2167_v33 = vsel %vm59_vm0, %v6526_v46, 0.0 }
0x18a9   :  { %2168 = vadd.xlane.f32.xlu0 %v2167_v33  ;;  %5636 = vrsqrt.f32 %v1585_v35  ;;  %vm1595_vm2 = vcmp.eq.f32.partialorder %v1585_v35, inf  ;;  %v1598_v54 = vand.u32 2147483648, %v1585_v35  ;;  %vm1597_vm3 = vcmp.eq.f32.partialorder %v1585_v35, 0.0  ;;  %v4533_v33 = vld [vmem:[%s7196_s7 + $0xc] ss:$0 sm:$0xff] }
0x18ad   :  { %1579 = vadd.xlane.f32.xlu0 %v1578_v30 }
0x18b6   :  { %v5637_v49 = vpop.eup %5636 }
0x18b7   :  { %v1594_v51 = vmul.f32 %v5637_v49, %v1585_v35 }
0x18b9   :  { %v1596_v53 = vsel %vm1595_vm2, %v1585_v35, %v1594_v51  ;;  %v4534_v35 = vld [vmem:[%s7196_s7 + $0xd] ss:$0 sm:$0xff] }
0x18ba   :  { %v1599_v55 = vsel %vm1597_vm3, %v1598_v54, %v1596_v53 }
0x18bb   :  { %v1601_v56 = vadd.f32 1e-06, %v1599_v55 }
0x192e   :  { %v2166_v28 = vpop.xlane.xlu0 %2165 }
0x192f   :  { %v2170_v31 = vmul.f32 0.03125, %v2166_v28 }
0x1931   :  { %v6539_v36 = vsub.f32 %v6521_v25, %v2170_v31 }
0x1932   :  { %v2169_v38 = vpop.xlane.xlu0 %2168 }
0x1933   :  { %v2171_v39 = vmul.f32 0.03125, %v2169_v38  ;;  %v2174_v40 = vmul.f32 %v6539_v36, %v6539_v36  ;;  %v2206_v30 = vmul.f32 %v4533_v33, %v6539_v36 }
0x1935   :  { %v6544_v41 = vsub.f32 %v6526_v46, %v2171_v39  ;;  %v2176_v43 = vsel %vm59_vm0, %v2174_v40, 0.0  ;;  %v2287_v40 = vld [vmem:[%s7195_s6 + $0x4c] sm:$0x1] }
0x1936   :  { %2177 = vadd.xlane.f32.xlu0 %v2176_v43  ;;  %v1580_v44 = vpop.xlane.xlu0 %1579  ;;  %v2289_v43 = vunpack.c.l.bf16 %v2287_v40 }
0x1937   :  { %v1584_v45 = vmul.f32 0.032258064, %v1580_v44  ;;  %v2175_v47 = vmul.f32 %v6544_v41, %v6544_v41  ;;  %v2207_v8 = vmul.f32 %v4533_v33, %v6544_v41 }
0x1938   :  { %v2293_v41 = vrot.slane %v2289_v43, %v5921_v48 }
0x1939   :  { %5638 = vrsqrt.f32 %v1584_v45  ;;  %v2179_v50 = vsel %vm59_vm0, %v2175_v47, 0.0  ;;  %vm1588_vm4 = vcmp.eq.f32.partialorder %v1584_v45, inf  ;;  %v1591_v57 = vand.u32 2147483648, %v1584_v45 }
0x193a   :  { %2180 = vadd.xlane.f32.xlu1 %v2179_v50  ;;  %5640 = vrcp.f32 %v1601_v56  ;;  %vm1590_vm5 = vcmp.eq.f32.partialorder %v1584_v45, 0.0 }
0x1946   :  { %v5639_v58 = vpop.eup %5638 }
0x1947   :  { %v1587_v7 = vmul.f32 %v5639_v58, %v1584_v45  ;;  %v5641_v61 = vpop.eup %5640 }
0x1948   :  { %v1611_v10 = vmul.f32 %v5641_v61, %v1609_v24 }
0x1949   :  { %v1589_v59 = vsel %vm1588_vm4, %v1584_v45, %v1587_v7 }
0x194a   :  { %v1592_v2 = vsel %vm1590_vm5, %v1591_v57, %v1589_v59  ;;  %v1617_v14 = vadd.f32 %v4516_v0, %v1611_v10 }
0x194b   :  { %v1600_v60 = vadd.f32 1e-06, %v1592_v2 }
0x194d   :  { %5642 = vrcp.f32 %v1600_v60 }
0x195a   :  { %v5643_v4 = vpop.eup %5642 }
0x195b   :  { %v1610_v5 = vmul.f32 %v5643_v4, %v1608_v3  ;;  %v2220_v4 = vld [vmem:[%s7195_s6 + $0x38] sm:$0x1] }
0x195d   :  { %v1616_v21 = vadd.f32 %v4516_v0, %v1610_v5  ;;  %v2222_v0 = vunpack.c.l.bf16 %v2220_v4 }
0x195f   :  { %v6564_v9 = vpack.c.bf16 %v1617_v14, %v1616_v21  ;;  %v2226_v6 = vrot.slane %v2222_v0, %v5921_v48  ;;  %v53_v0 = vld [vmem:[%s7193_s4 + $0x30] sm:$0xff] }
0x1961   :  { %5015 = vmatmul.mubr.msk.bf16.vlgmr.msra.gmra.mxu1 %vm59_vm0, %v6564_v9 }
0x19bf   :  { %v2178_v12 = vpop.xlane.xlu0 %2177 }
0x19c0   :  { %v2182_v11 = vmul.f32 0.032258064, %v2178_v12 }
0x19c2   :  { %5644 = vrsqrt.f32 %v2182_v11  ;;  %vm2186_vm10 = vcmp.eq.f32.partialorder %v2182_v11, inf  ;;  %v2189_v37 = vand.u32 2147483648, %v2182_v11  ;;  %vm2188_vm11 = vcmp.eq.f32.partialorder %v2182_v11, 0.0 }
0x19c3   :  { %v2181_v20 = vpop.xlane.xlu1 %2180 }
0x19c4   :  { %v2183_v29 = vmul.f32 0.032258064, %v2181_v20 }
0x19c6   :  { %5646 = vrsqrt.f32 %v2183_v29  ;;  %vm2193_vm12 = vcmp.eq.f32.partialorder %v2183_v29, inf  ;;  %v2196_v16 = vand.u32 2147483648, %v2183_v29  ;;  %vm2195_vm13 = vcmp.eq.f32.partialorder %v2183_v29, 0.0 }
0x19cf   :  { %v5645_v32 = vpop.eup %5644 }
0x19d0   :  { %v2185_v13 = vmul.f32 %v5645_v32, %v2182_v11 }
0x19d2   :  { %v2187_v42 = vsel %vm2186_vm10, %v2182_v11, %v2185_v13 }
0x19d3   :  { %v2190_v17 = vsel %vm2188_vm11, %v2189_v37, %v2187_v42  ;;  %v5647_v19 = vpop.eup %5646 }
0x19d4   :  { %v2198_v23 = vadd.f32 1e-06, %v2190_v17  ;;  %v2192_v26 = vmul.f32 %v5647_v19, %v2183_v29 }
0x19d6   :  { %5648 = vrcp.f32 %v2198_v23  ;;  %v2194_v52 = vsel %vm2193_vm12, %v2183_v29, %v2192_v26 }
0x19d7   :  { %v2197_v27 = vsel %vm2195_vm13, %v2196_v16, %v2194_v52 }
0x19d8   :  { %v2199_v62 = vadd.f32 1e-06, %v2197_v27 }
0x19da   :  { %5650 = vrcp.f32 %v2199_v62 }
0x19e3   :  { %v5649_v34 = vpop.eup %5648 }
0x19e4   :  { %v2208_v22 = vmul.f32 %v5649_v34, %v2206_v30 }
0x19e6   :  { %v2214_v31 = vadd.f32 %v4534_v35, %v2208_v22 }
0x19e7   :  { %v5651_v1 = vpop.eup %5650 }
0x19e8   :  { %v2209_v28 = vmul.f32 %v5651_v1, %v2207_v8  ;;  %v47_v8 = vld [vmem:[%s7193_s4] sm:$0xff] }
0x19ea   :  { %v2215_v38 = vadd.f32 %v4534_v35, %v2209_v28  ;;  %v49_v28 = vld [vmem:[%s7193_s4 + $0x10] sm:$0xff] }
0x19ec   :  { %v2221_v39 = vpack.c.bf16 %v2215_v38, %v2214_v31 }
0x19ee   :  { %5007 = vmatmul.mubr.msk.bf16.vlgmr.msra.gmra.mxu0 %vm59_vm0, %v2221_v39  ;;  %v48_v39 = vld [vmem:[%s7193_s4 + $0x8] sm:$0xff] }
0x1a21   :  { %v2343_v36 = vpop.f32.mrf.mxu1 }
0x1a22   :  { %v2344_v47 = vadd.f32 %v2343_v36, %v2293_v41 }
0x1a23   :  { %v5016_v44 = vpop.f32.mrf.mxu1 }
0x1a25   :  { %v2346_v45 = vpop.f32.mrf.mxu1 }
0x1a26   :  { %v2347_v49 = vadd.f32 %v2346_v45, %v2293_v41  ;;  %v50_v45 = vld [vmem:[%s7193_s4 + $0x18] sm:$0xff] }
0x1a27   :  { %v5017_v50 = vpop.f32.mrf.mxu1 }
0x1a28   :  { %v5333_v51 = vpack.i.bf16 %v2347_v49, %v2344_v47  ;;  %v6581_v53 = vpack.c.bf16 %v2347_v49, %v2344_v47 }
0x1a2a   :  { %5334 = vrot.lane.b32.xlu1 %v5333_v51, %s5828_s18  ;;  %5329 = vrot.lane.b32.xlu0 %v5333_v51, %s5829_s19  ;;  %v2411_v13 = vsel %vm216_vm6, %v6581_v53, 0 }
0x1a2e   :  { %5339 = vrot.lane.b32.xlu1 %v5333_v51, %s5830_s20 }
0x1a9c   :  { %v5335_v54 = vpop.permute.xlu1 %5334  ;;  %v5330_v55 = vpop.permute.xlu0 %5329 }
0x1a9d   :  { %v5337_v56 = vunpack.i.h.bf16 %v5335_v54  ;;  %v5336_v58 = vunpack.i.l.bf16 %v5335_v54  ;;  %v5332_v7 = vunpack.i.h.bf16 %v5330_v55  ;;  %v5331_v57 = vunpack.i.l.bf16 %v5330_v55 }
0x1a9f   :  { %v6586_v59 = vpack.c.bf16 %v5332_v7, %v5331_v57  ;;  %v6588_v2 = vpack.c.bf16 %v5337_v56, %v5336_v58  ;;  %v51_v58 = vld [vmem:[%s7193_s4 + $0x20] sm:$0xff] }
0x1aa0   :  { %v5340_v61 = vpop.permute.xlu1 %5339 }
0x1aa1   :  { %5214 = vmatprep.subr.msk.bf16.mxu0 %vm216_vm6, %v6586_v59  ;;  %v2420_v60 = vsel %vm216_vm6, %v6586_v59, 0  ;;  %v5342_v63 = vunpack.i.h.bf16 %v5340_v61  ;;  %v5341_v24 = vunpack.i.l.bf16 %v5340_v61  ;;  %v2417_v10 = vsel %vm216_vm6, %v6588_v2, 0 }
0x1aa2   :  { %5019 = vmatpush3.bf16.xpose.msra.mxu0 %v2420_v60  ;;  %v52_v60 = vld [vmem:[%s7193_s4 + $0x28] sm:$0xff] }
0x1aa3   :  { %5215 = vmatprep.subr.msk.bf16.mxu0 %vm216_vm6, %v6588_v2  ;;  %v6596_v3 = vpack.c.bf16 %v5342_v63, %v5341_v24 }
0x1aa5   :  { %v2414_v14 = vsel %vm216_vm6, %v6596_v3, 0 }
0x1aaa   :  { %5021 = vmatpush3.bf16.xpose.msra.mxu0 %v2417_v10 }
0x1aab   :  { %5216 = vmatprep.subr.msk.bf16.mxu0 %vm216_vm6, %v6596_v3 }
0x1aae   :  { %v2276_v5 = vpop.f32.mrf.mxu0 }
0x1aaf   :  { %v2277_v12 = vadd.f32 %v2276_v5, %v2226_v6  ;;  %v54_v5 = vld [vmem:[%s7193_s4 + $0x38] sm:$0xff] }
0x1ab0   :  { %v5008_v21 = vpop.f32.mrf.mxu0 }
0x1ab2   :  { %5023 = vmatpush3.bf16.xpose.msra.mxu0 %v2414_v14  ;;  %v2279_v18 = vpop.f32.mrf.mxu0 }
0x1ab3   :  { %5217 = vmatprep.subr.msk.bf16.mxu0 %vm216_vm6, %v6581_v53  ;;  %v2280_v11 = vadd.f32 %v2279_v18, %v2226_v6 }
0x1ab4   :  { %v5009_v20 = vpop.f32.mrf.mxu0 }
0x1ab5   :  { %v5348_v29 = vpack.i.bf16 %v2280_v11, %v2277_v12  ;;  %v2370_v32 = vpack.c.bf16 %v2280_v11, %v2277_v12 }
0x1ab7   :  { %5349 = vrot.lane.b32.xlu0 %v5348_v29, %s5828_s18  ;;  %5344 = vrot.lane.b32.xlu1 %v5348_v29, %s5830_s20 }
0x1ab8   :  { %5026 = vmatprep.mubr.msk.bf16.mxu0 %vm216_vm6, %v2370_v32 }
0x1aba   :  { %5025 = vmatpush3.bf16.xpose.msra.mxu0 %v2411_v13 }
0x1abb   :  { %5066 = vmatprep.subr.bf16.mxu0 %v5826_v15  ;;  %5354 = vrot.lane.b32.xlu1 %v5348_v29, %s5829_s19 }
0x1b29   :  { %v5350_v37 = vpop.permute.xlu0 %5349  ;;  %v5345_v42 = vpop.permute.xlu1 %5344 }
0x1b2a   :  { %v5352_v17 = vunpack.i.h.bf16 %v5350_v37  ;;  %v5351_v19 = vunpack.i.l.bf16 %v5350_v37  ;;  %v5347_v23 = vunpack.i.h.bf16 %v5345_v42  ;;  %v5346_v26 = vunpack.i.l.bf16 %v5345_v42 }
0x1b2c   :  { %v2372_v16 = vpack.c.bf16 %v5352_v17, %v5351_v19  ;;  %v2371_v52 = vpack.c.bf16 %v5347_v23, %v5346_v26 }
0x1b2d   :  { %v5355_v27 = vpop.permute.xlu1 %5354 }
0x1b2e   :  { %5027 = vmatmul.mubr.msk.bf16.vlgmr.msra.gmra.mxu0 %vm216_vm6, %v2371_v52  ;;  %v5357_v62 = vunpack.i.h.bf16 %v5355_v27  ;;  %v5356_v33 = vunpack.i.l.bf16 %v5355_v27 }
0x1b2f   :  { %5030 = vmatprep.mubr.msk.bf16.mxu0 %vm216_vm6, %v2372_v16 }
0x1b30   :  { %v2373_v34 = vpack.c.bf16 %v5357_v62, %v5356_v33 }
0x1b36   :  { %5031 = vmatmul.mubr.msk.bf16.gmra.mxu0 %vm216_vm6, %v2373_v34 }
0x1b37   :  { %5074 = vmatprep.mubr.msk.bf16.mxu0 %vm5827_vm1, %v5826_v15 }
0x1bee   :  { %v5028_v30 = vpop.f32.mrf.mxu0 }
0x1bef   :  { %v2489_v1 = vmul.f32 0.35355338, %v5028_v30 }
0x1bf0   :  { %v2456_v22 = vpop.f32.mrf.mxu0 }
0x1bf1   :  { %v2487_v35 = vmul.f32 0.35355338, %v2456_v22  ;;  %v2497_v43 = vadd.f32 %v2489_v1, %v49_v28 }
0x1bf2   :  { %v5029_v31 = vpop.f32.mrf.mxu0 }
0x1bf3   :  { %v2495_v38 = vadd.f32 %v2487_v35, %v47_v8  ;;  %v2490_v36 = vmul.f32 0.35355338, %v5029_v31  ;;  %v2509_v55 = vsel %vm322_vm7, %v2497_v43, -inf }
0x1bf4   :  { %v2459_v40 = vpop.f32.mrf.mxu0 }
0x1bf5   :  { %v2488_v41 = vmul.f32 0.35355338, %v2459_v40  ;;  %v2503_v44 = vsel %vm322_vm7, %v2495_v38, -inf  ;;  %v2498_v51 = vadd.f32 %v2490_v36, %v50_v45 }
0x1bf6   :  { %2504 = vmax.xlane.f32.xlu0 %v2503_v44  ;;  %v5032_v47 = vpop.f32.mrf.mxu0 }
0x1bf7   :  { %v2496_v49 = vadd.f32 %v2488_v41, %v48_v39  ;;  %v2493_v57 = vmul.f32 0.35355338, %v5032_v47  ;;  %v2512_v4 = vsel %vm322_vm7, %v2498_v51, -inf }
0x1bf8   :  { %v2472_v50 = vpop.f32.mrf.mxu0 }
0x1bf9   :  { %v2491_v54 = vmul.f32 0.35355338, %v2472_v50  ;;  %v2506_v56 = vsel %vm322_vm7, %v2496_v49, -inf  ;;  %v2501_v21 = vadd.f32 %v2493_v57, %v53_v0 }
0x1bfa   :  { %2510 = vmax.xlane.f32.xlu0 %v2509_v55  ;;  %2507 = vmax.xlane.f32.xlu1 %v2506_v56  ;;  %v5033_v7 = vpop.f32.mrf.mxu0 }
0x1bfb   :  { %v2499_v63 = vadd.f32 %v2491_v54, %v51_v58  ;;  %v2494_v24 = vmul.f32 0.35355338, %v5033_v7  ;;  %v2521_v11 = vsel %vm322_vm7, %v2501_v21, -inf }
0x1bfc   :  { %v2475_v61 = vpop.f32.mrf.mxu0 }
0x1bfd   :  { %v2492_v10 = vmul.f32 0.35355338, %v2475_v61  ;;  %v2502_v14 = vadd.f32 %v2494_v24, %v54_v5  ;;  %v2515_v18 = vsel %vm322_vm7, %v2499_v63, -inf }
0x1bfe   :  { %2513 = vmax.xlane.f32.xlu0 %v2512_v4 }
0x1bff   :  { %v2500_v6 = vadd.f32 %v2492_v10, %v52_v60  ;;  %v2524_v20 = vsel %vm322_vm7, %v2502_v14, -inf }
0x1c01   :  { %v2518_v12 = vsel %vm322_vm7, %v2500_v6, -inf }
0x1c02   :  { %2516 = vmax.xlane.f32.xlu0 %v2515_v18  ;;  %2519 = vmax.xlane.f32.xlu1 %v2518_v12 }
0x1c06   :  { %2522 = vmax.xlane.f32.xlu0 %v2521_v11  ;;  %2525 = vmax.xlane.f32.xlu1 %v2524_v20 }
0x1c7f   :  { %v2505_v29 = vpop.xlane.xlu0 %2504 }
0x1c80   :  { %v2527_v32 = vsub.f32 %v2495_v38, %v2505_v29 }
0x1c82   :  { %v2535_v17 = vmul.f32 1.442695, %v2527_v32 }
0x1c83   :  { %v2511_v13 = vpop.xlane.xlu0 %2510  ;;  %v2508_v37 = vpop.xlane.xlu1 %2507 }
0x1c84   :  { %v2529_v42 = vsub.f32 %v2497_v43, %v2511_v13  ;;  %v2528_v23 = vsub.f32 %v2496_v49, %v2508_v37 }
0x1c86   :  { %v2539_v19 = vmul.f32 1.442695, %v2529_v42  ;;  %v2537_v52 = vmul.f32 1.442695, %v2528_v23 }
0x1c87   :  { %v2514_v26 = vpop.xlane.xlu0 %2513 }
0x1c88   :  { %5652 = vpow2.f32 %v2539_v19  ;;  %v2530_v16 = vsub.f32 %v2498_v51, %v2514_v26 }
0x1c89   :  { %5654 = vpow2.f32 %v2535_v17 }
0x1c8a   :  { %v2541_v27 = vmul.f32 1.442695, %v2530_v16 }
0x1c8b   :  { %v2517_v62 = vpop.xlane.xlu0 %2516  ;;  %v2520_v47 = vpop.xlane.xlu1 %2519 }
0x1c8c   :  { %5656 = vpow2.f32 %v2541_v27  ;;  %v2531_v33 = vsub.f32 %v2499_v63, %v2517_v62  ;;  %v2532_v51 = vsub.f32 %v2500_v6, %v2520_v47 }
0x1c8d   :  { %5658 = vpow2.f32 %v2537_v52 }
0x1c8e   :  { %v2543_v8 = vmul.f32 1.442695, %v2531_v33  ;;  %v2545_v55 = vmul.f32 1.442695, %v2532_v51  ;;  %v5476_v33 = vld [vmem:[%s7195_s6 + $0x58] sm:$0xff]  }
0x1c8f   :  { %v2523_v34 = vpop.xlane.xlu0 %2522  ;;  %v2526_v49 = vpop.xlane.xlu1 %2525 }
0x1c90   :  { %v2533_v30 = vsub.f32 %v2501_v21, %v2523_v34  ;;  %v2534_v50 = vsub.f32 %v2502_v14, %v2526_v49 }
0x1c92   :  { %v2547_v22 = vmul.f32 1.442695, %v2533_v30  ;;  %v2549_v54 = vmul.f32 1.442695, %v2534_v50 }
0x1c94   :  { %5660 = vpow2.f32 %v2547_v22 }
0x1c95   :  { %v6654_v1 = vpop.eup %5652  ;;  %5662 = vpow2.f32 %v2543_v8 }
0x1c96   :  { %v2557_v35 = vsel %vm322_vm7, %v6654_v1, 0.0  ;;  %v5655_v28 = vpop.eup %5654  ;;  %5664 = vpow2.f32 %v2549_v54 }
0x1c97   :  { %2558 = vadd.xlane.f32.xlu0 %v2557_v35  ;;  %v2551_v38 = vsel %vm322_vm7, %v5655_v28, 0.0  ;;  %5666 = vpow2.f32 %v2545_v55 }
0x1c99   :  { %v6658_v31 = vpop.eup %5656 }
0x1c9a   :  { %v2560_v39 = vsel %vm322_vm7, %v6658_v31, 0.0  ;;  %v5659_v40 = vpop.eup %5658 }
0x1c9b   :  { %2552 = vadd.xlane.f32.xlu0 %v2551_v38  ;;  %2561 = vadd.xlane.f32.xlu1 %v2560_v39  ;;  %v2554_v43 = vsel %vm322_vm7, %v5659_v40, 0.0 }
0x1c9f   :  { %2555 = vadd.xlane.f32.xlu1 %v2554_v43 }
0x1ca1   :  { %v6664_v36 = vpop.eup %5660 }
0x1ca2   :  { %v2569_v41 = vsel %vm322_vm7, %v6664_v36, 0.0  ;;  %v6668_v44 = vpop.eup %5662 }
0x1ca3   :  { %2570 = vadd.xlane.f32.xlu0 %v2569_v41  ;;  %v2563_v45 = vsel %vm322_vm7, %v6668_v44, 0.0  ;;  %v5665_v56 = vpop.eup %5664 }
0x1ca4   :  { %v2572_v58 = vsel %vm322_vm7, %v5665_v56, 0.0  ;;  %v5667_v7 = vpop.eup %5666 }
0x1ca7   :  { %2564 = vadd.xlane.f32.xlu0 %v2563_v45 }
0x1cb0   :  { %2603 = vrot.lane.b32.xlu1 %v6588_v2, %s5831_s21  ;;  %v2566_v2 = vsel %vm322_vm7, %v5667_v7, 0.0 }
0x1cb4   :  { %2601 = vrot.lane.b32.xlu1 %v6596_v3, %s5831_s21 }
0x1cbd   :  { %2605 = vrot.lane.b32.xlu0 %v6586_v59, %s5831_s21 }
0x1cd8   :  { %2573 = vadd.xlane.f32.xlu1 %v2572_v58 }
0x1cdc   :  { %2567 = vadd.xlane.f32.xlu1 %v2566_v2 }
0x1ced   :  { %2599 = vrot.lane.b32.xlu1 %v6581_v53, %s5831_s21 }
0x1d20   :  { %v2559_v3 = vpop.xlane.xlu0 %2558 }
0x1d24   :  { %v2553_v57 = vpop.xlane.xlu0 %2552  ;;  %v2562_v59 = vpop.xlane.xlu1 %2561 }
0x1d25   :  { %5668 = vrcp.f32 %v2553_v57 }
0x1d28   :  { %v2556_v60 = vpop.xlane.xlu1 %2555 }
0x1d29   :  { %5670 = vrcp.f32 %v2556_v60 }
0x1d2a   :  { %5672 = vrcp.f32 %v2562_v59  ;;  %v2722_v59 = vld [vmem:[%s7195_s6 + $0x60] sm:$0x1] }
0x1d2b   :  { %5674 = vrcp.f32 %v2559_v3  ;;  %v2724_v60 = vunpack.c.l.bf16 %v2722_v59 }
0x1d2c   :  { %v2571_v61 = vpop.xlane.xlu0 %2570  ;;  %v2604_v10 = vpop.permute.xlu1 %2603 }
0x1d30   :  { %v2565_v63 = vpop.xlane.xlu0 %2564  ;;  %v2602_v14 = vpop.permute.xlu1 %2601 }
0x1d32   :  { %v5669_v24 = vpop.eup %5668 }
0x1d33   :  { %v2583_v5 = vmul.f32 %v5669_v24, %v5655_v28 }
0x1d34   :  { %v2606_v4 = vpop.permute.xlu0 %2605 }
0x1d35   :  { %5034 = vmatprep.subr.bf16.mxu1 %v2606_v4 }
0x1d36   :  { %v5671_v0 = vpop.eup %5670  ;;  %5035 = vmatpush3.bf16.msra.mxu1 %v2606_v4 }
0x1d37   :  { %5036 = vmatprep.subr.bf16.mxu1 %v2604_v10  ;;  %v2584_v6 = vmul.f32 %v5671_v0, %v5659_v40  ;;  %v5673_v18 = vpop.eup %5672 }
0x1d38   :  { %v5675_v11 = vpop.eup %5674  ;;  %v2586_v20 = vmul.f32 %v5673_v18, %v6658_v31 }
0x1d39   :  { %v2591_v21 = vpack.c.bf16 %v2584_v6, %v2583_v5  ;;  %v2585_v32 = vmul.f32 %v5675_v11, %v6654_v1  ;;  %v5477_v1 = vld [vmem:[%s7195_s6 + $0x50] sm:$0xff]  }
0x1d3a   :  { %5037 = vmatpush3.bf16.msra.mxu1 %v2604_v10 }
0x1d3b   :  { %5038 = vmatprep.subr.bf16.mxu1 %v2602_v14  ;;  %5042 = vmatprep.mubr.msk.bf16.mxu1 %vm322_vm7, %v2591_v21  ;;  %v2592_v13 = vpack.c.bf16 %v2586_v20, %v2585_v32 }
0x1d3e   :  { %5039 = vmatpush3.bf16.msra.mxu1 %v2602_v14 }
0x1d61   :  { %v2574_v53 = vpop.xlane.xlu1 %2573 }
0x1d62   :  { %5676 = vrcp.f32 %v2574_v53 }
0x1d63   :  { %5678 = vrcp.f32 %v2565_v63 }
0x1d64   :  { %5680 = vrcp.f32 %v2571_v61  ;;  %v2728_v61 = vrot.slane %v2724_v60, %v5921_v48 }
0x1d65   :  { %v2568_v12 = vpop.xlane.xlu1 %2567 }
0x1d66   :  { %5682 = vrcp.f32 %v2568_v12 }
0x1d69   :  { %v2600_v29 = vpop.permute.xlu1 %2599 }
0x1d6a   :  { %5040 = vmatprep.subr.bf16.mxu1 %v2600_v29 }
0x1d6b   :  { %5041 = vmatpush3.bf16.msra.mxu1 %v2600_v29 }
0x1d6c   :  { %5050 = vmatprep.subr.bf16.mxu1 %v5826_v15 }
0x1d6e   :  { %5043 = vmatmul.mubr.msk.bf16.vlgmr.msra.gmra.mxu1 %vm322_vm7, %v2592_v13 }
0x1d6f   :  { %v5677_v37 = vpop.eup %5676  ;;  %5051 = vmatpush3.bf16.msra.mxu1 %v5476_v33 }
0x1d70   :  { %v5679_v42 = vpop.eup %5678  ;;  %v2590_v23 = vmul.f32 %v5677_v37, %v5665_v56  ;;  %5052 = vmatprep.subr.bf16.mxu1 %v5826_v15 }
0x1d71   :  { %v5681_v17 = vpop.eup %5680  ;;  %v2587_v26 = vmul.f32 %v5679_v42, %v6668_v44  ;;  %v5478_v42 = vld [vmem:[%s7195_s6 + $0x6c] sm:$0xff]  }
0x1d72   :  { %v2589_v52 = vmul.f32 %v5681_v17, %v6664_v36  ;;  %v5479_v17 = vld [vmem:[%s7195_s6 + $0x64] sm:$0xff]  }
0x1d73   :  { %v5683_v19 = vpop.eup %5682  ;;  %5053 = vmatpush3.bf16.msra.mxu1 %v5477_v1 }
0x1d74   :  { %v2588_v16 = vmul.f32 %v5683_v19, %v5667_v7  ;;  %v2594_v62 = vpack.c.bf16 %v2590_v23, %v2589_v52  ;;  %5058 = vmatprep.subr.bf16.mxu1 %v5826_v15  ;;  %v5480_v19 = vld [vmem:[%s7195_s6 + $0x90] sm:$0xff]   ;;  %v5481_v23 = vld [vmem:[%s7195_s6 + $0x88] sm:$0xff]  }
0x1d75   :  { %5067 = vmatpush3.bf16.msra.mxu0 %v5480_v19 }
0x1d76   :  { %v2593_v27 = vpack.c.bf16 %v2588_v16, %v2587_v26  ;;  %5068 = vmatprep.subr.bf16.mxu0 %v5826_v15 }
0x1d78   :  { %5046 = vmatprep.mubr.msk.bf16.mxu1 %vm322_vm7, %v2593_v27 }
0x1d79   :  { %5047 = vmatmul.mubr.msk.bf16.gmra.mxu1 %vm322_vm7, %v2594_v62  ;;  %5069 = vmatpush3.bf16.msra.mxu0 %v5481_v23 }
0x1d7a   :  { %5054 = vmatprep.mubr.msk.bf16.mxu1 %vm5827_vm1, %v5826_v15  ;;  %5070 = vmatprep.subr.bf16.mxu0 %v5826_v15 }
0x1e2e   :  { %v5044_v34 = vpop.f32.mrf.mxu1 }
0x1e30   :  { %v2657_v30 = vpop.f32.mrf.mxu1 }
0x1e32   :  { %v5045_v8 = vpop.f32.mrf.mxu1 }
0x1e33   :  { %v5358_v22 = vpack.i.bf16 %v5045_v8, %v5044_v34 }
0x1e34   :  { %v2660_v35 = vpop.f32.mrf.mxu1 }
0x1e35   :  { %5359 = vrot.lane.b32.xlu0 %v5358_v22, %s5833_s23 }
0x1e39   :  { %v5048_v28 = vpop.f32.mrf.mxu1 }
0x1e3b   :  { %v2673_v31 = vpop.f32.mrf.mxu1 }
0x1e3d   :  { %v5049_v38 = vpop.f32.mrf.mxu1 }
0x1e3e   :  { %v5368_v39 = vpack.i.bf16 %v5049_v38, %v5048_v28 }
0x1e3f   :  { %v2676_v40 = vpop.f32.mrf.mxu1 }
0x1e40   :  { %v5363_v43 = vpack.i.bf16 %v2676_v40, %v2673_v31  ;;  %5369 = vrot.lane.b32.xlu0 %v5368_v39, %s5834_s24  ;;  %v4552_v40 = vld [vmem:[%s7196_s7 + $0xe] ss:$0 sm:$0xff] }
0x1e42   :  { %5364 = vrot.lane.b32.xlu1 %v5363_v43, %s5835_s25 }
0x1ea7   :  { %v5360_v36 = vpop.permute.xlu0 %5359 }
0x1ea8   :  { %v5362_v41 = vunpack.i.h.bf16 %v5360_v36  ;;  %v5361_v44 = vunpack.i.l.bf16 %v5360_v36 }
0x1eaa   :  { %v2712_v51 = vsel %vm216_vm6, %v2657_v30, %v5361_v44  ;;  %v2713_v54 = vsel %vm216_vm6, %v2660_v35, %v5362_v41 }
0x1eb2   :  { %v5370_v45 = vpop.permute.xlu0 %5369 }
0x1eb3   :  { %v5372_v55 = vunpack.i.h.bf16 %v5370_v45  ;;  %v5371_v56 = vunpack.i.l.bf16 %v5370_v45 }
0x1eb4   :  { %v5365_v47 = vpop.permute.xlu1 %5364 }
0x1eb5   :  { %v5367_v49 = vunpack.i.h.bf16 %v5365_v47  ;;  %v5366_v50 = vunpack.i.l.bf16 %v5365_v47  ;;  %v4553_v47 = vld [vmem:[%s7196_s7 + $0xf] ss:$0 sm:$0xff] }
0x1eb7   :  { %v2715_v58 = vsel %vm530_vm8, %v2713_v54, %v5367_v49  ;;  %v2714_v7 = vsel %vm530_vm8, %v2712_v51, %v5366_v50 }
0x1eb8   :  { %v2717_v2 = vsel %vm533_vm9, %v2715_v58, %v5372_v55  ;;  %v2716_v3 = vsel %vm533_vm9, %v2714_v7, %v5371_v56  ;;  %v5482_v55 = vld [vmem:[%s7195_s6 + $0x80] sm:$0xff]   ;;  %v5483_v56 = vld [vmem:[%s7195_s6 + $0x78] sm:$0xff]   ;;  %v2845_v58 = vld [vmem:[%s7195_s6 + $0x74] sm:$0x1] }
0x1eb9   :  { %v2723_v57 = vpack.c.bf16 %v2717_v2, %v2716_v3  ;;  %5071 = vmatpush3.bf16.msra.mxu0 %v5482_v55  ;;  %v2847_v7 = vunpack.c.l.bf16 %v2845_v58  ;;  %v4563_v55 = vld [vmem:[%s7196_s7 + $0x11] ss:$0 sm:$0xff] }
0x1eba   :  { %5072 = vmatprep.subr.bf16.mxu0 %v5826_v15 }
0x1ebb   :  { %5055 = vmatmul.mubr.msk.bf16.vlgmr.msra.gmra.mxu1 %vm59_vm0, %v2723_v57  ;;  %v2851_v2 = vrot.slane %v2847_v7, %v5921_v48 }
0x1ebc   :  { %5062 = vmatprep.mubr.msk.bf16.mxu1 %vm5827_vm1, %v5826_v15  ;;  %5059 = vmatpush3.bf16.msra.mxu1 %v5478_v42 }
0x1ebd   :  { %5060 = vmatprep.subr.bf16.mxu1 %v5826_v15  ;;  %5073 = vmatpush3.bf16.msra.mxu0 %v5483_v56 }
0x1ec0   :  { %5061 = vmatpush3.bf16.msra.mxu1 %v5479_v17 }
0x1ec1   :  { %5078 = vmatprep.subr.bf16.mxu1 %v5826_v15 }
0x1f7b   :  { %v2778_v63 = vpop.f32.mrf.mxu1 }
0x1f7c   :  { %v2779_v24 = vadd.f32 %v2778_v63, %v2728_v61 }
0x1f7d   :  { %v5056_v10 = vpop.f32.mrf.mxu1 }
0x1f7e   :  { %v6718_v4 = vadd.f32 %v2779_v24, %v6521_v25 }
0x1f7f   :  { %v2781_v0 = vpop.f32.mrf.mxu1 }
0x1f80   :  { %v2782_v5 = vadd.f32 %v2781_v0, %v2728_v61  ;;  %v2789_v6 = vsel %vm59_vm0, %v6718_v4, 0.0 }
0x1f81   :  { %2790 = vadd.xlane.f32.xlu1 %v2789_v6  ;;  %v5057_v21 = vpop.f32.mrf.mxu1 }
0x1f82   :  { %v6723_v14 = vadd.f32 %v2782_v5, %v6526_v46  ;;  %v2918_v5 = vld [vmem:[%s7195_s6 + $0x98] sm:$0x1] }
0x1f83   :  { %v2920_v6 = vunpack.c.l.bf16 %v2918_v5 }
0x1f84   :  { %v2792_v53 = vsel %vm59_vm0, %v6723_v14, 0.0 }
0x1f85   :  { %2793 = vadd.xlane.f32.xlu0 %v2792_v53  ;;  %v2924_v21 = vrot.slane %v2920_v6, %v5921_v48 }
0x200a   :  { %v2791_v18 = vpop.xlane.xlu1 %2790 }
0x200b   :  { %v2795_v12 = vmul.f32 0.03125, %v2791_v18 }
0x200d   :  { %v2797_v11 = vsub.f32 %v6718_v4, %v2795_v12 }
0x200e   :  { %v2794_v25 = vpop.xlane.xlu0 %2793 }
0x200f   :  { %v2796_v20 = vmul.f32 0.03125, %v2794_v25  ;;  %v2799_v29 = vmul.f32 %v2797_v11, %v2797_v11  ;;  %v2831_v36 = vmul.f32 %v4552_v40, %v2797_v11 }
0x2011   :  { %v2798_v32 = vsub.f32 %v6723_v14, %v2796_v20  ;;  %v2801_v13 = vsel %vm59_vm0, %v2799_v29, 0.0 }
0x2012   :  { %2802 = vadd.xlane.f32.xlu0 %v2801_v13 }
0x2013   :  { %v2800_v37 = vmul.f32 %v2798_v32, %v2798_v32  ;;  %v2832_v41 = vmul.f32 %v4552_v40, %v2798_v32 }
0x2015   :  { %v2804_v46 = vsel %vm59_vm0, %v2800_v37, 0.0 }
0x2016   :  { %2805 = vadd.xlane.f32.xlu0 %v2804_v46 }
0x209b   :  { %v2803_v26 = vpop.xlane.xlu0 %2802 }
0x209c   :  { %v2807_v16 = vmul.f32 0.032258064, %v2803_v26 }
0x209e   :  { %5684 = vrsqrt.f32 %v2807_v16  ;;  %vm2811_vm14 = vcmp.eq.f32.partialorder %v2807_v16, inf  ;;  %v2814_v34 = vand.u32 2147483648, %v2807_v16  ;;  %vm2813_vm15 = vcmp.eq.f32.partialorder %v2807_v16, 0.0 }
0x209f   :  { %v2806_v52 = vpop.xlane.xlu0 %2805 }
0x20a0   :  { %v2808_v27 = vmul.f32 0.032258064, %v2806_v52 }
0x20a2   :  { %5686 = vrsqrt.f32 %v2808_v27  ;;  %vm2818_vm2 = vcmp.eq.f32.partialorder %v2808_v27, inf  ;;  %v2821_v28 = vand.u32 2147483648, %v2808_v27  ;;  %vm2820_vm3 = vcmp.eq.f32.partialorder %v2808_v27, 0.0 }
0x20ab   :  { %v5685_v62 = vpop.eup %5684 }
0x20ac   :  { %v2810_v33 = vmul.f32 %v5685_v62, %v2807_v16  ;;  %v5485_v62 = vld [vmem:[%s7195_s6 + $0xa0] sm:$0xff]  }
0x20ae   :  { %v2812_v30 = vsel %vm2811_vm14, %v2807_v16, %v2810_v33 }
0x20af   :  { %v5687_v8 = vpop.eup %5686  ;;  %v2815_v22 = vsel %vm2813_vm15, %v2814_v34, %v2812_v30 }
0x20b0   :  { %v2823_v1 = vadd.f32 1e-06, %v2815_v22  ;;  %v2817_v35 = vmul.f32 %v5687_v8, %v2808_v27 }
0x20b2   :  { %5688 = vrcp.f32 %v2823_v1  ;;  %v2819_v31 = vsel %vm2818_vm2, %v2808_v27, %v2817_v35  ;;  %v5484_v27 = vld [vmem:[%s7195_s6 + $0xa8] sm:$0xff]  }
0x20b3   :  { %v2822_v38 = vsel %vm2820_vm3, %v2821_v28, %v2819_v31 }
0x20b4   :  { %v2824_v39 = vadd.f32 1e-06, %v2822_v38 }
0x20b6   :  { %5690 = vrcp.f32 %v2824_v39 }
0x20bf   :  { %v5689_v43 = vpop.eup %5688 }
0x20c0   :  { %v2833_v44 = vmul.f32 %v5689_v43, %v2831_v36 }
0x20c2   :  { %v2839_v50 = vadd.f32 %v4553_v47, %v2833_v44 }
0x20c3   :  { %v5691_v45 = vpop.eup %5690 }
0x20c4   :  { %v2834_v49 = vmul.f32 %v5691_v45, %v2832_v41  ;;  %v4562_v45 = vld [vmem:[%s7196_s7 + $0x10] ss:$0 sm:$0xff] }
0x20c6   :  { %v2840_v51 = vadd.f32 %v4553_v47, %v2834_v49 }
0x20c8   :  { %v2846_v54 = vpack.c.bf16 %v2840_v51, %v2839_v50 }
0x20ca   :  { %5063 = vmatmul.mubr.msk.bf16.vlgmr.msra.gmra.mxu1 %vm59_vm0, %v2846_v54 }
0x20cb   :  { %5082 = vmatprep.mubr.msk.bf16.mxu1 %vm5827_vm1, %v5826_v15  ;;  %5079 = vmatpush3.bf16.msra.mxu1 %v5484_v27 }
0x20cc   :  { %5080 = vmatprep.subr.bf16.mxu1 %v5826_v15 }
0x20cf   :  { %5081 = vmatpush3.bf16.msra.mxu1 %v5485_v62  ;;  %v5486_v62 = vld [vmem:[%s7195_s6 + $0xe4] sm:$0xff]  }
0x218a   :  { %v2901_v3 = vpop.f32.mrf.mxu1 }
0x218b   :  { %v2902_v59 = vadd.f32 %v2901_v3, %v2851_v2  ;;  %v4568_v3 = vld [vmem:[%s7195_s6 + $0xb0] sm:$0x1] }
0x218c   :  { %v5064_v57 = vpop.f32.mrf.mxu1 }
0x218d   :  { %v2908_v24 = vmax.f32 %v2902_v59, 0.0  ;;  %v3056_v57 = vunpack.c.l.bf16 %v4568_v3 }
0x218e   :  { %v2904_v60 = vpop.f32.mrf.mxu1 }
0x218f   :  { %v2905_v61 = vadd.f32 %v2904_v60, %v2851_v2  ;;  %v3060_v60 = vrot.slane %v3056_v57, %v5921_v48  ;;  %v5792_v57 = vld [vmem:[%s7192_s3 + $0x20] sm:$0xff] }
0x2190   :  { %v5065_v63 = vpop.f32.mrf.mxu1 }
0x2191   :  { %v2909_v10 = vmax.f32 %v2905_v61, 0.0 }
0x2193   :  { %v2919_v0 = vpack.c.bf16 %v2909_v10, %v2908_v24 }
0x2195   :  { %5075 = vmatmul.mubr.msk.bf16.vlgmr.msra.gmra.mxu0 %vm322_vm7, %v2919_v0 }
0x2255   :  { %v2986_v53 = vpop.f32.mrf.mxu0 }
0x2256   :  { %v2987_v18 = vadd.f32 %v2986_v53, %v2924_v21 }
0x2257   :  { %v5076_v12 = vpop.f32.mrf.mxu0 }
0x2258   :  { %v6773_v11 = vadd.f32 %v2987_v18, %v6718_v4 }
0x2259   :  { %v2989_v25 = vpop.f32.mrf.mxu0 }
0x225a   :  { %v2990_v20 = vadd.f32 %v2989_v25, %v2924_v21  ;;  %v2997_v29 = vsel %vm59_vm0, %v6773_v11, 0.0 }
0x225b   :  { %2998 = vadd.xlane.f32.xlu1 %v2997_v29  ;;  %v5077_v32 = vpop.f32.mrf.mxu0 }
0x225c   :  { %v6778_v13 = vadd.f32 %v2990_v20, %v6723_v14 }
0x225e   :  { %v3000_v37 = vsel %vm59_vm0, %v6778_v13, 0.0 }
0x225f   :  { %3001 = vadd.xlane.f32.xlu0 %v3000_v37 }
0x22e4   :  { %v2999_v46 = vpop.xlane.xlu1 %2998 }
0x22e5   :  { %v3003_v42 = vmul.f32 0.03125, %v2999_v46 }
0x22e7   :  { %v3005_v17 = vsub.f32 %v6773_v11, %v3003_v42 }
0x22e8   :  { %v3002_v4 = vpop.xlane.xlu0 %3001 }
0x22e9   :  { %v3004_v19 = vmul.f32 0.03125, %v3002_v4  ;;  %v3007_v23 = vmul.f32 %v3005_v17, %v3005_v17  ;;  %v3039_v49 = vmul.f32 %v4562_v45, %v3005_v17 }
0x22eb   :  { %v3006_v26 = vsub.f32 %v6778_v13, %v3004_v19  ;;  %v3009_v16 = vsel %vm59_vm0, %v3007_v23, 0.0 }
0x22ec   :  { %3010 = vadd.xlane.f32.xlu1 %v3009_v16 }
0x22ed   :  { %v3008_v52 = vmul.f32 %v3006_v26, %v3006_v26  ;;  %v3040_v50 = vmul.f32 %v4562_v45, %v3006_v26 }
0x22ef   :  { %v3012_v14 = vsel %vm59_vm0, %v3008_v52, 0.0 }
0x22f0   :  { %3013 = vadd.xlane.f32.xlu0 %v3012_v14 }
0x2375   :  { %v3011_v33 = vpop.xlane.xlu1 %3010 }
0x2376   :  { %v3015_v34 = vmul.f32 0.032258064, %v3011_v33  ;;  %v5487_v33 = vld [vmem:[%s7195_s6 + $0xdc] sm:$0xff]  }
0x2378   :  { %5692 = vrsqrt.f32 %v3015_v34  ;;  %vm3019_vm4 = vcmp.eq.f32.partialorder %v3015_v34, inf  ;;  %v3022_v35 = vand.u32 2147483648, %v3015_v34  ;;  %vm3021_vm5 = vcmp.eq.f32.partialorder %v3015_v34, 0.0 }
0x2379   :  { %v3014_v30 = vpop.xlane.xlu0 %3013 }
0x237a   :  { %v3016_v8 = vmul.f32 0.032258064, %v3014_v30 }
0x237c   :  { %5694 = vrsqrt.f32 %v3016_v8  ;;  %vm3026_vm10 = vcmp.eq.f32.partialorder %v3016_v8, inf  ;;  %v3029_v43 = vand.u32 2147483648, %v3016_v8  ;;  %vm3028_vm11 = vcmp.eq.f32.partialorder %v3016_v8, 0.0 }
0x2385   :  { %v5693_v22 = vpop.eup %5692 }
0x2386   :  { %v3018_v1 = vmul.f32 %v5693_v22, %v3015_v34 }
0x2388   :  { %v3020_v28 = vsel %vm3019_vm4, %v3015_v34, %v3018_v1 }
0x2389   :  { %v5695_v31 = vpop.eup %5694  ;;  %v3023_v38 = vsel %vm3021_vm5, %v3022_v35, %v3020_v28  ;;  %v5788_v35 = vld [vmem:[%s7192_s3] sm:$0xff] }
0x238a   :  { %v3031_v39 = vadd.f32 1e-06, %v3023_v38  ;;  %v3025_v40 = vmul.f32 %v5695_v31, %v3016_v8  ;;  %v5789_v38 = vld [vmem:[%s7192_s3 + $0x10] sm:$0xff] }
0x238c   :  { %5696 = vrcp.f32 %v3031_v39  ;;  %v3027_v36 = vsel %vm3026_vm10, %v3016_v8, %v3025_v40 }
0x238d   :  { %v3030_v41 = vsel %vm3028_vm11, %v3029_v43, %v3027_v36 }
0x238e   :  { %v3032_v44 = vadd.f32 1e-06, %v3030_v41  ;;  %v5790_v41 = vld [vmem:[%s7192_s3 + $0x8] sm:$0xff] }
0x2390   :  { %5698 = vrcp.f32 %v3032_v44 }
0x2399   :  { %v5697_v47 = vpop.eup %5696 }
0x239a   :  { %v3041_v51 = vmul.f32 %v5697_v47, %v3039_v49  ;;  %v4602_v47 = vld [vmem:[%s7195_s6 + $0xec] sm:$0x1]  ;;  %v5791_v49 = vld [vmem:[%s7192_s3 + $0x18] sm:$0xff] }
0x239c   :  { %v3047_v58 = vadd.f32 %v4563_v55, %v3041_v51 }
0x239d   :  { %v5699_v54 = vpop.eup %5698 }
0x239e   :  { %v3042_v56 = vmul.f32 %v5699_v54, %v3040_v50 }
0x23a0   :  { %v3048_v7 = vadd.f32 %v4563_v55, %v3042_v56 }
0x23a2   :  { %v3055_v2 = vpack.c.bf16 %v3048_v7, %v3047_v58  ;;  %v3664_v58 = vunpack.c.l.bf16 %v4602_v47 }
0x23a4   :  { %5083 = vmatmul.mubr.msk.bf16.vlgmr.msra.gmra.mxu1 %vm59_vm0, %v3055_v2 }
0x2464   :  { %v3110_v59 = vpop.f32.mrf.mxu1 }
0x2465   :  { %v3111_v24 = vadd.f32 %v3110_v59, %v3060_v60 }
0x2466   :  { %v5084_v61 = vpop.f32.mrf.mxu1 }
0x2468   :  { %v3113_v63 = vpop.f32.mrf.mxu1 }
0x2469   :  { %v3114_v10 = vadd.f32 %v3113_v63, %v3060_v60 }
0x246a   :  { %v5085_v0 = vpop.f32.mrf.mxu1 }
0x246b   :  { %v5378_v5 = vpack.i.bf16 %v3114_v10, %v3111_v24  ;;  %v6804_v6 = vpack.c.bf16 %v3114_v10, %v3111_v24  ;;  %v5793_v24 = vld [vmem:[%s7192_s3 + $0x28] sm:$0xff]  ;;  %v3668_v0 = vrot.slane %v3664_v58, %v5921_v48 }
0x246d   :  { %5379 = vrot.lane.b32.xlu0 %v5378_v5, %s5828_s18  ;;  %5374 = vrot.lane.b32.xlu1 %v5378_v5, %s5829_s19 }
0x246e   :  { %5094 = vmatprep.mubr.msk.bf16.mxu0 %vm216_vm6, %v6804_v6 }
0x2471   :  { %5384 = vrot.lane.b32.xlu1 %v5378_v5, %s5830_s20  ;;  %v5794_v5 = vld [vmem:[%s7192_s3 + $0x30] sm:$0xff] }
0x24df   :  { %v5380_v21 = vpop.permute.xlu0 %5379  ;;  %v5375_v53 = vpop.permute.xlu1 %5374 }
0x24e0   :  { %v5377_v18 = vunpack.i.h.bf16 %v5375_v53  ;;  %v5376_v12 = vunpack.i.l.bf16 %v5375_v53  ;;  %v5382_v25 = vunpack.i.h.bf16 %v5380_v21  ;;  %v5381_v20 = vunpack.i.l.bf16 %v5380_v21  ;;  %v5795_v53 = vld [vmem:[%s7192_s3 + $0x38] sm:$0xff] }
0x24e2   :  { %v6811_v29 = vpack.c.bf16 %v5377_v18, %v5376_v12  ;;  %v6815_v42 = vpack.c.bf16 %v5382_v25, %v5381_v20 }
0x24e3   :  { %v5385_v32 = vpop.permute.xlu1 %5384 }
0x24e4   :  { %v5387_v37 = vunpack.i.h.bf16 %v5385_v32  ;;  %v5386_v46 = vunpack.i.l.bf16 %v5385_v32  ;;  %3151 = vrot.lane.b32.xlu1 %v6811_v29, %s5831_s21 }
0x24e6   :  { %v6817_v17 = vpack.c.bf16 %v5387_v37, %v5386_v46 }
0x24e8   :  { %3147 = vrot.lane.b32.xlu0 %v6817_v17, %s5831_s21  ;;  %3149 = vrot.lane.b32.xlu1 %v6815_v42, %s5831_s21 }
0x24ec   :  { %3145 = vrot.lane.b32.xlu1 %v6804_v6, %s5831_s21 }
0x2556   :  { %v3152_v4 = vpop.permute.xlu1 %3151 }
0x2557   :  { %v3175_v19 = vsel %vm216_vm6, %v3152_v4, 0  ;;  %5218 = vmatprep.subr.msk.bf16.mxu0 %vm216_vm6, %v3152_v4 }
0x2558   :  { %5087 = vmatpush3.bf16.xpose.msra.mxu0 %v3175_v19 }
0x255a   :  { %v3150_v23 = vpop.permute.xlu1 %3149  ;;  %v3148_v16 = vpop.permute.xlu0 %3147 }
0x255b   :  { %5219 = vmatprep.subr.msk.bf16.mxu0 %vm216_vm6, %v3150_v23  ;;  %v3172_v26 = vsel %vm216_vm6, %v3150_v23, 0  ;;  %v3169_v52 = vsel %vm216_vm6, %v3148_v16, 0 }
0x255e   :  { %v3146_v14 = vpop.permute.xlu1 %3145 }
0x255f   :  { %v3166_v27 = vsel %vm216_vm6, %v3146_v14, 0 }
0x2560   :  { %5089 = vmatpush3.bf16.xpose.msra.mxu0 %v3172_v26 }
0x2561   :  { %5220 = vmatprep.subr.msk.bf16.mxu0 %vm216_vm6, %v3148_v16 }
0x2568   :  { %5091 = vmatpush3.bf16.xpose.msra.mxu0 %v3169_v52 }
0x2569   :  { %5221 = vmatprep.subr.msk.bf16.mxu0 %vm216_vm6, %v3146_v14 }
0x2570   :  { %5093 = vmatpush3.bf16.xpose.msra.mxu0 %v3166_v27 }
0x2571   :  { %5134 = vmatprep.subr.bf16.mxu0 %v5826_v15 }
0x2577   :  { %5095 = vmatmul.mubr.msk.bf16.vlgmr.msra.gmra.mxu0 %vm216_vm6, %v6817_v17 }
0x2578   :  { %5098 = vmatprep.mubr.msk.bf16.mxu0 %vm216_vm6, %v6815_v42  ;;  %5135 = vmatpush3.bf16.msra.mxu0 %v5486_v62 }
0x2579   :  { %5136 = vmatprep.subr.bf16.mxu0 %v5826_v15 }
0x257c   :  { %5137 = vmatpush3.bf16.msra.mxu0 %v5487_v33 }
0x257f   :  { %5099 = vmatmul.mubr.msk.bf16.gmra.mxu0 %vm216_vm6, %v6811_v29 }
0x2580   :  { %5138 = vmatprep.mubr.msk.bf16.mxu0 %vm5827_vm1, %v5826_v15 }
0x2587   :  { %5139 = vmatmul.mubr.msk.bf16.vlgmr.msra.gmra.mxu0 %vm59_vm0, %v6564_v9 }
0x2637   :  { %v5096_v34 = vpop.f32.mrf.mxu0 }
0x2638   :  { %v3244_v8 = vmul.f32 0.35355338, %v5096_v34 }
0x2639   :  { %v3211_v30 = vpop.f32.mrf.mxu0 }
0x263a   :  { %v3242_v22 = vmul.f32 0.35355338, %v3211_v30  ;;  %v3252_v39 = vadd.f32 %v5789_v38, %v3244_v8 }
0x263b   :  { %v5097_v1 = vpop.f32.mrf.mxu0 }
0x263c   :  { %v3250_v28 = vadd.f32 %v5788_v35, %v3242_v22  ;;  %v3245_v40 = vmul.f32 0.35355338, %v5097_v1  ;;  %v3264_v54 = vsel %vm322_vm7, %v3252_v39, -inf }
0x263d   :  { %v3214_v31 = vpop.f32.mrf.mxu0 }
0x263e   :  { %v3243_v43 = vmul.f32 0.35355338, %v3214_v31  ;;  %v3258_v9 = vsel %vm322_vm7, %v3250_v28, -inf  ;;  %v3253_v50 = vadd.f32 %v5791_v49, %v3245_v40 }
0x263f   :  { %3259 = vmax.xlane.f32.xlu0 %v3258_v9  ;;  %v5100_v36 = vpop.f32.mrf.mxu0 }
0x2640   :  { %v3251_v44 = vadd.f32 %v5790_v41, %v3243_v43  ;;  %v3248_v7 = vmul.f32 0.35355338, %v5100_v36  ;;  %v3267_v61 = vsel %vm322_vm7, %v3253_v50, -inf }
0x2641   :  { %v3227_v45 = vpop.f32.mrf.mxu0 }
0x2642   :  { %v3246_v51 = vmul.f32 0.35355338, %v3227_v45  ;;  %v3261_v55 = vsel %vm322_vm7, %v3251_v44, -inf  ;;  %v3256_v21 = vadd.f32 %v5794_v5, %v3248_v7 }
0x2643   :  { %3265 = vmax.xlane.f32.xlu0 %v3264_v54  ;;  %3262 = vmax.xlane.f32.xlu1 %v3261_v55  ;;  %v5101_v56 = vpop.f32.mrf.mxu0 }
0x2644   :  { %v3249_v2 = vmul.f32 0.35355338, %v5101_v56  ;;  %v3254_v59 = vadd.f32 %v5792_v57, %v3246_v51  ;;  %v3276_v19 = vsel %vm322_vm7, %v3256_v21, -inf }
0x2645   :  { %v3230_v3 = vpop.f32.mrf.mxu0 }
0x2646   :  { %v3247_v60 = vmul.f32 0.35355338, %v3230_v3  ;;  %v6885_v18 = vadd.f32 %v5795_v53, %v3249_v2  ;;  %v3270_v25 = vsel %vm322_vm7, %v3254_v59, -inf }
0x2647   :  { %3268 = vmax.xlane.f32.xlu0 %v3267_v61  ;;  %v3715_v63 = vpop.f32.mrf.mxu0 }
0x2648   :  { %v6876_v10 = vadd.f32 %v5793_v24, %v3247_v60  ;;  %v3716_v37 = vadd.f32 %v3715_v63, %v3668_v0  ;;  %v3279_v23 = vsel %vm322_vm7, %v6885_v18, -inf }
0x2649   :  { %v5140_v12 = vpop.f32.mrf.mxu0 }
0x264a   :  { %v3273_v20 = vsel %vm322_vm7, %v6876_v10, -inf }
0x264b   :  { %3271 = vmax.xlane.f32.xlu0 %v3270_v25  ;;  %v3718_v32 = vpop.f32.mrf.mxu0  ;;  %3274 = vmax.xlane.f32.xlu1 %v3273_v20 }
0x264c   :  { %v3719_v46 = vadd.f32 %v3718_v32, %v3668_v0 }
0x264d   :  { %v5141_v4 = vpop.f32.mrf.mxu0 }
0x264e   :  { %v6893_v26 = vpack.i.bf16 %v3719_v46, %v3716_v37  ;;  %v6895_v16 = vpack.c.bf16 %v3719_v46, %v3716_v37 }
0x264f   :  { %3277 = vmax.xlane.f32.xlu0 %v3276_v19  ;;  %3280 = vmax.xlane.f32.xlu1 %v3279_v23 }
0x26c8   :  { %v3260_v52 = vpop.xlane.xlu0 %3259 }
0x26c9   :  { %v3282_v14 = vsub.f32 %v3250_v28, %v3260_v52 }
0x26cb   :  { %v3290_v34 = vmul.f32 1.442695, %v3282_v14 }
0x26cc   :  { %v3266_v27 = vpop.xlane.xlu0 %3265  ;;  %v3263_v62 = vpop.xlane.xlu1 %3262 }
0x26cd   :  { %v3284_v33 = vsub.f32 %v3252_v39, %v3266_v27  ;;  %v3283_v8 = vsub.f32 %v3251_v44, %v3263_v62 }
0x26cf   :  { %v3294_v30 = vmul.f32 1.442695, %v3284_v33  ;;  %v3292_v35 = vmul.f32 1.442695, %v3283_v8 }
0x26d0   :  { %v3269_v22 = vpop.xlane.xlu0 %3268 }
0x26d1   :  { %5700 = vpow2.f32 %v3294_v30  ;;  %v3285_v1 = vsub.f32 %v3253_v50, %v3269_v22 }
0x26d2   :  { %5702 = vpow2.f32 %v3290_v34 }
0x26d3   :  { %v3296_v31 = vmul.f32 1.442695, %v3285_v1 }
0x26d4   :  { %v3272_v38 = vpop.xlane.xlu0 %3271  ;;  %v3275_v7 = vpop.xlane.xlu1 %3274 }
0x26d5   :  { %5704 = vpow2.f32 %v3296_v31  ;;  %v3286_v40 = vsub.f32 %v3254_v59, %v3272_v38  ;;  %v3287_v57 = vsub.f32 %v6876_v10, %v3275_v7 }
0x26d6   :  { %5706 = vpow2.f32 %v3292_v35 }
0x26d7   :  { %v3298_v36 = vmul.f32 1.442695, %v3286_v40  ;;  %v3300_v60 = vmul.f32 1.442695, %v3287_v57 }
0x26d8   :  { %v3278_v43 = vpop.xlane.xlu0 %3277  ;;  %v3281_v2 = vpop.xlane.xlu1 %3280 }
0x26d9   :  { %v3288_v9 = vsub.f32 %v3256_v21, %v3278_v43  ;;  %v3289_v3 = vsub.f32 %v6885_v18, %v3281_v2  ;;  %v5488_v43 = vld [vmem:[%s7195_s6 + $0xbc] sm:$0xff]  }
0x26db   :  { %v3302_v28 = vmul.f32 1.442695, %v3288_v9  ;;  %v3304_v59 = vmul.f32 1.442695, %v3289_v3 }
0x26dd   :  { %5708 = vpow2.f32 %v3302_v28 }
0x26de   :  { %v6897_v41 = vpop.eup %5700  ;;  %5710 = vpow2.f32 %v3298_v36 }
0x26df   :  { %v3312_v39 = vsel %vm322_vm7, %v6897_v41, 0.0  ;;  %v5703_v44 = vpop.eup %5702  ;;  %5712 = vpow2.f32 %v3304_v59 }
0x26e0   :  { %3313 = vadd.xlane.f32.xlu0 %v3312_v39  ;;  %v3306_v47 = vsel %vm322_vm7, %v5703_v44, 0.0  ;;  %5714 = vpow2.f32 %v3300_v60  ;;  %v5489_v39 = vld [vmem:[%s7195_s6 + $0xb4] sm:$0xff]  }
0x26e2   :  { %v6901_v45 = vpop.eup %5704 }
0x26e3   :  { %v3315_v49 = vsel %vm322_vm7, %v6901_v45, 0.0  ;;  %v5707_v50 = vpop.eup %5706 }
0x26e4   :  { %3307 = vadd.xlane.f32.xlu0 %v3306_v47  ;;  %3316 = vadd.xlane.f32.xlu1 %v3315_v49  ;;  %v3309_v51 = vsel %vm322_vm7, %v5707_v50, 0.0 }
0x26e8   :  { %3310 = vadd.xlane.f32.xlu1 %v3309_v51 }
0x26ea   :  { %v6907_v54 = vpop.eup %5708 }
0x26eb   :  { %v3324_v55 = vsel %vm322_vm7, %v6907_v54, 0.0  ;;  %v6911_v56 = vpop.eup %5710 }
0x26ec   :  { %3325 = vadd.xlane.f32.xlu0 %v3324_v55  ;;  %v3318_v58 = vsel %vm322_vm7, %v6911_v56, 0.0  ;;  %v5713_v61 = vpop.eup %5712 }
0x26ed   :  { %v3327_v63 = vsel %vm322_vm7, %v5713_v61, 0.0 }
0x26f0   :  { %3319 = vadd.xlane.f32.xlu0 %v3318_v58 }
0x26f9   :  { %3354 = vrot.lane.b32.xlu1 %v6815_v42, %s5832_s15  ;;  %v5715_v42 = vpop.eup %5714 }
0x26fd   :  { %3352 = vrot.lane.b32.xlu1 %v6817_v17, %s5832_s15  ;;  %v3321_v17 = vsel %vm322_vm7, %v5715_v42, 0.0 }
0x2706   :  { %3356 = vrot.lane.b32.xlu0 %v6811_v29, %s5832_s15 }
0x2721   :  { %3328 = vadd.xlane.f32.xlu1 %v3327_v63 }
0x2725   :  { %3322 = vadd.xlane.f32.xlu1 %v3321_v17 }
0x2736   :  { %3350 = vrot.lane.b32.xlu1 %v6804_v6, %s5832_s15 }
0x2769   :  { %v3314_v29 = vpop.xlane.xlu0 %3313 }
0x276d   :  { %v3308_v24 = vpop.xlane.xlu0 %3307  ;;  %v3317_v0 = vpop.xlane.xlu1 %3316 }
0x276e   :  { %5716 = vrcp.f32 %v3308_v24 }
0x2771   :  { %v3311_v10 = vpop.xlane.xlu1 %3310 }
0x2772   :  { %5718 = vrcp.f32 %v3311_v10  ;;  %v4584_v10 = vld [vmem:[%s7195_s6 + $0xc4] sm:$0x1] }
0x2773   :  { %5720 = vrcp.f32 %v3317_v0 }
0x2774   :  { %5722 = vrcp.f32 %v3314_v29 }
0x2775   :  { %v3326_v5 = vpop.xlane.xlu0 %3325  ;;  %v3355_v18 = vpop.permute.xlu1 %3354 }
0x2779   :  { %v3320_v21 = vpop.xlane.xlu0 %3319  ;;  %v3353_v46 = vpop.permute.xlu1 %3352 }
0x277b   :  { %v5717_v53 = vpop.eup %5716 }
0x277c   :  { %v3338_v20 = vmul.f32 %v5717_v53, %v5703_v44 }
0x277d   :  { %v3357_v12 = vpop.permute.xlu0 %3356 }
0x277e   :  { %5102 = vmatprep.subr.bf16.mxu1 %v3357_v12 }
0x277f   :  { %v5719_v25 = vpop.eup %5718  ;;  %5103 = vmatpush3.bf16.msra.mxu1 %v3357_v12 }
0x2780   :  { %5104 = vmatprep.subr.bf16.mxu1 %v3355_v18  ;;  %v3339_v32 = vmul.f32 %v5719_v25, %v5707_v50  ;;  %v5721_v4 = vpop.eup %5720 }
0x2781   :  { %v5723_v23 = vpop.eup %5722  ;;  %v3341_v52 = vmul.f32 %v5721_v4, %v6901_v45 }
0x2782   :  { %v3346_v37 = vpack.c.bf16 %v3339_v32, %v3338_v20  ;;  %v3340_v27 = vmul.f32 %v5723_v23, %v6897_v41 }
0x2783   :  { %5105 = vmatpush3.bf16.msra.mxu1 %v3355_v18 }
0x2784   :  { %5106 = vmatprep.subr.bf16.mxu1 %v3353_v46  ;;  %5110 = vmatprep.mubr.msk.bf16.mxu1 %vm322_vm7, %v3346_v37  ;;  %v3347_v62 = vpack.c.bf16 %v3341_v52, %v3340_v27 }
0x2787   :  { %5107 = vmatpush3.bf16.msra.mxu1 %v3353_v46 }
0x27aa   :  { %v3329_v6 = vpop.xlane.xlu1 %3328 }
0x27ab   :  { %5724 = vrcp.f32 %v3329_v6 }
0x27ac   :  { %5726 = vrcp.f32 %v3320_v21 }
0x27ad   :  { %5728 = vrcp.f32 %v3326_v5  ;;  %v3475_v5 = vunpack.c.l.bf16 %v4584_v10 }
0x27ae   :  { %v3323_v19 = vpop.xlane.xlu1 %3322 }
0x27af   :  { %5730 = vrcp.f32 %v3323_v19  ;;  %v3479_v21 = vrot.slane %v3475_v5, %v5921_v48  ;;  %v5490_v19 = vld [vmem:[%s7195_s6 + $0xd0] sm:$0xff]  }
0x27b2   :  { %v3351_v14 = vpop.permute.xlu1 %3350 }
0x27b3   :  { %5108 = vmatprep.subr.bf16.mxu1 %v3351_v14 }
0x27b4   :  { %5109 = vmatpush3.bf16.msra.mxu1 %v3351_v14 }
0x27b5   :  { %5118 = vmatprep.subr.bf16.mxu1 %v5826_v15 }
0x27b7   :  { %5111 = vmatmul.mubr.msk.bf16.vlgmr.msra.gmra.mxu1 %vm322_vm7, %v3347_v62 }
0x27b8   :  { %v5725_v33 = vpop.eup %5724  ;;  %5119 = vmatpush3.bf16.msra.mxu1 %v5488_v43 }
0x27b9   :  { %v5727_v34 = vpop.eup %5726  ;;  %v3345_v22 = vmul.f32 %v5725_v33, %v5713_v61  ;;  %5120 = vmatprep.subr.bf16.mxu1 %v5826_v15 }
0x27ba   :  { %v5729_v30 = vpop.eup %5728  ;;  %v3342_v1 = vmul.f32 %v5727_v34, %v6911_v56 }
0x27bb   :  { %v3344_v31 = vmul.f32 %v5729_v30, %v6907_v54 }
0x27bc   :  { %v5731_v8 = vpop.eup %5730  ;;  %5121 = vmatpush3.bf16.msra.mxu1 %v5489_v39 }
0x27bd   :  { %v3343_v35 = vmul.f32 %v5731_v8, %v5715_v42  ;;  %v3349_v40 = vpack.c.bf16 %v3345_v22, %v3344_v31  ;;  %5126 = vmatprep.subr.bf16.mxu1 %v5826_v15 }
0x27bf   :  { %v3348_v38 = vpack.c.bf16 %v3343_v35, %v3342_v1 }
0x27c1   :  { %5114 = vmatprep.mubr.msk.bf16.mxu1 %vm322_vm7, %v3348_v38 }
0x27c2   :  { %5115 = vmatmul.mubr.msk.bf16.gmra.mxu1 %vm322_vm7, %v3349_v40 }
0x27c3   :  { %5122 = vmatprep.mubr.msk.bf16.mxu1 %vm5827_vm1, %v5826_v15 }
0x2877   :  { %v5112_v9 = vpop.f32.mrf.mxu1 }
0x2879   :  { %v3408_v36 = vpop.f32.mrf.mxu1 }
0x287b   :  { %v5113_v28 = vpop.f32.mrf.mxu1 }
0x287c   :  { %v5388_v41 = vpack.i.bf16 %v5113_v28, %v5112_v9 }
0x287d   :  { %v3411_v44 = vpop.f32.mrf.mxu1 }
0x287e   :  { %5389 = vrot.lane.b32.xlu0 %v5388_v41, %s5833_s23 }
0x2882   :  { %v5116_v45 = vpop.f32.mrf.mxu1 }
0x2884   :  { %v3424_v47 = vpop.f32.mrf.mxu1 }
0x2886   :  { %v5117_v49 = vpop.f32.mrf.mxu1 }
0x2887   :  { %v5398_v50 = vpack.i.bf16 %v5117_v49, %v5116_v45 }
0x2888   :  { %v3427_v51 = vpop.f32.mrf.mxu1 }
0x2889   :  { %v5393_v54 = vpack.i.bf16 %v3427_v51, %v3424_v47  ;;  %5399 = vrot.lane.b32.xlu0 %v5398_v50, %s5834_s24 }
0x288b   :  { %5394 = vrot.lane.b32.xlu1 %v5393_v54, %s5835_s25 }
0x28f0   :  { %v5390_v55 = vpop.permute.xlu0 %5389 }
0x28f1   :  { %v5392_v56 = vunpack.i.h.bf16 %v5390_v55  ;;  %v5391_v58 = vunpack.i.l.bf16 %v5390_v55  ;;  %v4588_v55 = vld [vmem:[%s7196_s7 + $0x12] ss:$0 sm:$0xff] }
0x28f3   :  { %v3463_v59 = vsel %vm216_vm6, %v3408_v36, %v5391_v58  ;;  %v3464_v60 = vsel %vm216_vm6, %v3411_v44, %v5392_v56 }
0x28fb   :  { %v5400_v7 = vpop.permute.xlu0 %5399 }
0x28fc   :  { %v5402_v61 = vunpack.i.h.bf16 %v5400_v7  ;;  %v5401_v63 = vunpack.i.l.bf16 %v5400_v7 }
0x28fd   :  { %v5395_v2 = vpop.permute.xlu1 %5394 }
0x28fe   :  { %v5397_v3 = vunpack.i.h.bf16 %v5395_v2  ;;  %v5396_v57 = vunpack.i.l.bf16 %v5395_v2 }
0x2900   :  { %v3466_v42 = vsel %vm530_vm8, %v3464_v60, %v5397_v3  ;;  %v3465_v17 = vsel %vm530_vm8, %v3463_v59, %v5396_v57  ;;  %v4589_v59 = vld [vmem:[%s7196_s7 + $0x13] ss:$0 sm:$0xff] }
0x2901   :  { %v3468_v29 = vsel %vm533_vm9, %v3466_v42, %v5402_v61  ;;  %v3467_v24 = vsel %vm533_vm9, %v3465_v17, %v5401_v63 }
0x2902   :  { %v3474_v0 = vpack.c.bf16 %v3468_v29, %v3467_v24 }
0x2904   :  { %5123 = vmatmul.mubr.msk.bf16.vlgmr.msra.gmra.mxu1 %vm59_vm0, %v3474_v0 }
0x2905   :  { %5130 = vmatprep.mubr.msk.bf16.mxu1 %vm5827_vm1, %v5826_v15  ;;  %5127 = vmatpush3.bf16.msra.mxu1 %v5490_v19 }
0x2906   :  { %5128 = vmatprep.subr.bf16.mxu1 %v5826_v15 }
0x29c4   :  { %v3529_v53 = vpop.f32.mrf.mxu1 }
0x29c5   :  { %v3530_v18 = vadd.f32 %v3529_v53, %v3479_v21 }
0x29c6   :  { %v5124_v12 = vpop.f32.mrf.mxu1 }
0x29c7   :  { %v6963_v25 = vadd.f32 %v3530_v18, %v6773_v11  ;;  %v5491_v11 = vld [vmem:[%s7195_s6 + $0xc8] sm:$0xff]  }
0x29c8   :  { %v3532_v20 = vpop.f32.mrf.mxu1  ;;  %5129 = vmatpush3.bf16.msra.mxu1 %v5491_v11 }
0x29c9   :  { %v3533_v32 = vadd.f32 %v3532_v20, %v3479_v21  ;;  %v3540_v37 = vsel %vm59_vm0, %v6963_v25, 0.0  ;;  %v3783_v20 = vsel %vm216_vm6, %v6895_v16, 0 }
0x29ca   :  { %3541 = vadd.xlane.f32.xlu1 %v3540_v37  ;;  %v5125_v46 = vpop.f32.mrf.mxu1 }
0x29cb   :  { %v6968_v6 = vadd.f32 %v3533_v32, %v6778_v13  ;;  %v4594_v32 = vld [vmem:[%s7195_s6 + $0xd8] sm:$0x1] }
0x29cc   :  { %v3598_v37 = vunpack.c.l.bf16 %v4594_v32  ;;  %v5802_v32 = vld [vmem:[%s7193_s4 + $0x28] sm:$0xff] }
0x29cd   :  { %v3543_v4 = vsel %vm59_vm0, %v6968_v6, 0.0 }
0x29ce   :  { %3544 = vadd.xlane.f32.xlu0 %v3543_v4  ;;  %v3602_v4 = vrot.slane %v3598_v37, %v5921_v48 }
0x29db   :  { %5404 = vrot.lane.b32.xlu1 %v6893_v26, %s5829_s19 }
0x29df   :  { %5414 = vrot.lane.b32.xlu1 %v6893_v26, %s5830_s20 }
0x2a53   :  { %v3542_v13 = vpop.xlane.xlu1 %3541 }
0x2a54   :  { %v3546_v23 = vmul.f32 0.03125, %v3542_v13 }
0x2a56   :  { %v3548_v52 = vsub.f32 %v6963_v25, %v3546_v23 }
0x2a57   :  { %v5405_v14 = vpop.permute.xlu1 %5404  ;;  %v3545_v27 = vpop.xlane.xlu0 %3544 }
0x2a58   :  { %v5407_v62 = vunpack.i.h.bf16 %v5405_v14  ;;  %v5406_v33 = vunpack.i.l.bf16 %v5405_v14  ;;  %v3547_v34 = vmul.f32 0.03125, %v3545_v27  ;;  %v3550_v30 = vmul.f32 %v3548_v52, %v3548_v52 }
0x2a59   :  { %v3582_v58 = vmul.f32 %v4588_v55, %v3548_v52 }
0x2a5a   :  { %v6984_v8 = vpack.c.bf16 %v5407_v62, %v5406_v33  ;;  %v3549_v22 = vsub.f32 %v6968_v6, %v3547_v34  ;;  %v3552_v1 = vsel %vm59_vm0, %v3550_v30, 0.0 }
0x2a5b   :  { %3553 = vadd.xlane.f32.xlu0 %v3552_v1  ;;  %v5415_v10 = vpop.permute.xlu1 %5414 }
0x2a5c   :  { %5222 = vmatprep.subr.msk.bf16.mxu1 %vm216_vm6, %v6984_v8  ;;  %v3551_v35 = vmul.f32 %v3549_v22, %v3549_v22  ;;  %v3583_v7 = vmul.f32 %v4588_v55, %v3549_v22  ;;  %v3792_v0 = vsel %vm216_vm6, %v6984_v8, 0  ;;  %v5417_v5 = vunpack.i.h.bf16 %v5415_v10 }
0x2a5d   :  { %v5416_v21 = vunpack.i.l.bf16 %v5415_v10 }
0x2a5e   :  { %v3555_v31 = vsel %vm59_vm0, %v3551_v35, 0.0 }
0x2a5f   :  { %3556 = vadd.xlane.f32.xlu0 %v3555_v31  ;;  %v7006_v53 = vpack.c.bf16 %v5417_v5, %v5416_v21  ;;  %v5801_v5 = vld [vmem:[%s7193_s4 + $0x30] sm:$0xff] }
0x2a61   :  { %v3786_v12 = vsel %vm216_vm6, %v7006_v53, 0 }
0x2a75   :  { %5409 = vrot.lane.b32.xlu0 %v6893_v26, %s5828_s18 }
0x2ae4   :  { %v3554_v38 = vpop.xlane.xlu0 %3553 }
0x2ae5   :  { %v3558_v40 = vmul.f32 0.032258064, %v3554_v38 }
0x2ae7   :  { %5732 = vrsqrt.f32 %v3558_v40  ;;  %vm3562_vm12 = vcmp.eq.f32.partialorder %v3558_v40, inf  ;;  %v3565_v41 = vand.u32 2147483648, %v3558_v40  ;;  %vm3564_vm13 = vcmp.eq.f32.partialorder %v3558_v40, 0.0 }
0x2ae8   :  { %v3557_v43 = vpop.xlane.xlu0 %3556 }
0x2ae9   :  { %v3559_v9 = vmul.f32 0.032258064, %v3557_v43 }
0x2aeb   :  { %5734 = vrsqrt.f32 %v3559_v9  ;;  %vm3569_vm14 = vcmp.eq.f32.partialorder %v3559_v9, inf  ;;  %v3572_v50 = vand.u32 2147483648, %v3559_v9  ;;  %vm3571_vm15 = vcmp.eq.f32.partialorder %v3559_v9, 0.0 }
0x2aec   :  { %v5410_v57 = vpop.permute.xlu0 %5409 }
0x2aed   :  { %v5412_v61 = vunpack.i.h.bf16 %v5410_v57  ;;  %v5411_v63 = vunpack.i.l.bf16 %v5410_v57 }
0x2aef   :  { %v6999_v24 = vpack.c.bf16 %v5412_v61, %v5411_v63 }
0x2af1   :  { %v3789_v18 = vsel %vm216_vm6, %v6999_v24, 0 }
0x2af4   :  { %v5733_v36 = vpop.eup %5732 }
0x2af5   :  { %v3561_v28 = vmul.f32 %v5733_v36, %v3558_v40 }
0x2af7   :  { %v3563_v39 = vsel %vm3562_vm12, %v3558_v40, %v3561_v28 }
0x2af8   :  { %v5735_v44 = vpop.eup %5734  ;;  %v3566_v45 = vsel %vm3564_vm13, %v3565_v41, %v3563_v39  ;;  %v5796_v39 = vld [vmem:[%s7193_s4 + $0x10] sm:$0xff] }
0x2af9   :  { %v3574_v47 = vadd.f32 1e-06, %v3566_v45  ;;  %v3568_v49 = vmul.f32 %v5735_v44, %v3559_v9 }
0x2afb   :  { %5736 = vrcp.f32 %v3574_v47  ;;  %v3570_v26 = vsel %vm3569_vm14, %v3559_v9, %v3568_v49  ;;  %v5797_v49 = vld [vmem:[%s7193_s4] sm:$0xff] }
0x2afc   :  { %v3573_v51 = vsel %vm3571_vm15, %v3572_v50, %v3570_v26 }
0x2afd   :  { %v3575_v54 = vadd.f32 1e-06, %v3573_v51 }
0x2aff   :  { %5738 = vrcp.f32 %v3575_v54 }
0x2b08   :  { %v5737_v56 = vpop.eup %5736 }
0x2b09   :  { %v3584_v2 = vmul.f32 %v5737_v56, %v3582_v58 }
0x2b0b   :  { %v3590_v42 = vadd.f32 %v4589_v59, %v3584_v2 }
0x2b0c   :  { %v5739_v3 = vpop.eup %5738 }
0x2b0d   :  { %v3585_v60 = vmul.f32 %v5739_v3, %v3583_v7  ;;  %v5798_v7 = vld [vmem:[%s7193_s4 + $0x8] sm:$0xff]  ;;  %v5799_v3 = vld [vmem:[%s7193_s4 + $0x18] sm:$0xff] }
0x2b0f   :  { %v3591_v17 = vadd.f32 %v4589_v59, %v3585_v60 }
0x2b11   :  { %v3597_v29 = vpack.c.bf16 %v3591_v17, %v3590_v42  ;;  %v5800_v17 = vld [vmem:[%s7193_s4 + $0x20] sm:$0xff] }
0x2b13   :  { %5131 = vmatmul.mubr.msk.bf16.vlgmr.msra.gmra.mxu1 %vm59_vm0, %v3597_v29 }
0x2b14   :  { %5143 = vmatpush3.bf16.xpose.msra.mxu1 %v3792_v0 }
0x2b15   :  { %5223 = vmatprep.subr.msk.bf16.mxu1 %vm216_vm6, %v6999_v24 }
0x2b1c   :  { %5145 = vmatpush3.bf16.xpose.msra.mxu1 %v3789_v18 }
0x2b1d   :  { %5224 = vmatprep.subr.msk.bf16.mxu1 %vm216_vm6, %v7006_v53 }
0x2b24   :  { %5147 = vmatpush3.bf16.xpose.msra.mxu1 %v3786_v12 }
0x2b25   :  { %5225 = vmatprep.subr.msk.bf16.mxu1 %vm216_vm6, %v6895_v16 }
0x2b2c   :  { %5149 = vmatpush3.bf16.xpose.msra.mxu1 %v3783_v20 }
0x2b2d   :  { %5190 = vmatprep.subr.bf16.mxu1 %v5826_v15 }
0x2bd3   :  { %v3652_v46 = vpop.f32.mrf.mxu1 }
0x2bd4   :  { %v3653_v13 = vadd.f32 %v3652_v46, %v3602_v4  ;;  %v5803_v46 = vld [vmem:[%s7193_s4 + $0x38] sm:$0xff] }
0x2bd5   :  { %v5132_v19 = vpop.f32.mrf.mxu1 }
0x2bd7   :  { %v3655_v11 = vpop.f32.mrf.mxu1 }
0x2bd8   :  { %v3656_v23 = vadd.f32 %v3655_v11, %v3602_v4 }
0x2bd9   :  { %v5133_v52 = vpop.f32.mrf.mxu1 }
0x2bda   :  { %v5428_v14 = vpack.i.bf16 %v3656_v23, %v3653_v13  ;;  %v3742_v27 = vpack.c.bf16 %v3656_v23, %v3653_v13 }
0x2bdc   :  { %5429 = vrot.lane.b32.xlu0 %v5428_v14, %s5829_s19  ;;  %5419 = vrot.lane.b32.xlu1 %v5428_v14, %s5830_s20 }
0x2bdd   :  { %5150 = vmatprep.mubr.msk.bf16.mxu1 %vm216_vm6, %v3742_v27 }
0x2be0   :  { %5424 = vrot.lane.b32.xlu1 %v5428_v14, %s5828_s18 }
0x2c4e   :  { %v5420_v62 = vpop.permute.xlu1 %5419  ;;  %v5430_v22 = vpop.permute.xlu0 %5429 }
0x2c4f   :  { %v5422_v33 = vunpack.i.h.bf16 %v5420_v62  ;;  %v5421_v34 = vunpack.i.l.bf16 %v5420_v62  ;;  %v5432_v38 = vunpack.i.h.bf16 %v5430_v22  ;;  %v5431_v40 = vunpack.i.l.bf16 %v5430_v22 }
0x2c51   :  { %v3743_v30 = vpack.c.bf16 %v5422_v33, %v5421_v34  ;;  %v3745_v9 = vpack.c.bf16 %v5432_v38, %v5431_v40 }
0x2c52   :  { %v5425_v1 = vpop.permute.xlu1 %5424 }
0x2c53   :  { %v5427_v35 = vunpack.i.h.bf16 %v5425_v1  ;;  %v5426_v31 = vunpack.i.l.bf16 %v5425_v1  ;;  %5151 = vmatmul.mubr.msk.bf16.vlgmr.msra.gmra.mxu1 %vm216_vm6, %v3743_v30 }
0x2c55   :  { %v3744_v43 = vpack.c.bf16 %v5427_v35, %v5426_v31 }
0x2c57   :  { %5154 = vmatprep.mubr.msk.bf16.mxu1 %vm216_vm6, %v3744_v43 }
0x2c5b   :  { %5155 = vmatmul.mubr.msk.bf16.gmra.mxu1 %vm216_vm6, %v3745_v9 }
0x2c5c   :  { %5198 = vmatprep.mubr.msk.bf16.mxu1 %vm5827_vm1, %v5826_v15 }
0x2d13   :  { %v5152_v36 = vpop.f32.mrf.mxu1 }
0x2d14   :  { %v3861_v28 = vmul.f32 0.35355338, %v5152_v36 }
0x2d15   :  { %v3828_v41 = vpop.f32.mrf.mxu1 }
0x2d16   :  { %v3869_v44 = vadd.f32 %v5796_v39, %v3861_v28  ;;  %v3859_v45 = vmul.f32 0.35355338, %v3828_v41 }
0x2d17   :  { %v5153_v47 = vpop.f32.mrf.mxu1 }
0x2d18   :  { %v3867_v50 = vadd.f32 %v5797_v49, %v3859_v45  ;;  %v3881_v26 = vsel %vm322_vm7, %v3869_v44, -inf  ;;  %v3862_v51 = vmul.f32 0.35355338, %v5153_v47 }
0x2d19   :  { %3882 = vmax.xlane.f32.xlu0 %v3881_v26  ;;  %v3831_v54 = vpop.f32.mrf.mxu1 }
0x2d1a   :  { %v3860_v55 = vmul.f32 0.35355338, %v3831_v54  ;;  %v3875_v56 = vsel %vm322_vm7, %v3867_v50, -inf  ;;  %v3870_v57 = vadd.f32 %v5799_v3, %v3862_v51 }
0x2d1b   :  { %3876 = vmax.xlane.f32.xlu1 %v3875_v56  ;;  %v5156_v58 = vpop.f32.mrf.mxu1 }
0x2d1c   :  { %v3868_v2 = vadd.f32 %v5798_v7, %v3860_v55  ;;  %v3865_v60 = vmul.f32 0.35355338, %v5156_v58  ;;  %v3884_v10 = vsel %vm322_vm7, %v3870_v57, -inf }
0x2d1d   :  { %v3844_v59 = vpop.f32.mrf.mxu1 }
0x2d1e   :  { %v3863_v61 = vmul.f32 0.35355338, %v3844_v59  ;;  %v3878_v63 = vsel %vm322_vm7, %v3868_v2, -inf  ;;  %v3873_v21 = vadd.f32 %v5801_v5, %v3865_v60 }
0x2d1f   :  { %3879 = vmax.xlane.f32.xlu0 %v3878_v63  ;;  %v5157_v42 = vpop.f32.mrf.mxu1 }
0x2d20   :  { %v3871_v29 = vadd.f32 %v5800_v17, %v3863_v61  ;;  %v3866_v18 = vmul.f32 0.35355338, %v5157_v42  ;;  %v3893_v19 = vsel %vm322_vm7, %v3873_v21, -inf }
0x2d21   :  { %v3847_v0 = vpop.f32.mrf.mxu1 }
0x2d22   :  { %v3864_v12 = vmul.f32 0.35355338, %v3847_v0  ;;  %v3887_v20 = vsel %vm322_vm7, %v3871_v29, -inf  ;;  %v3874_v4 = vadd.f32 %v5803_v46, %v3866_v18 }
0x2d23   :  { %3885 = vmax.xlane.f32.xlu0 %v3884_v10  ;;  %3888 = vmax.xlane.f32.xlu1 %v3887_v20 }
0x2d24   :  { %v3872_v37 = vadd.f32 %v5802_v32, %v3864_v12  ;;  %v3896_v13 = vsel %vm322_vm7, %v3874_v4, -inf }
0x2d26   :  { %v3890_v11 = vsel %vm322_vm7, %v3872_v37, -inf }
0x2d27   :  { %3894 = vmax.xlane.f32.xlu1 %v3893_v19  ;;  %3891 = vmax.xlane.f32.xlu0 %v3890_v11 }
0x2d2b   :  { %3897 = vmax.xlane.f32.xlu0 %v3896_v13 }
0x2d38   :  { %3977 = vrot.lane.b32.xlu1 %v6984_v8, %s5831_s21 }
0x2da2   :  { %v3883_v23 = vpop.xlane.xlu0 %3882 }
0x2da3   :  { %v3901_v52 = vsub.f32 %v3869_v44, %v3883_v23 }
0x2da4   :  { %v3877_v14 = vpop.xlane.xlu1 %3876 }
0x2da5   :  { %v3911_v27 = vmul.f32 1.442695, %v3901_v52  ;;  %v3899_v62 = vsub.f32 %v3867_v50, %v3877_v14 }
0x2da7   :  { %5740 = vpow2.f32 %v3911_v27  ;;  %v3907_v33 = vmul.f32 1.442695, %v3899_v62 }
0x2da8   :  { %v3880_v34 = vpop.xlane.xlu0 %3879 }
0x2da9   :  { %5742 = vpow2.f32 %v3907_v33  ;;  %v3900_v30 = vsub.f32 %v3868_v2, %v3880_v34 }
0x2dab   :  { %v3909_v31 = vmul.f32 1.442695, %v3900_v30 }
0x2dac   :  { %v3886_v22 = vpop.xlane.xlu0 %3885  ;;  %v3889_v1 = vpop.xlane.xlu1 %3888 }
0x2dad   :  { %v3902_v35 = vsub.f32 %v3870_v57, %v3886_v22  ;;  %v3903_v40 = vsub.f32 %v3871_v29, %v3889_v1 }
0x2daf   :  { %v3913_v38 = vmul.f32 1.442695, %v3902_v35  ;;  %v3915_v36 = vmul.f32 1.442695, %v3903_v40 }
0x2db0   :  { %v3895_v43 = vpop.xlane.xlu1 %3894  ;;  %v3892_v9 = vpop.xlane.xlu0 %3891 }
0x2db1   :  { %5744 = vpow2.f32 %v3913_v38  ;;  %v3905_v8 = vsub.f32 %v3873_v21, %v3895_v43  ;;  %v3904_v41 = vsub.f32 %v3872_v37, %v3892_v9  ;;  %v5492_v38 = vld [vmem:[%s7195_s6 + $0xf8] sm:$0xff]   ;;  %v5493_v9 = vld [vmem:[%s7195_s6 + $0xf0] sm:$0xff]  }
0x2db2   :  { %5746 = vpow2.f32 %v3909_v31 }
0x2db3   :  { %v3919_v28 = vmul.f32 1.442695, %v3905_v8  ;;  %v3917_v26 = vmul.f32 1.442695, %v3904_v41 }
0x2db4   :  { %v7066_v39 = vpop.eup %5740  ;;  %v3978_v44 = vpop.permute.xlu1 %3977 }
0x2db5   :  { %v3898_v45 = vpop.xlane.xlu0 %3897  ;;  %5748 = vpow2.f32 %v3919_v28  ;;  %5158 = vmatprep.subr.bf16.mxu0 %v3978_v44  ;;  %v3929_v49 = vsel %vm322_vm7, %v7066_v39, 0.0 }
0x2db6   :  { %v3906_v47 = vsub.f32 %v3874_v4, %v3898_v45  ;;  %v5743_v50 = vpop.eup %5742  ;;  %3930 = vadd.xlane.f32.xlu1 %v3929_v49  ;;  %5159 = vmatpush3.bf16.msra.mxu0 %v3978_v44  ;;  %5750 = vpow2.f32 %v3915_v36 }
0x2db7   :  { %v3923_v54 = vsel %vm322_vm7, %v5743_v50, 0.0 }
0x2db8   :  { %v3921_v51 = vmul.f32 1.442695, %v3906_v47 }
0x2dba   :  { %5752 = vpow2.f32 %v3921_v51  ;;  %3924 = vadd.xlane.f32.xlu1 %v3923_v54 }
0x2dbb   :  { %5754 = vpow2.f32 %v3917_v26 }
0x2dbe   :  { %v5745_v55 = vpop.eup %5744 }
0x2dbf   :  { %v3932_v56 = vsel %vm322_vm7, %v5745_v55, 0.0  ;;  %v5747_v58 = vpop.eup %5746 }
0x2dc0   :  { %3933 = vadd.xlane.f32.xlu0 %v3932_v56  ;;  %v3926_v3 = vsel %vm322_vm7, %v5747_v58, 0.0 }
0x2dc2   :  { %v7072_v7 = vpop.eup %5748 }
0x2dc3   :  { %v3941_v2 = vsel %vm322_vm7, %v7072_v7, 0.0  ;;  %v5751_v57 = vpop.eup %5750 }
0x2dc4   :  { %3942 = vadd.xlane.f32.xlu1 %v3941_v2  ;;  %3927 = vadd.xlane.f32.xlu0 %v3926_v3  ;;  %v3935_v60 = vsel %vm322_vm7, %v5751_v57, 0.0 }
0x2dc7   :  { %v5753_v59 = vpop.eup %5752 }
0x2dc8   :  { %v3944_v61 = vsel %vm322_vm7, %v5753_v59, 0.0  ;;  %v5755_v63 = vpop.eup %5754  ;;  %3936 = vadd.xlane.f32.xlu1 %v3935_v60 }
0x2dc9   :  { %3945 = vadd.xlane.f32.xlu0 %v3944_v61  ;;  %v3938_v42 = vsel %vm322_vm7, %v5755_v63, 0.0 }
0x2dcd   :  { %3939 = vadd.xlane.f32.xlu0 %v3938_v42 }
0x2dd9   :  { %3973 = vrot.lane.b32.xlu1 %v7006_v53, %s5831_s21 }
0x2ddd   :  { %3971 = vrot.lane.b32.xlu1 %v6895_v16, %s5831_s21 }
0x2de3   :  { %3975 = vrot.lane.b32.xlu0 %v6999_v24, %s5831_s21 }
0x2e3f   :  { %v3931_v17 = vpop.xlane.xlu1 %3930 }
0x2e43   :  { %v3925_v29 = vpop.xlane.xlu1 %3924 }
0x2e44   :  { %5756 = vrcp.f32 %v3925_v29 }
0x2e49   :  { %v3934_v0 = vpop.xlane.xlu0 %3933 }
0x2e4d   :  { %v3943_v10 = vpop.xlane.xlu1 %3942  ;;  %v3928_v5 = vpop.xlane.xlu0 %3927 }
0x2e4e   :  { %5758 = vrcp.f32 %v3928_v5 }
0x2e4f   :  { %5760 = vrcp.f32 %v3934_v0 }
0x2e50   :  { %5762 = vrcp.f32 %v3931_v17  ;;  %v4618_v17 = vld [vmem:[%s7195_s6 + $0x100] sm:$0x1] }
0x2e51   :  { %v3937_v21 = vpop.xlane.xlu1 %3936  ;;  %v5757_v20 = vpop.eup %5756  ;;  %v4096_v29 = vunpack.c.l.bf16 %v4618_v17 }
0x2e52   :  { %v3946_v18 = vpop.xlane.xlu0 %3945  ;;  %5764 = vrcp.f32 %v3937_v21  ;;  %v3955_v37 = vmul.f32 %v5757_v20, %v5743_v50 }
0x2e53   :  { %v4100_v0 = vrot.slane %v4096_v29, %v5921_v48 }
0x2e55   :  { %v3974_v53 = vpop.permute.xlu1 %3973 }
0x2e56   :  { %v3940_v12 = vpop.xlane.xlu0 %3939 }
0x2e57   :  { %5766 = vrcp.f32 %v3940_v12 }
0x2e58   :  { %5768 = vrcp.f32 %v3946_v18 }
0x2e59   :  { %5770 = vrcp.f32 %v3943_v10  ;;  %v3972_v19 = vpop.permute.xlu1 %3971 }
0x2e5a   :  { %v3976_v16 = vpop.permute.xlu0 %3975 }
0x2e5b   :  { %5160 = vmatprep.subr.bf16.mxu0 %v3976_v16  ;;  %v5759_v24 = vpop.eup %5758 }
0x2e5c   :  { %5161 = vmatpush3.bf16.msra.mxu0 %v3976_v16  ;;  %v5761_v32 = vpop.eup %5760  ;;  %v3956_v46 = vmul.f32 %v5759_v24, %v5747_v58 }
0x2e5d   :  { %5162 = vmatprep.subr.bf16.mxu0 %v3974_v53  ;;  %v5763_v4 = vpop.eup %5762  ;;  %v3958_v13 = vmul.f32 %v5761_v32, %v5745_v55 }
0x2e5e   :  { %v3963_v11 = vpack.c.bf16 %v3956_v46, %v3955_v37  ;;  %v3957_v52 = vmul.f32 %v5763_v4, %v7066_v39 }
0x2e5f   :  { %v5765_v23 = vpop.eup %5764 }
0x2e60   :  { %5163 = vmatpush3.bf16.msra.mxu0 %v3974_v53  ;;  %5166 = vmatprep.mubr.msk.bf16.mxu0 %vm322_vm7, %v3963_v11  ;;  %v3964_v27 = vpack.c.bf16 %v3958_v13, %v3957_v52  ;;  %v3959_v62 = vmul.f32 %v5765_v23, %v5751_v57 }
0x2e61   :  { %5164 = vmatprep.subr.bf16.mxu0 %v3972_v19 }
0x2e64   :  { %v5767_v14 = vpop.eup %5766  ;;  %5165 = vmatpush3.bf16.msra.mxu0 %v3972_v19 }
0x2e65   :  { %v3960_v33 = vmul.f32 %v5767_v14, %v5755_v63  ;;  %5174 = vmatprep.subr.bf16.mxu0 %v5826_v15  ;;  %v5769_v34 = vpop.eup %5768  ;;  %v5494_v14 = vld [vmem:[%s7195_s6 + $0x10c] sm:$0xff]  }
0x2e66   :  { %v5771_v22 = vpop.eup %5770  ;;  %v3962_v1 = vmul.f32 %v5769_v34, %v5753_v59 }
0x2e67   :  { %5167 = vmatmul.mubr.msk.bf16.vlgmr.msra.gmra.mxu0 %vm322_vm7, %v3964_v27  ;;  %v3965_v30 = vpack.c.bf16 %v3960_v33, %v3959_v62  ;;  %v3961_v35 = vmul.f32 %v5771_v22, %v7072_v7  ;;  %v5495_v27 = vld [vmem:[%s7195_s6 + $0x104] sm:$0xff]   ;;  %v5496_v62 = vld [vmem:[%s7195_s6 + $0x130] sm:$0xff]  }
0x2e68   :  { %5175 = vmatpush3.bf16.msra.mxu0 %v5492_v38  ;;  %5191 = vmatpush3.bf16.msra.mxu1 %v5496_v62  ;;  %v5497_v33 = vld [vmem:[%s7195_s6 + $0x128] sm:$0xff]  }
0x2e69   :  { %5170 = vmatprep.mubr.msk.bf16.mxu0 %vm322_vm7, %v3965_v30  ;;  %v3966_v31 = vpack.c.bf16 %v3962_v1, %v3961_v35  ;;  %5176 = vmatprep.subr.bf16.mxu0 %v5826_v15 }
0x2e6a   :  { %5192 = vmatprep.subr.bf16.mxu1 %v5826_v15 }
0x2e6c   :  { %5177 = vmatpush3.bf16.msra.mxu0 %v5493_v9  ;;  %5193 = vmatpush3.bf16.msra.mxu1 %v5497_v33 }
0x2e6d   :  { %5182 = vmatprep.subr.bf16.mxu0 %v5826_v15  ;;  %5194 = vmatprep.subr.bf16.mxu1 %v5826_v15 }
0x2e6f   :  { %5171 = vmatmul.mubr.msk.bf16.gmra.mxu0 %vm322_vm7, %v3966_v31 }
0x2e70   :  { %5178 = vmatprep.mubr.msk.bf16.mxu0 %vm5827_vm1, %v5826_v15 }
0x2f27   :  { %v5168_v40 = vpop.f32.mrf.mxu0 }
0x2f29   :  { %v4029_v43 = vpop.f32.mrf.mxu0 }
0x2f2b   :  { %v5169_v8 = vpop.f32.mrf.mxu0 }
0x2f2c   :  { %v5433_v36 = vpack.i.bf16 %v5169_v8, %v5168_v40 }
0x2f2d   :  { %v4032_v28 = vpop.f32.mrf.mxu0 }
0x2f2e   :  { %5434 = vrot.lane.b32.xlu1 %v5433_v36, %s5833_s23 }
0x2f2f   :  { %v5172_v41 = vpop.f32.mrf.mxu0 }
0x2f31   :  { %v4045_v39 = vpop.f32.mrf.mxu0 }
0x2f33   :  { %v5173_v44 = vpop.f32.mrf.mxu0 }
0x2f34   :  { %v5443_v45 = vpack.i.bf16 %v5173_v44, %v5172_v41 }
0x2f35   :  { %v4048_v47 = vpop.f32.mrf.mxu0 }
0x2f36   :  { %v5438_v49 = vpack.i.bf16 %v4048_v47, %v4045_v39  ;;  %5444 = vrot.lane.b32.xlu1 %v5443_v45, %s5834_s24  ;;  %v4622_v45 = vld [vmem:[%s7196_s7 + $0x14] ss:$0 sm:$0xff]  ;;  %s5804_s24 = scalar_lea.vmem %s4429_s0, 256 }
0x2f37   :  { %p5805_p0 = scmp.ne.s32.totalorder %s4429_s0, %s5804_s24  ;;  %p5810_p2 = scmp.lt.s32.totalorder %s5804_s24, %s5804_s24 }
0x2f38   :  { %5439 = vrot.lane.b32.xlu0 %v5438_v49, %s5835_s25 }
0x2f39   :  { %p5811_p3 = por %p5810_p2, %p5809_p1 }
0x2f3b   :  { %p5812_p4 = pnand %p5811_p3, %p5805_p0 }
0x2fa0   :  { %v5435_v50 = vpop.permute.xlu1 %5434 }
0x2fa1   :  { %v5437_v26 = vunpack.i.h.bf16 %v5435_v50  ;;  %v5436_v51 = vunpack.i.l.bf16 %v5435_v50 }
0x2fa3   :  { %v4084_v7 = vsel %vm216_vm6, %v4029_v43, %v5436_v51  ;;  %v4085_v2 = vsel %vm216_vm6, %v4032_v28, %v5437_v26 }
0x2fa8   :  { %v5445_v54 = vpop.permute.xlu1 %5444 }
0x2fa9   :  { %v5447_v3 = vunpack.i.h.bf16 %v5445_v54  ;;  %v5446_v57 = vunpack.i.l.bf16 %v5445_v54  ;;  %v4623_v54 = vld [vmem:[%s7196_s7 + $0x15] ss:$0 sm:$0xff] }
0x2faa   :  { %v5440_v55 = vpop.permute.xlu0 %5439 }
0x2fab   :  { %v5442_v56 = vunpack.i.h.bf16 %v5440_v55  ;;  %v5441_v58 = vunpack.i.l.bf16 %v5440_v55 }
0x2fad   :  { %v4087_v59 = vsel %vm530_vm8, %v4085_v2, %v5442_v56  ;;  %v4086_v60 = vsel %vm530_vm8, %v4084_v7, %v5441_v58  ;;  %v5498_v2 = vld [vmem:[%s7195_s6 + $0x120] sm:$0xff]  }
0x2fae   :  { %v4089_v61 = vsel %vm533_vm9, %v4087_v59, %v5447_v3  ;;  %v4088_v63 = vsel %vm533_vm9, %v4086_v60, %v5446_v57  ;;  %5195 = vmatpush3.bf16.msra.mxu1 %v5498_v2  ;;  %v5499_v3 = vld [vmem:[%s7195_s6 + $0x118] sm:$0xff]   ;;  %v4628_v57 = vld [vmem:[%s7195_s6 + $0x114] sm:$0x1] }
0x2faf   :  { %v4095_v42 = vpack.c.bf16 %v4089_v61, %v4088_v63  ;;  %5196 = vmatprep.subr.bf16.mxu1 %v5826_v15  ;;  %v4219_v59 = vunpack.c.l.bf16 %v4628_v57 }
0x2fb1   :  { %5179 = vmatmul.mubr.msk.bf16.vlgmr.msra.gmra.mxu0 %vm59_vm0, %v4095_v42  ;;  %v4223_v60 = vrot.slane %v4219_v59, %v5921_v48 }
0x2fb2   :  { %5186 = vmatprep.mubr.msk.bf16.mxu0 %vm5827_vm1, %v5826_v15  ;;  %5183 = vmatpush3.bf16.msra.mxu0 %v5494_v14 }
0x2fb3   :  { %5184 = vmatprep.subr.bf16.mxu0 %v5826_v15  ;;  %5197 = vmatpush3.bf16.msra.mxu1 %v5499_v3 }
0x2fb6   :  { %5185 = vmatpush3.bf16.msra.mxu0 %v5495_v27 }
0x3071   :  { %v4150_v10 = vpop.f32.mrf.mxu0 }
0x3072   :  { %v4151_v5 = vadd.f32 %v4150_v10, %v4100_v0 }
0x3073   :  { %v5180_v21 = vpop.f32.mrf.mxu0 }
0x3074   :  { %v7120_v18 = vadd.f32 %v4151_v5, %v6963_v25  ;;  %v4640_v21 = vld [vmem:[%s7195_s6 + $0x138] sm:$0x1] }
0x3075   :  { %v4153_v12 = vpop.f32.mrf.mxu0 }
0x3076   :  { %v4154_v53 = vadd.f32 %v4153_v12, %v4100_v0  ;;  %v4161_v16 = vsel %vm59_vm0, %v7120_v18, 0.0  ;;  %v4292_v12 = vunpack.c.l.bf16 %v4640_v21 }
0x3077   :  { %4162 = vadd.xlane.f32.xlu0 %v4161_v16  ;;  %v5181_v20 = vpop.f32.mrf.mxu0 }
0x3078   :  { %v7125_v24 = vadd.f32 %v4154_v53, %v6968_v6  ;;  %v4296_v53 = vrot.slane %v4292_v12, %v5921_v48 }
0x307a   :  { %v4164_v32 = vsel %vm59_vm0, %v7125_v24, 0.0 }
0x307b   :  { %4165 = vadd.xlane.f32.xlu1 %v4164_v32 }
0x3100   :  { %v4163_v37 = vpop.xlane.xlu0 %4162 }
0x3101   :  { %v4167_v46 = vmul.f32 0.03125, %v4163_v37 }
0x3103   :  { %v4169_v4 = vsub.f32 %v7120_v18, %v4167_v46 }
0x3104   :  { %v4166_v25 = vpop.xlane.xlu1 %4165 }
0x3105   :  { %v4168_v19 = vmul.f32 0.03125, %v4166_v25  ;;  %v4171_v11 = vmul.f32 %v4169_v4, %v4169_v4  ;;  %v4203_v49 = vmul.f32 %v4622_v45, %v4169_v4 }
0x3107   :  { %v4170_v13 = vsub.f32 %v7125_v24, %v4168_v19  ;;  %v4173_v23 = vsel %vm59_vm0, %v4171_v11, 0.0 }
0x3108   :  { %4174 = vadd.xlane.f32.xlu0 %v4173_v23 }
0x3109   :  { %v4172_v52 = vmul.f32 %v4170_v13, %v4170_v13  ;;  %v4204_v50 = vmul.f32 %v4622_v45, %v4170_v13  ;;  %v4646_v45 = vld [vmem:[%s7196_s7 + $0x16] ss:$0 sm:$0xff] }
0x310b   :  { %v4176_v6 = vsel %vm59_vm0, %v4172_v52, 0.0 }
0x310c   :  { %4177 = vadd.xlane.f32.xlu0 %v4176_v6 }
0x3191   :  { %v4175_v34 = vpop.xlane.xlu0 %4174 }
0x3192   :  { %v4179_v30 = vmul.f32 0.032258064, %v4175_v34 }
0x3194   :  { %5772 = vrsqrt.f32 %v4179_v30  ;;  %vm4183_vm1 = vcmp.eq.f32.partialorder %v4179_v30, inf  ;;  %v4186_v38 = vand.u32 2147483648, %v4179_v30  ;;  %vm4185_vm6 = vcmp.eq.f32.partialorder %v4179_v30, 0.0 }
0x3195   :  { %v4178_v22 = vpop.xlane.xlu0 %4177 }
0x3196   :  { %v4180_v1 = vmul.f32 0.032258064, %v4178_v22 }
0x3198   :  { %5774 = vrsqrt.f32 %v4180_v1  ;;  %vm4190_vm8 = vcmp.eq.f32.partialorder %v4180_v1, inf  ;;  %v4193_v28 = vand.u32 2147483648, %v4180_v1  ;;  %vm4192_vm9 = vcmp.eq.f32.partialorder %v4180_v1, 0.0 }
0x31a1   :  { %v5773_v35 = vpop.eup %5772 }
0x31a2   :  { %v4182_v31 = vmul.f32 %v5773_v35, %v4179_v30 }
0x31a4   :  { %v4184_v40 = vsel %vm4183_vm1, %v4179_v30, %v4182_v31 }
0x31a5   :  { %v5775_v43 = vpop.eup %5774  ;;  %v4187_v9 = vsel %vm4185_vm6, %v4186_v38, %v4184_v40 }
0x31a6   :  { %v4195_v8 = vadd.f32 1e-06, %v4187_v9  ;;  %v4189_v36 = vmul.f32 %v5775_v43, %v4180_v1 }
0x31a8   :  { %5776 = vrcp.f32 %v4195_v8  ;;  %v4191_v41 = vsel %vm4190_vm8, %v4180_v1, %v4189_v36 }
0x31a9   :  { %v4194_v39 = vsel %vm4192_vm9, %v4193_v28, %v4191_v41 }
0x31aa   :  { %v4196_v44 = vadd.f32 1e-06, %v4194_v39 }
0x31ac   :  { %5778 = vrcp.f32 %v4196_v44 }
0x31b5   :  { %v5777_v47 = vpop.eup %5776 }
0x31b6   :  { %v4205_v26 = vmul.f32 %v5777_v47, %v4203_v49 }
0x31b8   :  { %v4211_v56 = vadd.f32 %v4623_v54, %v4205_v26 }
0x31b9   :  { %v5779_v51 = vpop.eup %5778 }
0x31ba   :  { %v4206_v55 = vmul.f32 %v5779_v51, %v4204_v50  ;;  %v4647_v50 = vld [vmem:[%s7196_s7 + $0x17] ss:$0 sm:$0xff] }
0x31bc   :  { %v4212_v58 = vadd.f32 %v4623_v54, %v4206_v55 }
0x31be   :  { %v4218_v7 = vpack.c.bf16 %v4212_v58, %v4211_v56 }
0x31c0   :  { %5187 = vmatmul.mubr.msk.bf16.vlgmr.msra.gmra.mxu0 %vm59_vm0, %v4218_v7 }
0x3280   :  { %v4273_v61 = vpop.f32.mrf.mxu0 }
0x3281   :  { %v4274_v42 = vadd.f32 %v4273_v61, %v4223_v60 }
0x3282   :  { %v5188_v63 = vpop.f32.mrf.mxu0 }
0x3283   :  { %v4280_v10 = vmax.f32 %v4274_v42, 0.0 }
0x3284   :  { %v4276_v17 = vpop.f32.mrf.mxu0 }
0x3285   :  { %v4277_v29 = vadd.f32 %v4276_v17, %v4223_v60 }
0x3286   :  { %v5189_v0 = vpop.f32.mrf.mxu0 }
0x3287   :  { %v4281_v15 = vmax.f32 %v4277_v29, 0.0 }
0x3289   :  { %v4291_v5 = vpack.c.bf16 %v4281_v15, %v4280_v10 }
0x328b   :  { %5199 = vmatmul.mubr.msk.bf16.vlgmr.msra.gmra.mxu1 %vm322_vm7, %v4291_v5 }
0x334b   :  { %v4358_v16 = vpop.f32.mrf.mxu1 }
0x334c   :  { %v4359_v20 = vadd.f32 %v4358_v16, %v4296_v53 }
0x334d   :  { %v5200_v32 = vpop.f32.mrf.mxu1 }
0x334e   :  { %v4365_v37 = vadd.f32 %v4359_v20, %v7120_v18 }
0x334f   :  { %v4361_v46 = vpop.f32.mrf.mxu1 }
0x3350   :  { %v4362_v4 = vadd.f32 %v4361_v46, %v4296_v53  ;;  %v4369_v25 = vsel %vm59_vm0, %v4365_v37, 0.0 }
0x3351   :  { %4370 = vadd.xlane.f32.xlu0 %v4369_v25  ;;  %v5201_v19 = vpop.f32.mrf.mxu1 }
0x3352   :  { %v4366_v11 = vadd.f32 %v4362_v4, %v7125_v24 }
0x3354   :  { %v4372_v13 = vsel %vm59_vm0, %v4366_v11, 0.0 }
0x3355   :  { %4373 = vadd.xlane.f32.xlu1 %v4372_v13 }
0x33da   :  { %v4371_v23 = vpop.xlane.xlu0 %4370 }
0x33db   :  { %v4375_v52 = vmul.f32 0.03125, %v4371_v23 }
0x33dd   :  { %v4377_v6 = vsub.f32 %v4365_v37, %v4375_v52 }
0x33de   :  { %v4374_v48 = vpop.xlane.xlu1 %4373 }
0x33df   :  { %v4376_v14 = vmul.f32 0.03125, %v4374_v48  ;;  %v4379_v27 = vmul.f32 %v4377_v6, %v4377_v6  ;;  %v4411_v47 = vmul.f32 %v4646_v45, %v4377_v6 }
0x33e1   :  { %v4378_v62 = vsub.f32 %v4366_v11, %v4376_v14  ;;  %v4381_v18 = vsel %vm59_vm0, %v4379_v27, 0.0 }
0x33e2   :  { %4382 = vadd.xlane.f32.xlu0 %v4381_v18 }
0x33e3   :  { %v4380_v33 = vmul.f32 %v4378_v62, %v4378_v62  ;;  %v4412_v51 = vmul.f32 %v4646_v45, %v4378_v62 }
0x33e5   :  { %v4384_v34 = vsel %vm59_vm0, %v4380_v33, 0.0 }
0x33e6   :  { %4385 = vadd.xlane.f32.xlu1 %v4384_v34 }
0x346b   :  { %v4383_v30 = vpop.xlane.xlu0 %4382 }
0x346c   :  { %v4387_v22 = vmul.f32 0.032258064, %v4383_v30 }
0x346e   :  { %5780 = vrsqrt.f32 %v4387_v22  ;;  %vm4391_vm7 = vcmp.eq.f32.partialorder %v4387_v22, inf  ;;  %v4394_v38 = vand.u32 2147483648, %v4387_v22  ;;  %vm4393_vm2 = vcmp.eq.f32.partialorder %v4387_v22, 0.0 }
0x346f   :  { %v4386_v24 = vpop.xlane.xlu1 %4385 }
0x3470   :  { %v4388_v1 = vmul.f32 0.032258064, %v4386_v24 }
0x3472   :  { %5782 = vrsqrt.f32 %v4388_v1  ;;  %vm4398_vm3 = vcmp.eq.f32.partialorder %v4388_v1, inf  ;;  %v4401_v28 = vand.u32 2147483648, %v4388_v1  ;;  %vm4400_vm4 = vcmp.eq.f32.partialorder %v4388_v1, 0.0 }
0x347b   :  { %v5781_v35 = vpop.eup %5780 }
0x347c   :  { %v4390_v31 = vmul.f32 %v5781_v35, %v4387_v22 }
0x347e   :  { %v4392_v40 = vsel %vm4391_vm7, %v4387_v22, %v4390_v31 }
0x347f   :  { %v5783_v43 = vpop.eup %5782  ;;  %v4395_v9 = vsel %vm4393_vm2, %v4394_v38, %v4392_v40 }
0x3480   :  { %v4403_v8 = vadd.f32 1e-06, %v4395_v9  ;;  %v4397_v36 = vmul.f32 %v5783_v43, %v4388_v1 }
0x3482   :  { %5784 = vrcp.f32 %v4403_v8  ;;  %v4399_v41 = vsel %vm4398_vm3, %v4388_v1, %v4397_v36 }
0x3483   :  { %v4402_v39 = vsel %vm4400_vm4, %v4401_v28, %v4399_v41 }
0x3484   :  { %v4404_v44 = vadd.f32 1e-06, %v4402_v39 }
0x3486   :  { %5786 = vrcp.f32 %v4404_v44 }
0x348f   :  { %v5785_v49 = vpop.eup %5784 }
0x3490   :  { %v4413_v26 = vmul.f32 %v5785_v49, %v4411_v47 }
0x3492   :  { %v4419_v54 = vadd.f32 %v4647_v50, %v4413_v26 }
0x3493   :  { %v5787_v55 = vpop.eup %5786 }
0x3494   :  { %v4414_v56 = vmul.f32 %v5787_v55, %v4412_v51  ;;  %4421 = vst.msk [vmem:[#allocation2] sm:$0xff] %vm59_vm0, %v4419_v54 }
0x3496   :  { %v4420_v58 = vadd.f32 %v4647_v50, %v4414_v56 }
0x3498   :  { %4422 = vst.msk [vmem:[#allocation2 + $0x8] sm:$0xff] %vm59_vm0, %v4420_v58 }
0x3499   :  { %5815 = shalt.err (!%p5812_p4)
}
0x349a   :  { %s5837_s7 = smov 128  }
0x349b   :  { %4434 = dma.vmem_to_hbm [thread:$0]  %s4429_s0, 256, %s7197_s8, [#allocation3], %s5837_s7, %s5837_s7, %s5833_s23  }
0x349c   :  { %5824 = dma.done.wait [#allocation3], 256  }
0x349d   :  { %5825 = vsyncadd [#allocation3], 4294967040 }
0x349e   :  { %4438 = vsyncpa [#allocation3], 1 }

</bundles_post_ra>
